<compile_context>
chip_gen: v7x
topology: tpu7x:2x2x1
jax: 0.10.0
libtpu: 0.0.40
codegen_flags: <defaults>
</compile_context>

<pallas_src>
import numpy as np
import jax
import jax.numpy as jnp
from jax import lax
from jax.experimental import pallas as pl
from jax.experimental.pallas import tpu as pltpu

normsDict = {
    '77': [[-2.63253458e-19, 0.0747821754], [-7.60950004e-18, 11.0664739], [5.24678898, 0.289351404], [58.7473793, 24.0667381], [6.16727829, 38.3645439]],
    '78': [[5.67033925e-19, 0.072242451], [-1.54283684e-16, 11.5338828], [5.23810768, 0.28997916], [58.7434082, 24.0685291], [6.09561586, 38.1356049]],
    '79': [[1.70344847e-13, 0.0941321492], [-0.0454025068, 32.0463941], [5.21954346, 0.266715437], [55.2068787, 23.7196522], [6.77422905, 39.0895233]],
    'N27': [[7.52738469e-19, 0.0748951129], [-8.97477366e-17, 14.7606605], [5.24649334, 0.289964765], [58.7355194, 24.0766029], [6.17841434, 38.4738274]],
    'N30': [[1.43320465e-19, 0.0656044649], [-1.57874135e-16, 10.9083332], [5.3178668, 0.278960317], [58.6466904, 24.0616817], [7.01255989, 40.9709969]],
    'N49': [[-8.9907358e-19, 0.0894479227], [4.15423721e-16, 37.0622618], [5.25545311, 0.300384015], [59.4716339, 24.4349327], [6.75209475, 39.1901703]],
    'N87': [[1.720512e-13, 0.0626231476], [0.0402299992, 7.61060358], [5.26309967, 0.287137657], [58.3059006, 24.0639057], [6.53078842, 39.3127785]],
    '3E6': [[1.01579639e-18, 0.0704261607], [2.34374135e-16, 7.21573964], [5.34307003, 0.266708523], [58.6578026, 24.0552864], [7.23155785, 41.5975838]],
    '3F4': [[-1.75200068e-19, 0.0598892952], [-9.48865199e-18, 47.4414811], [5.14398336, 0.304210454], [57.6523476, 24.3824081], [6.23030663, 36.4991379]],
    'T37': [[1.720512e-13, 0.0626231476], [0.0402299992, 7.61060358], [5.26309967, 0.287137657], [58.3059006, 24.0639057], [6.53078842, 39.3127785]],
    '3C90': [[-3.27923689e-19, 0.0656109348], [6.99196716e-17, 12.6583787], [5.19875193, 0.268499136], [58.6049919, 24.0574703], [6.29652929, 38.458519]],
    '3C92': [[-2.35520104e-13, 0.0653518693], [0.118689366, 12.3585692], [5.16579533, 0.273998171], [58.4305267, 24.0970516], [5.88209248, 36.9935722]],
    '3C94': [[1.21232679e-19, 0.0744383659], [-2.19613879e-17, 11.8042579], [5.22766781, 0.268348873], [58.7128143, 24.0769634], [6.53718996, 39.195591]],
    '3C95': [[5.64116728e-14, 0.0790115297], [0.111898437, 12.9696641], [5.18842697, 0.269014776], [58.622364, 24.095747], [6.25767517, 38.4026108]],
    'ML95S': [[-1.5318518e-13, 0.115827541], [0.384426934, 44.5061606], [5.21606445, 0.265364528], [57.0770302, 24.4398289], [7.30377579, 40.4136391]],
}

N_INIT = 32   # MMINet.n_init
CHUNK = 8     # time steps per unrolled chunk == sublane tile height
assert N_INIT % CHUNK == 0


def savgol_matrix(L, window=7, poly=2):
    """Dense linear operator equivalent to scipy.signal.savgol_filter(..., mode='interp')."""
    half = (window - 1) // 2
    pos = np.arange(window, dtype=np.float64)
    A = np.vander(pos, poly + 1, increasing=True)            # (window, poly+1)
    P = A @ np.linalg.pinv(A)                                # LS projection onto degree-`poly` polys
    center = P[half]                                         # classic SG smoothing coeffs
    M = np.zeros((L, L), dtype=np.float64)
    for i in range(L):
        if i < half:                                         # leading edge: polyfit first window
            M[i, :window] = P[i]
        elif i >= L - half:                                  # trailing edge: polyfit last window
            M[i, L - window:] = P[i - (L - window)]
        else:                                                # interior: centered convolution
            M[i, i - half:i + half + 1] = center
    return M.astype(np.float32)


# ----------------------------------------------------------------------------
# Fused kernel: recurrence (stop-op + dnn1 + EddyCell + dnn2) + post-processing
# ----------------------------------------------------------------------------
def make_mminet_kernel(L, Lpad, opp, hidp, norm):
    b_mean, b_std = float(norm[0][0]), float(norm[0][1])
    h_mean, h_std = float(norm[1][0]), float(norm[1][1])
    n_warm = N_INIT // CHUNK          # warm-up chunks (no H produced)
    n_main = Lpad // CHUNK            # H-producing chunks

    def kernel(b_ref, db_ref, dbdt_ref, s1init_ref, eddyvar_ref, hystvar_ref,
               scale_ref, thre_ref, w01_ref, h2h_ref, wh_ref, we_ref, d2b_ref,
               sg_ref, pv_ref, hf_ref, hseq_ref, sbuf_ref, hbuf_ref):
        Bb = b_ref.shape[1]
        f32 = jnp.float32

        # ---- loop-invariant values hoisted once per batch block ----
        thre = thre_ref[...]                       # (OPP, 1)  stop-operator thresholds (pad rows = 1)
        inv_thre = 1.0 / thre                      # hoisted reciprocal
        eddy_var = eddyvar_ref[...]                # (HIDP, Bb) x2h(F,T) part, hoisted
        w0 = w01_ref[:, 0:1]                       # (HIDP, 1)  x2h weight column for B
        w1 = w01_ref[:, 1:2]                       # (HIDP, 1)  x2h weight column for dB/dt
        h2h = h2h_ref[...]                         # (HIDP, HIDP) bf16 recurrent weight
        hyst_var = hystvar_ref[...]                # (1, Bb)    dnn1(F,T) + dnn1 bias
        wh = wh_ref[...]                           # (CHUNK, CHUNK*OPP)  block-diag dnn1 stop weights
        we = we_ref[...]                           # (CHUNK, CHUNK*HIDP) block-diag dnn2 weights
        d1wop = wh[0:1, 0:opp]                     # (1, OPP)   dnn1 stop-operator row (for t==0 peel)
        d2b = d2b_ref[...]                         # (1, 1)     dnn2 bias
        bias_row = hyst_var + d2b                  # (1, Bb)    added to every H row
        inv_w2 = 1.0 / jnp.sum(we[0:1, :], axis=1, keepdims=True)   # 1/sum(dnn2.weight)

        def load_chunk(base):
            return (b_ref[pl.ds(base, CHUNK), :],
                    db_ref[pl.ds(base, CHUNK), :],
                    dbdt_ref[pl.ds(base, CHUNK), :])

        def step(b_t, db_t, dbdt_t, s1, hx):
            """One recurrence step; only the bf16 h2h matmul sits on the serial chain."""
            # StopOperatorCell: sslu((dB + state)/r) * r
            s1 = jnp.clip((db_t + s1) * inv_thre, -1.0, 1.0) * thre          # (OPP, Bb)
            # EddyCell: sigmoid(x2h([B, dB/dt, F, T]) + h2h(h)); x2h done on the VPU
            z = (eddy_var + w0 * b_t + w1 * dbdt_t
                 + jnp.dot(h2h, hx.astype(jnp.bfloat16),
                           preferred_element_type=jnp.float32))              # (HIDP, Bb)
            hx = 0.5 * jnp.tanh(0.5 * z) + 0.5                               # == sigmoid(z)
            return s1, hx

        # ---- warm-up phase (t < N_INIT): H is never read there, only advance (s1, hx) ----
        b_blk, db_blk, dbdt_blk = load_chunk(0)
        # t == 0 peeled: its H_hyst seeds the eddy hidden state.
        s1 = jnp.clip((db_blk[0:1] + s1init_ref[...]) * inv_thre, -1.0, 1.0) * thre
        h_hyst0 = jnp.dot(d1wop, s1, preferred_element_type=f32) + hyst_var  # (1, Bb)
        hx = jnp.broadcast_to(inv_w2 * (b_blk[0:1] - h_hyst0), (hidp, Bb))
        z0 = (eddy_var + w0 * b_blk[0:1] + w1 * dbdt_blk[0:1]
              + jnp.dot(h2h, hx.astype(jnp.bfloat16), preferred_element_type=f32))
        hx = 0.5 * jnp.tanh(0.5 * z0) + 0.5
        for j in range(1, CHUNK):                                            # rest of chunk 0
            s1, hx = step(b_blk[j:j + 1], db_blk[j:j + 1], dbdt_blk[j:j + 1], s1, hx)

        def warm_body(c, carry):
            s1, hx = carry
            base = pl.multiple_of(c * CHUNK, CHUNK)
            b_blk, db_blk, dbdt_blk = load_chunk(base)
            for j in range(CHUNK):                                           # unroll-by-8
                s1, hx = step(b_blk[j:j + 1], db_blk[j:j + 1], dbdt_blk[j:j + 1], s1, hx)
            return s1, hx

        s1, hx = lax.fori_loop(1, n_warm, warm_body, (s1, hx))

        # ---- main phase (t >= N_INIT): stage (s1, hx) per chunk, batch the H matmuls off-chain ----
        def main_body(c, carry):
            s1, hx = carry
            base_t = pl.multiple_of(N_INIT + c * CHUNK, CHUNK)               # input time offset
            base_o = pl.multiple_of(c * CHUNK, CHUNK)                        # output row offset
            b_blk, db_blk, dbdt_blk = load_chunk(base_t)
            for j in range(CHUNK):                                           # unroll-by-8
                s1, hx = step(b_blk[j:j + 1], db_blk[j:j + 1], dbdt_blk[j:j + 1], s1, hx)
                sbuf_ref[pl.ds(j * opp, opp), :] = s1                        # aligned full-tile store
                hbuf_ref[pl.ds(j * hidp, hidp), :] = hx                      # aligned full-tile store
            # Two chunk-batched matmuls replace 16 per-step (1 x 30) row matmuls.
            h_chunk = (jnp.dot(wh, sbuf_ref[...], preferred_element_type=f32)
                       + jnp.dot(we, hbuf_ref[...], preferred_element_type=f32)
                       + bias_row)                                           # (CHUNK, Bb)
            hseq_ref[pl.ds(base_o, CHUNK), :] = h_chunk                      # one dense 8-row store
            return s1, hx

        _ = lax.fori_loop(0, n_main, main_body, (s1, hx))

        # ---- fused epilogue: de-normalisation + trapezoid power + Savitzky-Golay ----
        Hm = hseq_ref[...] * h_std + h_mean                                  # (Lpad, Bb)
        Bm = b_ref[pl.ds(N_INIT, Lpad), :] * b_std + b_mean                  # (Lpad, Bb)
        dB = Bm[1:, :] - Bm[:-1, :]                                          # one-shot epilogue slices
        avgH = 0.5 * (Hm[1:, :] + Hm[:-1, :])
        prod = dB * avgH
        if Lpad > L:                                                         # mask padded tail rows
            row = lax.broadcasted_iota(jnp.int32, (Lpad - 1, Bb), 0)
            prod = jnp.where(row < (L - 1), prod, 0.0)
        trap = jnp.sum(prod, axis=0, keepdims=True)                          # (1, Bb) trapz(H, B)
        pv_ref[...] = trap * scale_ref[...]                                  # * 10**(F*std + mean)
        # Savitzky-Golay as a dense matmul; pad columns of sg are zero so padded H rows drop out.
        hf_ref[...] = jnp.dot(sg_ref[...], Hm, preferred_element_type=f32)   # (L, Bb)

    return kernel


def _vmem_limit_bytes(Sp, L, Lpad, bb, opp, hidp):
    """Explicit VMEM budget (review item: guard the v7x 64 MiB / 32 MiB-scoped limit)."""
    per_block_in = 4 * (3 * Sp * bb + opp * bb + hidp * bb + 2 * bb)
    bcast_in = 4 * (opp + 2 * hidp + CHUNK * CHUNK * opp + CHUNK * CHUNK * hidp + 1 + L * Lpad) \
        + 2 * hidp * hidp
    out = 4 * (bb + L * bb)
    scratch = 4 * (Lpad * bb + CHUNK * opp * bb + CHUNK * hidp * bb)
    need = 2 * (per_block_in + bcast_in + out) + scratch      # 2x: double-buffered pipeline
    return int(min(max(need + (4 << 20), 16 << 20), 64 << 20))


# ----------------------------------------------------------------------------
# Parameter init (deterministic, synthetic — not a checkpoint load)
# ----------------------------------------------------------------------------
def init_params(key, operator_size=30, hidden_size=30):
    ks = jax.random.split(key, 6)
    s = 0.1
    params = dict(
        dnn1_w=s * jax.random.normal(ks[0], (1, operator_size + 2), jnp.float32),
        dnn1_b=s * jax.random.normal(ks[1], (1,), jnp.float32),
        x2h_w=s * jax.random.normal(ks[2], (hidden_size, 4), jnp.float32),
        h2h_w=s * jax.random.normal(ks[3], (hidden_size, hidden_size), jnp.float32),
        dnn2_w=s * jax.random.normal(ks[4], (1, hidden_size), jnp.float32),
        dnn2_b=s * jax.random.normal(ks[5], (1,), jnp.float32),
    )
    op = operator_size
    thre = (np.arange(1, op + 1, dtype=np.float32) / (op + 1)) ** 3.0  # StopOperatorCell thresholds
    params['operator_thre'] = jnp.asarray(thre.reshape(1, op))
    return params


# ----------------------------------------------------------------------------
# Wrapper (boundary transposes / padding, single pallas_call)
# ----------------------------------------------------------------------------
def _pad_right(a, rows, cols):
    """Zero-pad a 2-D array at the bottom/right up to (rows, cols)."""
    r, c = a.shape
    if r == rows and c == cols:
        return a
    return jnp.pad(a, ((0, rows - r), (0, cols - c)))


def mminet_forward(x, var, params, material='N87'):
    """x: (B, S, 3) features [B, dB, dB/dt]; var: (B, 2 + operator_size) = [F, T, init stop state]."""
    norm = normsDict[material]
    Bsz, S, _ = x.shape
    op = params['operator_thre'].shape[1]
    hid = params['h2h_w'].shape[0]
    assert var.shape == (Bsz, 2 + op)
    assert S > N_INIT + 7                              # SG window needs >= 7 post-warm-up samples
    L = S - N_INIT
    Lpad = ((L + CHUNK - 1) // CHUNK) * CHUNK          # H rows, chunk-aligned
    Sp = N_INIT + Lpad                                 # time axis padded to full chunks
    opp = ((op + 7) // 8) * 8                          # channel dims padded to sublane tiles
    hidp = ((hid + 7) // 8) * 8

    # Batch tiling: whole batch per block when it fits the lane axis, otherwise zero-pad
    # to a multiple of 128 and shard blocks across TensorCores via the "parallel" grid.
    if Bsz > 128:
        bb = 128
        Bp = ((Bsz + 127) // 128) * 128
    else:
        bb, Bp = Bsz, Bsz
    nb = Bp // bb

    f32 = jnp.float32
    x_f = x.astype(f32)
    var_f = var.astype(f32)

    b_sb = _pad_right(jnp.transpose(x_f[:, :, 0]), Sp, Bp)       # (Sp, Bp)  B
    db_sb = _pad_right(jnp.transpose(x_f[:, :, 1]), Sp, Bp)      # (Sp, Bp)  dB
    dbdt_sb = _pad_right(jnp.transpose(x_f[:, :, 2]), Sp, Bp)    # (Sp, Bp)  dB/dt
    F_row = _pad_right(jnp.transpose(var_f[:, 0:1]), 1, Bp)      # (1, Bp)
    T_row = _pad_right(jnp.transpose(var_f[:, 1:2]), 1, Bp)      # (1, Bp)
    s1_init = _pad_right(jnp.transpose(var_f[:, 2:]), opp, Bp)   # (opp, Bp) initial stop state

    # x2h split: the (F,T) part is hoisted here, the (B, dB/dt) part is two VPU FMAs in-kernel.
    xw = params['x2h_w'].astype(f32)                             # (hid, 4) for [B, dB/dt, F, T]
    eddy_var = _pad_right(xw[:, 2:3] * F_row + xw[:, 3:4] * T_row, hidp, Bp)   # (hidp, Bp)
    w01 = _pad_right(xw[:, 0:2], hidp, 2)                        # (hidp, 2)

    d1w = params['dnn1_w'].astype(f32)                           # (1, op+2)
    hyst_var = (d1w[:, op:op + 1] * F_row + d1w[:, op + 1:op + 2] * T_row
                + params['dnn1_b'].astype(f32).reshape(1, 1))    # (1, Bp)  dnn1(F,T) + bias
    d1wop = _pad_right(d1w[:, :op], 1, opp)                      # (1, opp)
    d2w = _pad_right(params['dnn2_w'].astype(f32), 1, hidp)      # (1, hidp)
    d2b = params['dnn2_b'].astype(f32).reshape(1, 1)             # (1, 1)

    # Block-diagonal chunk weights: one (CHUNK, CHUNK*dim) matmul per chunk replaces
    # CHUNK per-step row matmuls on the serial critical path.
    wh_blk = jnp.kron(jnp.eye(CHUNK, dtype=f32), d1wop)          # (CHUNK, CHUNK*opp)
    we_blk = jnp.kron(jnp.eye(CHUNK, dtype=f32), d2w)            # (CHUNK, CHUNK*hidp)

    thre_col = jnp.concatenate(
        [params['operator_thre'].astype(f32).reshape(op, 1),
         jnp.ones((opp - op, 1), f32)], axis=0)                  # (opp, 1) pads = 1 (safe recip)

    h2h = _pad_right(params['h2h_w'].astype(f32), hidp, hidp).astype(jnp.bfloat16)

    f_mean, f_std = float(norm[2][0]), float(norm[2][1])
    scale_row = jnp.power(10.0, F_row * f_std + f_mean).astype(f32)   # (1, Bp)

    sg = _pad_right(jnp.asarray(savgol_matrix(L)), L, Lpad)      # (L, Lpad), zero pad columns

    kernel = make_mminet_kernel(L, Lpad, opp, hidp, norm)

    pv, hf = pl.pallas_call(
        kernel,
        out_shape=(jax.ShapeDtypeStruct((1, Bp), f32),
                   jax.ShapeDtypeStruct((L, Bp), f32)),
        grid=(nb,),
        in_specs=[
            pl.BlockSpec((Sp, bb), lambda i: (0, i)),            # B plane
            pl.BlockSpec((Sp, bb), lambda i: (0, i)),            # dB plane
            pl.BlockSpec((Sp, bb), lambda i: (0, i)),            # dB/dt plane
            pl.BlockSpec((opp, bb), lambda i: (0, i)),           # initial stop-operator state
            pl.BlockSpec((hidp, bb), lambda i: (0, i)),          # hoisted x2h(F,T) term
            pl.BlockSpec((1, bb), lambda i: (0, i)),             # dnn1(F,T) + bias
            pl.BlockSpec((1, bb), lambda i: (0, i)),             # 10**(F*std+mean)
            pl.BlockSpec((opp, 1), lambda i: (0, 0)),            # stop-operator thresholds
            pl.BlockSpec((hidp, 2), lambda i: (0, 0)),           # x2h weights for [B, dB/dt]
            pl.BlockSpec((hidp, hidp), lambda i: (0, 0)),        # h2h weights (bf16)
            pl.BlockSpec((CHUNK, CHUNK * opp), lambda i: (0, 0)),   # block-diag dnn1 weights
            pl.BlockSpec((CHUNK, CHUNK * hidp), lambda i: (0, 0)),  # block-diag dnn2 weights
            pl.BlockSpec((1, 1), lambda i: (0, 0)),              # dnn2 bias
            pl.BlockSpec((L, Lpad), lambda i: (0, 0)),           # Savitzky-Golay matrix
        ],
        out_specs=(
            pl.BlockSpec((1, bb), lambda i: (0, i)),             # Pv
            pl.BlockSpec((L, bb), lambda i: (0, i)),             # filtered H
        ),
        scratch_shapes=[
            pltpu.VMEM((Lpad, bb), f32),                         # H sequence (post-warm-up only)
            pltpu.VMEM((CHUNK * opp, bb), f32),                  # per-chunk stop-operator states
            pltpu.VMEM((CHUNK * hidp, bb), f32),                 # per-chunk eddy hidden states
        ],
        compiler_params=pltpu.CompilerParams(
            dimension_semantics=("parallel",),
            vmem_limit_bytes=_vmem_limit_bytes(Sp, L, Lpad, bb, opp, hidp)),
    )(b_sb, db_sb, dbdt_sb, s1_init, eddy_var, hyst_var, scale_row,
      thre_col, w01, h2h, wh_blk, we_blk, d2b, sg)

    Pv = pv[0, :Bsz]                                             # (B,)  == torch.flatten(Pv)
    Hf = jnp.transpose(hf[:, :Bsz])                              # (B, L) filtered H
    # real_H = cat(H[:, -n_init:], H[:, :-n_init]) along the sequence axis
    real_H = jnp.concatenate([Hf[:, -N_INIT:], Hf[:, :-N_INIT]], axis=1)
    return Pv, real_H


if __name__ == "__main__":
    key = jax.random.PRNGKey(0)
    kx, kv, kp, ks = jax.random.split(key, 4)

    Bsz, S = 2, 96                 # seq must exceed n_init=32 (+7 for the SG window)
    OP, HID = 30, 30               # operator_size, hidden_size (module defaults)

    x = 0.1 * jax.random.normal(kx, (Bsz, S, 3), jnp.float32)            # [B, dB, dB/dt]
    var_ft = jax.random.normal(kv, (Bsz, 2), jnp.float32)                # [F, T]
    var_state = 0.01 * jax.random.normal(ks, (Bsz, OP), jnp.float32)     # initial stop-operator state
    var = jnp.concatenate([var_ft, var_state], axis=1)                   # (B, 2 + OP)

    params = init_params(kp, OP, HID)

    fwd = jax.jit(lambda xx, vv: mminet_forward(xx, vv, params, material='N87'))
    Pv, real_H = fwd(x, var)
    jax.block_until_ready((Pv, real_H))
    assert Pv.shape == (Bsz,)
    assert real_H.shape == (Bsz, S - N_INIT)
    print("KERNEL_OK")
</pallas_src>

<mosaic_0001>
module attributes {stable_mosaic.version = 11 : i64} {
  func.func @kernel(%arg0: i32, %arg1: memref<96x2xf32, #tpu.memory_space<vmem>>, %arg2: memref<96x2xf32, #tpu.memory_space<vmem>>, %arg3: memref<96x2xf32, #tpu.memory_space<vmem>>, %arg4: memref<32x2xf32, #tpu.memory_space<vmem>>, %arg5: memref<32x2xf32, #tpu.memory_space<vmem>>, %arg6: memref<1x2xf32, #tpu.memory_space<vmem>>, %arg7: memref<1x2xf32, #tpu.memory_space<vmem>>, %arg8: memref<32x1xf32, #tpu.memory_space<vmem>>, %arg9: memref<32x2xf32, #tpu.memory_space<vmem>>, %arg10: memref<32x32xbf16, #tpu.memory_space<vmem>>, %arg11: memref<8x256xf32, #tpu.memory_space<vmem>>, %arg12: memref<8x256xf32, #tpu.memory_space<vmem>>, %arg13: memref<1x1xf32, #tpu.memory_space<vmem>>, %arg14: memref<64x64xf32, #tpu.memory_space<vmem>>, %arg15: memref<1x2xf32, #tpu.memory_space<vmem>>, %arg16: memref<64x2xf32, #tpu.memory_space<vmem>>, %arg17: memref<64x2xf32, #tpu.memory_space<vmem>>, %arg18: memref<256x2xf32, #tpu.memory_space<vmem>>, %arg19: memref<256x2xf32, #tpu.memory_space<vmem>>) attributes {dimension_semantics = [#tpu.dimension_semantics<parallel>], iteration_bounds = array<i64: 1>, scalar_prefetch = 0 : i64, scratch_operands = 3 : i64, tpu.core_type = #tpu.core_type<tc>, window_params = [{transform_indices = @transform_0, window_bounds = array<i64: 96, 2>}, {transform_indices = @transform_1, window_bounds = array<i64: 96, 2>}, {transform_indices = @transform_2, window_bounds = array<i64: 96, 2>}, {transform_indices = @transform_3, window_bounds = array<i64: 32, 2>}, {transform_indices = @transform_4, window_bounds = array<i64: 32, 2>}, {transform_indices = @transform_5, window_bounds = array<i64: 1, 2>}, {transform_indices = @transform_6, window_bounds = array<i64: 1, 2>}, {pipeline_mode = #tpu.pipeline_mode<synchronous>, transform_indices = @transform_7, window_bounds = array<i64: 32, 1>}, {pipeline_mode = #tpu.pipeline_mode<synchronous>, transform_indices = @transform_8, window_bounds = array<i64: 32, 2>}, {pipeline_mode = #tpu.pipeline_mode<synchronous>, transform_indices = @transform_9, window_bounds = array<i64: 32, 32>}, {pipeline_mode = #tpu.pipeline_mode<synchronous>, transform_indices = @transform_10, window_bounds = array<i64: 8, 256>}, {pipeline_mode = #tpu.pipeline_mode<synchronous>, transform_indices = @transform_11, window_bounds = array<i64: 8, 256>}, {pipeline_mode = #tpu.pipeline_mode<synchronous>, transform_indices = @transform_12, window_bounds = array<i64: 1, 1>}, {pipeline_mode = #tpu.pipeline_mode<synchronous>, transform_indices = @transform_13, window_bounds = array<i64: 64, 64>}, {transform_indices = @transform_14, window_bounds = array<i64: 1, 2>}, {transform_indices = @transform_15, window_bounds = array<i64: 64, 2>}]} {
    %c0 = arith.constant 0 : index
    %c0_0 = arith.constant 0 : index
    %0 = vector.load %arg8[%c0, %c0_0] : memref<32x1xf32, #tpu.memory_space<vmem>>, vector<32x1xf32>
    %cst = arith.constant 1.000000e+00 : f32
    %1 = vector.broadcast %cst : f32 to vector<32x1xf32>
    %2 = arith.divf %1, %0 : vector<32x1xf32>
    %c0_1 = arith.constant 0 : index
    %c0_2 = arith.constant 0 : index
    %3 = vector.load %arg5[%c0_1, %c0_2] : memref<32x2xf32, #tpu.memory_space<vmem>>, vector<32x2xf32>
    %c0_3 = arith.constant 0 : index
    %c0_4 = arith.constant 0 : index
    %4 = vector.load %arg9[%c0_3, %c0_4] : memref<32x2xf32, #tpu.memory_space<vmem>>, vector<32x1xf32>
    %c0_5 = arith.constant 0 : index
    %c1 = arith.constant 1 : index
    %5 = vector.load %arg9[%c0_5, %c1] : memref<32x2xf32, #tpu.memory_space<vmem>>, vector<32x1xf32>
    %c0_6 = arith.constant 0 : index
    %c0_7 = arith.constant 0 : index
    %6 = vector.load %arg10[%c0_6, %c0_7] : memref<32x32xbf16, #tpu.memory_space<vmem>>, vector<32x32xbf16>
    %c0_8 = arith.constant 0 : index
    %c0_9 = arith.constant 0 : index
    %7 = vector.load %arg6[%c0_8, %c0_9] : memref<1x2xf32, #tpu.memory_space<vmem>>, vector<1x2xf32>
    %c0_10 = arith.constant 0 : index
    %c0_11 = arith.constant 0 : index
    %8 = vector.load %arg11[%c0_10, %c0_11] : memref<8x256xf32, #tpu.memory_space<vmem>>, vector<8x256xf32>
    %c0_12 = arith.constant 0 : index
    %c0_13 = arith.constant 0 : index
    %9 = vector.load %arg12[%c0_12, %c0_13] : memref<8x256xf32, #tpu.memory_space<vmem>>, vector<8x256xf32>
    %10 = vector.extract_strided_slice %8 {offsets = [0, 0], sizes = [1, 32], strides = [1, 1]} : vector<8x256xf32> to vector<1x32xf32>
    %c0_14 = arith.constant 0 : index
    %c0_15 = arith.constant 0 : index
    %11 = vector.load %arg13[%c0_14, %c0_15] : memref<1x1xf32, #tpu.memory_space<vmem>>, vector<1x1xf32>
    %12 = vector.broadcast %11 : vector<1x1xf32> to vector<1x2xf32>
    %13 = arith.addf %7, %12 : vector<1x2xf32>
    %14 = vector.extract_strided_slice %9 {offsets = [0, 0], sizes = [1, 256], strides = [1, 1]} : vector<8x256xf32> to vector<1x256xf32>
    %cst_16 = arith.constant dense<0.000000e+00> : vector<1xf32>
    %15 = vector.multi_reduction <add>, %14, %cst_16 [1] : vector<1x256xf32> to vector<1xf32>
    %16 = vector.shape_cast %15 : vector<1xf32> to vector<1x1xf32>
    %cst_17 = arith.constant 1.000000e+00 : f32
    %17 = vector.broadcast %cst_17 : f32 to vector<1x1xf32>
    %18 = arith.divf %17, %16 : vector<1x1xf32>
    %c0_18 = arith.constant 0 : index
    %c0_19 = arith.constant 0 : index
    %19 = vector.load %arg1[%c0_18, %c0_19] : memref<96x2xf32, #tpu.memory_space<vmem>>, vector<8x2xf32>
    %c0_20 = arith.constant 0 : index
    %c0_21 = arith.constant 0 : index
    %20 = vector.load %arg2[%c0_20, %c0_21] : memref<96x2xf32, #tpu.memory_space<vmem>>, vector<8x2xf32>
    %c0_22 = arith.constant 0 : index
    %c0_23 = arith.constant 0 : index
    %21 = vector.load %arg3[%c0_22, %c0_23] : memref<96x2xf32, #tpu.memory_space<vmem>>, vector<8x2xf32>
    %22 = vector.extract_strided_slice %20 {offsets = [0, 0], sizes = [1, 2], strides = [1, 1]} : vector<8x2xf32> to vector<1x2xf32>
    %c0_24 = arith.constant 0 : index
    %c0_25 = arith.constant 0 : index
    %23 = vector.load %arg4[%c0_24, %c0_25] : memref<32x2xf32, #tpu.memory_space<vmem>>, vector<32x2xf32>
    %24 = vector.broadcast %22 : vector<1x2xf32> to vector<32x2xf32>
    %25 = arith.addf %24, %23 : vector<32x2xf32>
    %26 = vector.broadcast %2 : vector<32x1xf32> to vector<32x2xf32>
    %27 = arith.mulf %25, %26 : vector<32x2xf32>
    %cst_26 = arith.constant -1.000000e+00 : f32
    %cst_27 = arith.constant 1.000000e+00 : f32
    %28 = vector.broadcast %cst_26 : f32 to vector<32x2xf32>
    %29 = arith.maximumf %28, %27 : vector<32x2xf32>
    %30 = vector.broadcast %cst_27 : f32 to vector<32x2xf32>
    %31 = arith.minimumf %30, %29 : vector<32x2xf32>
    %32 = vector.broadcast %0 : vector<32x1xf32> to vector<32x2xf32>
    %33 = arith.mulf %31, %32 : vector<32x2xf32>
    %cst_28 = arith.constant dense<0.000000e+00> : vector<1x2xf32>
    %34 = tpu.matmul %10, %33, %cst_28 {dimension_numbers = #tpu.dot_dimension_numbers<[1], [0], [0], [1], [0, 0, 1, 1], [], []>} : vector<1x32xf32>, vector<32x2xf32>, vector<1x2xf32> -> vector<1x2xf32>
    %35 = arith.addf %34, %7 : vector<1x2xf32>
    %36 = vector.extract_strided_slice %19 {offsets = [0, 0], sizes = [1, 2], strides = [1, 1]} : vector<8x2xf32> to vector<1x2xf32>
    %37 = arith.subf %36, %35 : vector<1x2xf32>
    %38 = vector.broadcast %18 : vector<1x1xf32> to vector<1x2xf32>
    %39 = arith.mulf %38, %37 : vector<1x2xf32>
    %40 = vector.shape_cast %39 : vector<1x2xf32> to vector<1x2xf32>
    %41 = vector.broadcast %40 : vector<1x2xf32> to vector<32x2xf32>
    %42 = vector.extract_strided_slice %19 {offsets = [0, 0], sizes = [1, 2], strides = [1, 1]} : vector<8x2xf32> to vector<1x2xf32>
    %43 = vector.broadcast %4 : vector<32x1xf32> to vector<32x2xf32>
    %44 = vector.broadcast %42 : vector<1x2xf32> to vector<32x2xf32>
    %45 = arith.mulf %43, %44 : vector<32x2xf32>
    %46 = arith.addf %3, %45 : vector<32x2xf32>
    %47 = vector.extract_strided_slice %21 {offsets = [0, 0], sizes = [1, 2], strides = [1, 1]} : vector<8x2xf32> to vector<1x2xf32>
    %48 = vector.broadcast %5 : vector<32x1xf32> to vector<32x2xf32>
    %49 = vector.broadcast %47 : vector<1x2xf32> to vector<32x2xf32>
    %50 = arith.mulf %48, %49 : vector<32x2xf32>
    %51 = arith.addf %46, %50 : vector<32x2xf32>
    %52 = arith.truncf %41 : vector<32x2xf32> to vector<32x2xbf16>
    %cst_29 = arith.constant dense<0.000000e+00> : vector<32x2xf32>
    %53 = tpu.matmul %6, %52, %cst_29 {dimension_numbers = #tpu.dot_dimension_numbers<[1], [0], [0], [1], [0, 0, 1, 1], [], []>} : vector<32x32xbf16>, vector<32x2xbf16>, vector<32x2xf32> -> vector<32x2xf32>
    %54 = arith.addf %51, %53 : vector<32x2xf32>
    %cst_30 = arith.constant 5.000000e-01 : f32
    %55 = vector.broadcast %cst_30 : f32 to vector<32x2xf32>
    %56 = arith.mulf %55, %54 : vector<32x2xf32>
    %57 = math.tanh %56 : vector<32x2xf32>
    %cst_31 = arith.constant 5.000000e-01 : f32
    %58 = vector.broadcast %cst_31 : f32 to vector<32x2xf32>
    %59 = arith.mulf %58, %57 : vector<32x2xf32>
    %cst_32 = arith.constant 5.000000e-01 : f32
    %60 = vector.broadcast %cst_32 : f32 to vector<32x2xf32>
    %61 = arith.addf %59, %60 : vector<32x2xf32>
    %62 = vector.extract_strided_slice %19 {offsets = [1, 0], sizes = [1, 2], strides = [1, 1]} : vector<8x2xf32> to vector<1x2xf32>
    %63 = vector.extract_strided_slice %20 {offsets = [1, 0], sizes = [1, 2], strides = [1, 1]} : vector<8x2xf32> to vector<1x2xf32>
    %64 = vector.extract_strided_slice %21 {offsets = [1, 0], sizes = [1, 2], strides = [1, 1]} : vector<8x2xf32> to vector<1x2xf32>
    %65 = vector.broadcast %63 : vector<1x2xf32> to vector<32x2xf32>
    %66 = arith.addf %65, %33 : vector<32x2xf32>
    %67 = vector.broadcast %2 : vector<32x1xf32> to vector<32x2xf32>
    %68 = arith.mulf %66, %67 : vector<32x2xf32>
    %cst_33 = arith.constant -1.000000e+00 : f32
    %cst_34 = arith.constant 1.000000e+00 : f32
    %69 = vector.broadcast %cst_33 : f32 to vector<32x2xf32>
    %70 = arith.maximumf %69, %68 : vector<32x2xf32>
    %71 = vector.broadcast %cst_34 : f32 to vector<32x2xf32>
    %72 = arith.minimumf %71, %70 : vector<32x2xf32>
    %73 = vector.broadcast %0 : vector<32x1xf32> to vector<32x2xf32>
    %74 = arith.mulf %72, %73 : vector<32x2xf32>
    %75 = vector.broadcast %4 : vector<32x1xf32> to vector<32x2xf32>
    %76 = vector.broadcast %62 : vector<1x2xf32> to vector<32x2xf32>
    %77 = arith.mulf %75, %76 : vector<32x2xf32>
    %78 = arith.addf %3, %77 : vector<32x2xf32>
    %79 = vector.broadcast %5 : vector<32x1xf32> to vector<32x2xf32>
    %80 = vector.broadcast %64 : vector<1x2xf32> to vector<32x2xf32>
    %81 = arith.mulf %79, %80 : vector<32x2xf32>
    %82 = arith.addf %78, %81 : vector<32x2xf32>
    %83 = arith.truncf %61 : vector<32x2xf32> to vector<32x2xbf16>
    %cst_35 = arith.constant dense<0.000000e+00> : vector<32x2xf32>
    %84 = tpu.matmul %6, %83, %cst_35 {dimension_numbers = #tpu.dot_dimension_numbers<[1], [0], [0], [1], [0, 0, 1, 1], [], []>} : vector<32x32xbf16>, vector<32x2xbf16>, vector<32x2xf32> -> vector<32x2xf32>
    %85 = arith.addf %82, %84 : vector<32x2xf32>
    %cst_36 = arith.constant 5.000000e-01 : f32
    %86 = vector.broadcast %cst_36 : f32 to vector<32x2xf32>
    %87 = arith.mulf %86, %85 : vector<32x2xf32>
    %88 = math.tanh %87 : vector<32x2xf32>
    %cst_37 = arith.constant 5.000000e-01 : f32
    %89 = vector.broadcast %cst_37 : f32 to vector<32x2xf32>
    %90 = arith.mulf %89, %88 : vector<32x2xf32>
    %cst_38 = arith.constant 5.000000e-01 : f32
    %91 = vector.broadcast %cst_38 : f32 to vector<32x2xf32>
    %92 = arith.addf %90, %91 : vector<32x2xf32>
    %93 = vector.extract_strided_slice %19 {offsets = [2, 0], sizes = [1, 2], strides = [1, 1]} : vector<8x2xf32> to vector<1x2xf32>
    %94 = vector.extract_strided_slice %20 {offsets = [2, 0], sizes = [1, 2], strides = [1, 1]} : vector<8x2xf32> to vector<1x2xf32>
    %95 = vector.extract_strided_slice %21 {offsets = [2, 0], sizes = [1, 2], strides = [1, 1]} : vector<8x2xf32> to vector<1x2xf32>
    %96 = vector.broadcast %94 : vector<1x2xf32> to vector<32x2xf32>
    %97 = arith.addf %96, %74 : vector<32x2xf32>
    %98 = vector.broadcast %2 : vector<32x1xf32> to vector<32x2xf32>
    %99 = arith.mulf %97, %98 : vector<32x2xf32>
    %cst_39 = arith.constant -1.000000e+00 : f32
    %cst_40 = arith.constant 1.000000e+00 : f32
    %100 = vector.broadcast %cst_39 : f32 to vector<32x2xf32>
    %101 = arith.maximumf %100, %99 : vector<32x2xf32>
    %102 = vector.broadcast %cst_40 : f32 to vector<32x2xf32>
    %103 = arith.minimumf %102, %101 : vector<32x2xf32>
    %104 = vector.broadcast %0 : vector<32x1xf32> to vector<32x2xf32>
    %105 = arith.mulf %103, %104 : vector<32x2xf32>
    %106 = vector.broadcast %4 : vector<32x1xf32> to vector<32x2xf32>
    %107 = vector.broadcast %93 : vector<1x2xf32> to vector<32x2xf32>
    %108 = arith.mulf %106, %107 : vector<32x2xf32>
    %109 = arith.addf %3, %108 : vector<32x2xf32>
    %110 = vector.broadcast %5 : vector<32x1xf32> to vector<32x2xf32>
    %111 = vector.broadcast %95 : vector<1x2xf32> to vector<32x2xf32>
    %112 = arith.mulf %110, %111 : vector<32x2xf32>
    %113 = arith.addf %109, %112 : vector<32x2xf32>
    %114 = arith.truncf %92 : vector<32x2xf32> to vector<32x2xbf16>
    %cst_41 = arith.constant dense<0.000000e+00> : vector<32x2xf32>
    %115 = tpu.matmul %6, %114, %cst_41 {dimension_numbers = #tpu.dot_dimension_numbers<[1], [0], [0], [1], [0, 0, 1, 1], [], []>} : vector<32x32xbf16>, vector<32x2xbf16>, vector<32x2xf32> -> vector<32x2xf32>
    %116 = arith.addf %113, %115 : vector<32x2xf32>
    %cst_42 = arith.constant 5.000000e-01 : f32
    %117 = vector.broadcast %cst_42 : f32 to vector<32x2xf32>
    %118 = arith.mulf %117, %116 : vector<32x2xf32>
    %119 = math.tanh %118 : vector<32x2xf32>
    %cst_43 = arith.constant 5.000000e-01 : f32
    %120 = vector.broadcast %cst_43 : f32 to vector<32x2xf32>
    %121 = arith.mulf %120, %119 : vector<32x2xf32>
    %cst_44 = arith.constant 5.000000e-01 : f32
    %122 = vector.broadcast %cst_44 : f32 to vector<32x2xf32>
    %123 = arith.addf %121, %122 : vector<32x2xf32>
    %124 = vector.extract_strided_slice %19 {offsets = [3, 0], sizes = [1, 2], strides = [1, 1]} : vector<8x2xf32> to vector<1x2xf32>
    %125 = vector.extract_strided_slice %20 {offsets = [3, 0], sizes = [1, 2], strides = [1, 1]} : vector<8x2xf32> to vector<1x2xf32>
    %126 = vector.extract_strided_slice %21 {offsets = [3, 0], sizes = [1, 2], strides = [1, 1]} : vector<8x2xf32> to vector<1x2xf32>
    %127 = vector.broadcast %125 : vector<1x2xf32> to vector<32x2xf32>
    %128 = arith.addf %127, %105 : vector<32x2xf32>
    %129 = vector.broadcast %2 : vector<32x1xf32> to vector<32x2xf32>
    %130 = arith.mulf %128, %129 : vector<32x2xf32>
    %cst_45 = arith.constant -1.000000e+00 : f32
    %cst_46 = arith.constant 1.000000e+00 : f32
    %131 = vector.broadcast %cst_45 : f32 to vector<32x2xf32>
    %132 = arith.maximumf %131, %130 : vector<32x2xf32>
    %133 = vector.broadcast %cst_46 : f32 to vector<32x2xf32>
    %134 = arith.minimumf %133, %132 : vector<32x2xf32>
    %135 = vector.broadcast %0 : vector<32x1xf32> to vector<32x2xf32>
    %136 = arith.mulf %134, %135 : vector<32x2xf32>
    %137 = vector.broadcast %4 : vector<32x1xf32> to vector<32x2xf32>
    %138 = vector.broadcast %124 : vector<1x2xf32> to vector<32x2xf32>
    %139 = arith.mulf %137, %138 : vector<32x2xf32>
    %140 = arith.addf %3, %139 : vector<32x2xf32>
    %141 = vector.broadcast %5 : vector<32x1xf32> to vector<32x2xf32>
    %142 = vector.broadcast %126 : vector<1x2xf32> to vector<32x2xf32>
    %143 = arith.mulf %141, %142 : vector<32x2xf32>
    %144 = arith.addf %140, %143 : vector<32x2xf32>
    %145 = arith.truncf %123 : vector<32x2xf32> to vector<32x2xbf16>
    %cst_47 = arith.constant dense<0.000000e+00> : vector<32x2xf32>
    %146 = tpu.matmul %6, %145, %cst_47 {dimension_numbers = #tpu.dot_dimension_numbers<[1], [0], [0], [1], [0, 0, 1, 1], [], []>} : vector<32x32xbf16>, vector<32x2xbf16>, vector<32x2xf32> -> vector<32x2xf32>
    %147 = arith.addf %144, %146 : vector<32x2xf32>
    %cst_48 = arith.constant 5.000000e-01 : f32
    %148 = vector.broadcast %cst_48 : f32 to vector<32x2xf32>
    %149 = arith.mulf %148, %147 : vector<32x2xf32>
    %150 = math.tanh %149 : vector<32x2xf32>
    %cst_49 = arith.constant 5.000000e-01 : f32
    %151 = vector.broadcast %cst_49 : f32 to vector<32x2xf32>
    %152 = arith.mulf %151, %150 : vector<32x2xf32>
    %cst_50 = arith.constant 5.000000e-01 : f32
    %153 = vector.broadcast %cst_50 : f32 to vector<32x2xf32>
    %154 = arith.addf %152, %153 : vector<32x2xf32>
    %155 = vector.extract_strided_slice %19 {offsets = [4, 0], sizes = [1, 2], strides = [1, 1]} : vector<8x2xf32> to vector<1x2xf32>
    %156 = vector.extract_strided_slice %20 {offsets = [4, 0], sizes = [1, 2], strides = [1, 1]} : vector<8x2xf32> to vector<1x2xf32>
    %157 = vector.extract_strided_slice %21 {offsets = [4, 0], sizes = [1, 2], strides = [1, 1]} : vector<8x2xf32> to vector<1x2xf32>
    %158 = vector.broadcast %156 : vector<1x2xf32> to vector<32x2xf32>
    %159 = arith.addf %158, %136 : vector<32x2xf32>
    %160 = vector.broadcast %2 : vector<32x1xf32> to vector<32x2xf32>
    %161 = arith.mulf %159, %160 : vector<32x2xf32>
    %cst_51 = arith.constant -1.000000e+00 : f32
    %cst_52 = arith.constant 1.000000e+00 : f32
    %162 = vector.broadcast %cst_51 : f32 to vector<32x2xf32>
    %163 = arith.maximumf %162, %161 : vector<32x2xf32>
    %164 = vector.broadcast %cst_52 : f32 to vector<32x2xf32>
    %165 = arith.minimumf %164, %163 : vector<32x2xf32>
    %166 = vector.broadcast %0 : vector<32x1xf32> to vector<32x2xf32>
    %167 = arith.mulf %165, %166 : vector<32x2xf32>
    %168 = vector.broadcast %4 : vector<32x1xf32> to vector<32x2xf32>
    %169 = vector.broadcast %155 : vector<1x2xf32> to vector<32x2xf32>
    %170 = arith.mulf %168, %169 : vector<32x2xf32>
    %171 = arith.addf %3, %170 : vector<32x2xf32>
    %172 = vector.broadcast %5 : vector<32x1xf32> to vector<32x2xf32>
    %173 = vector.broadcast %157 : vector<1x2xf32> to vector<32x2xf32>
    %174 = arith.mulf %172, %173 : vector<32x2xf32>
    %175 = arith.addf %171, %174 : vector<32x2xf32>
    %176 = arith.truncf %154 : vector<32x2xf32> to vector<32x2xbf16>
    %cst_53 = arith.constant dense<0.000000e+00> : vector<32x2xf32>
    %177 = tpu.matmul %6, %176, %cst_53 {dimension_numbers = #tpu.dot_dimension_numbers<[1], [0], [0], [1], [0, 0, 1, 1], [], []>} : vector<32x32xbf16>, vector<32x2xbf16>, vector<32x2xf32> -> vector<32x2xf32>
    %178 = arith.addf %175, %177 : vector<32x2xf32>
    %cst_54 = arith.constant 5.000000e-01 : f32
    %179 = vector.broadcast %cst_54 : f32 to vector<32x2xf32>
    %180 = arith.mulf %179, %178 : vector<32x2xf32>
    %181 = math.tanh %180 : vector<32x2xf32>
    %cst_55 = arith.constant 5.000000e-01 : f32
    %182 = vector.broadcast %cst_55 : f32 to vector<32x2xf32>
    %183 = arith.mulf %182, %181 : vector<32x2xf32>
    %cst_56 = arith.constant 5.000000e-01 : f32
    %184 = vector.broadcast %cst_56 : f32 to vector<32x2xf32>
    %185 = arith.addf %183, %184 : vector<32x2xf32>
    %186 = vector.extract_strided_slice %19 {offsets = [5, 0], sizes = [1, 2], strides = [1, 1]} : vector<8x2xf32> to vector<1x2xf32>
    %187 = vector.extract_strided_slice %20 {offsets = [5, 0], sizes = [1, 2], strides = [1, 1]} : vector<8x2xf32> to vector<1x2xf32>
    %188 = vector.extract_strided_slice %21 {offsets = [5, 0], sizes = [1, 2], strides = [1, 1]} : vector<8x2xf32> to vector<1x2xf32>
    %189 = vector.broadcast %187 : vector<1x2xf32> to vector<32x2xf32>
    %190 = arith.addf %189, %167 : vector<32x2xf32>
    %191 = vector.broadcast %2 : vector<32x1xf32> to vector<32x2xf32>
    %192 = arith.mulf %190, %191 : vector<32x2xf32>
    %cst_57 = arith.constant -1.000000e+00 : f32
    %cst_58 = arith.constant 1.000000e+00 : f32
    %193 = vector.broadcast %cst_57 : f32 to vector<32x2xf32>
    %194 = arith.maximumf %193, %192 : vector<32x2xf32>
    %195 = vector.broadcast %cst_58 : f32 to vector<32x2xf32>
    %196 = arith.minimumf %195, %194 : vector<32x2xf32>
    %197 = vector.broadcast %0 : vector<32x1xf32> to vector<32x2xf32>
    %198 = arith.mulf %196, %197 : vector<32x2xf32>
    %199 = vector.broadcast %4 : vector<32x1xf32> to vector<32x2xf32>
    %200 = vector.broadcast %186 : vector<1x2xf32> to vector<32x2xf32>
    %201 = arith.mulf %199, %200 : vector<32x2xf32>
    %202 = arith.addf %3, %201 : vector<32x2xf32>
    %203 = vector.broadcast %5 : vector<32x1xf32> to vector<32x2xf32>
    %204 = vector.broadcast %188 : vector<1x2xf32> to vector<32x2xf32>
    %205 = arith.mulf %203, %204 : vector<32x2xf32>
    %206 = arith.addf %202, %205 : vector<32x2xf32>
    %207 = arith.truncf %185 : vector<32x2xf32> to vector<32x2xbf16>
    %cst_59 = arith.constant dense<0.000000e+00> : vector<32x2xf32>
    %208 = tpu.matmul %6, %207, %cst_59 {dimension_numbers = #tpu.dot_dimension_numbers<[1], [0], [0], [1], [0, 0, 1, 1], [], []>} : vector<32x32xbf16>, vector<32x2xbf16>, vector<32x2xf32> -> vector<32x2xf32>
    %209 = arith.addf %206, %208 : vector<32x2xf32>
    %cst_60 = arith.constant 5.000000e-01 : f32
    %210 = vector.broadcast %cst_60 : f32 to vector<32x2xf32>
    %211 = arith.mulf %210, %209 : vector<32x2xf32>
    %212 = math.tanh %211 : vector<32x2xf32>
    %cst_61 = arith.constant 5.000000e-01 : f32
    %213 = vector.broadcast %cst_61 : f32 to vector<32x2xf32>
    %214 = arith.mulf %213, %212 : vector<32x2xf32>
    %cst_62 = arith.constant 5.000000e-01 : f32
    %215 = vector.broadcast %cst_62 : f32 to vector<32x2xf32>
    %216 = arith.addf %214, %215 : vector<32x2xf32>
    %217 = vector.extract_strided_slice %19 {offsets = [6, 0], sizes = [1, 2], strides = [1, 1]} : vector<8x2xf32> to vector<1x2xf32>
    %218 = vector.extract_strided_slice %20 {offsets = [6, 0], sizes = [1, 2], strides = [1, 1]} : vector<8x2xf32> to vector<1x2xf32>
    %219 = vector.extract_strided_slice %21 {offsets = [6, 0], sizes = [1, 2], strides = [1, 1]} : vector<8x2xf32> to vector<1x2xf32>
    %220 = vector.broadcast %218 : vector<1x2xf32> to vector<32x2xf32>
    %221 = arith.addf %220, %198 : vector<32x2xf32>
    %222 = vector.broadcast %2 : vector<32x1xf32> to vector<32x2xf32>
    %223 = arith.mulf %221, %222 : vector<32x2xf32>
    %cst_63 = arith.constant -1.000000e+00 : f32
    %cst_64 = arith.constant 1.000000e+00 : f32
    %224 = vector.broadcast %cst_63 : f32 to vector<32x2xf32>
    %225 = arith.maximumf %224, %223 : vector<32x2xf32>
    %226 = vector.broadcast %cst_64 : f32 to vector<32x2xf32>
    %227 = arith.minimumf %226, %225 : vector<32x2xf32>
    %228 = vector.broadcast %0 : vector<32x1xf32> to vector<32x2xf32>
    %229 = arith.mulf %227, %228 : vector<32x2xf32>
    %230 = vector.broadcast %4 : vector<32x1xf32> to vector<32x2xf32>
    %231 = vector.broadcast %217 : vector<1x2xf32> to vector<32x2xf32>
    %232 = arith.mulf %230, %231 : vector<32x2xf32>
    %233 = arith.addf %3, %232 : vector<32x2xf32>
    %234 = vector.broadcast %5 : vector<32x1xf32> to vector<32x2xf32>
    %235 = vector.broadcast %219 : vector<1x2xf32> to vector<32x2xf32>
    %236 = arith.mulf %234, %235 : vector<32x2xf32>
    %237 = arith.addf %233, %236 : vector<32x2xf32>
    %238 = arith.truncf %216 : vector<32x2xf32> to vector<32x2xbf16>
    %cst_65 = arith.constant dense<0.000000e+00> : vector<32x2xf32>
    %239 = tpu.matmul %6, %238, %cst_65 {dimension_numbers = #tpu.dot_dimension_numbers<[1], [0], [0], [1], [0, 0, 1, 1], [], []>} : vector<32x32xbf16>, vector<32x2xbf16>, vector<32x2xf32> -> vector<32x2xf32>
    %240 = arith.addf %237, %239 : vector<32x2xf32>
    %cst_66 = arith.constant 5.000000e-01 : f32
    %241 = vector.broadcast %cst_66 : f32 to vector<32x2xf32>
    %242 = arith.mulf %241, %240 : vector<32x2xf32>
    %243 = math.tanh %242 : vector<32x2xf32>
    %cst_67 = arith.constant 5.000000e-01 : f32
    %244 = vector.broadcast %cst_67 : f32 to vector<32x2xf32>
    %245 = arith.mulf %244, %243 : vector<32x2xf32>
    %cst_68 = arith.constant 5.000000e-01 : f32
    %246 = vector.broadcast %cst_68 : f32 to vector<32x2xf32>
    %247 = arith.addf %245, %246 : vector<32x2xf32>
    %248 = vector.extract_strided_slice %19 {offsets = [7, 0], sizes = [1, 2], strides = [1, 1]} : vector<8x2xf32> to vector<1x2xf32>
    %249 = vector.extract_strided_slice %20 {offsets = [7, 0], sizes = [1, 2], strides = [1, 1]} : vector<8x2xf32> to vector<1x2xf32>
    %250 = vector.extract_strided_slice %21 {offsets = [7, 0], sizes = [1, 2], strides = [1, 1]} : vector<8x2xf32> to vector<1x2xf32>
    %251 = vector.broadcast %249 : vector<1x2xf32> to vector<32x2xf32>
    %252 = arith.addf %251, %229 : vector<32x2xf32>
    %253 = vector.broadcast %2 : vector<32x1xf32> to vector<32x2xf32>
    %254 = arith.mulf %252, %253 : vector<32x2xf32>
    %cst_69 = arith.constant -1.000000e+00 : f32
    %cst_70 = arith.constant 1.000000e+00 : f32
    %255 = vector.broadcast %cst_69 : f32 to vector<32x2xf32>
    %256 = arith.maximumf %255, %254 : vector<32x2xf32>
    %257 = vector.broadcast %cst_70 : f32 to vector<32x2xf32>
    %258 = arith.minimumf %257, %256 : vector<32x2xf32>
    %259 = vector.broadcast %0 : vector<32x1xf32> to vector<32x2xf32>
    %260 = arith.mulf %258, %259 : vector<32x2xf32>
    %261 = vector.broadcast %4 : vector<32x1xf32> to vector<32x2xf32>
    %262 = vector.broadcast %248 : vector<1x2xf32> to vector<32x2xf32>
    %263 = arith.mulf %261, %262 : vector<32x2xf32>
    %264 = arith.addf %3, %263 : vector<32x2xf32>
    %265 = vector.broadcast %5 : vector<32x1xf32> to vector<32x2xf32>
    %266 = vector.broadcast %250 : vector<1x2xf32> to vector<32x2xf32>
    %267 = arith.mulf %265, %266 : vector<32x2xf32>
    %268 = arith.addf %264, %267 : vector<32x2xf32>
    %269 = arith.truncf %247 : vector<32x2xf32> to vector<32x2xbf16>
    %cst_71 = arith.constant dense<0.000000e+00> : vector<32x2xf32>
    %270 = tpu.matmul %6, %269, %cst_71 {dimension_numbers = #tpu.dot_dimension_numbers<[1], [0], [0], [1], [0, 0, 1, 1], [], []>} : vector<32x32xbf16>, vector<32x2xbf16>, vector<32x2xf32> -> vector<32x2xf32>
    %271 = arith.addf %268, %270 : vector<32x2xf32>
    %cst_72 = arith.constant 5.000000e-01 : f32
    %272 = vector.broadcast %cst_72 : f32 to vector<32x2xf32>
    %273 = arith.mulf %272, %271 : vector<32x2xf32>
    %274 = math.tanh %273 : vector<32x2xf32>
    %cst_73 = arith.constant 5.000000e-01 : f32
    %275 = vector.broadcast %cst_73 : f32 to vector<32x2xf32>
    %276 = arith.mulf %275, %274 : vector<32x2xf32>
    %cst_74 = arith.constant 5.000000e-01 : f32
    %277 = vector.broadcast %cst_74 : f32 to vector<32x2xf32>
    %278 = arith.addf %276, %277 : vector<32x2xf32>
    %c1_i32 = arith.constant 1 : i32
    %c3_i32 = arith.constant 3 : i32
    %279 = arith.addi %c1_i32, %c3_i32 : i32
    %c1_i32_75 = arith.constant 1 : i32
    %280:2 = scf.for %arg20 = %c1_i32 to %279 step %c1_i32_75 iter_args(%arg21 = %260, %arg22 = %278) -> (vector<32x2xf32>, vector<32x2xf32>)  : i32 {
      %c8_i32_97 = arith.constant 8 : i32
      %310 = arith.muli %arg20, %c8_i32_97 : i32
      %311 = tpu.assume_multiple %310, 8 : i32
      %312 = arith.index_cast %311 : i32 to index
      %c0_98 = arith.constant 0 : index
      %313 = vector.load %arg1[%312, %c0_98] : memref<96x2xf32, #tpu.memory_space<vmem>>, vector<8x2xf32>
      %314 = arith.index_cast %311 : i32 to index
      %c0_99 = arith.constant 0 : index
      %315 = vector.load %arg2[%314, %c0_99] : memref<96x2xf32, #tpu.memory_space<vmem>>, vector<8x2xf32>
      %316 = arith.index_cast %311 : i32 to index
      %c0_100 = arith.constant 0 : index
      %317 = vector.load %arg3[%316, %c0_100] : memref<96x2xf32, #tpu.memory_space<vmem>>, vector<8x2xf32>
      %318 = vector.extract_strided_slice %313 {offsets = [0, 0], sizes = [1, 2], strides = [1, 1]} : vector<8x2xf32> to vector<1x2xf32>
      %319 = vector.extract_strided_slice %315 {offsets = [0, 0], sizes = [1, 2], strides = [1, 1]} : vector<8x2xf32> to vector<1x2xf32>
      %320 = vector.extract_strided_slice %317 {offsets = [0, 0], sizes = [1, 2], strides = [1, 1]} : vector<8x2xf32> to vector<1x2xf32>
      %321 = vector.broadcast %319 : vector<1x2xf32> to vector<32x2xf32>
      %322 = arith.addf %321, %arg21 : vector<32x2xf32>
      %323 = vector.broadcast %2 : vector<32x1xf32> to vector<32x2xf32>
      %324 = arith.mulf %322, %323 : vector<32x2xf32>
      %cst_101 = arith.constant -1.000000e+00 : f32
      %cst_102 = arith.constant 1.000000e+00 : f32
      %325 = vector.broadcast %cst_101 : f32 to vector<32x2xf32>
      %326 = arith.maximumf %325, %324 : vector<32x2xf32>
      %327 = vector.broadcast %cst_102 : f32 to vector<32x2xf32>
      %328 = arith.minimumf %327, %326 : vector<32x2xf32>
      %329 = vector.broadcast %0 : vector<32x1xf32> to vector<32x2xf32>
      %330 = arith.mulf %328, %329 : vector<32x2xf32>
      %331 = vector.broadcast %4 : vector<32x1xf32> to vector<32x2xf32>
      %332 = vector.broadcast %318 : vector<1x2xf32> to vector<32x2xf32>
      %333 = arith.mulf %331, %332 : vector<32x2xf32>
      %334 = arith.addf %3, %333 : vector<32x2xf32>
      %335 = vector.broadcast %5 : vector<32x1xf32> to vector<32x2xf32>
      %336 = vector.broadcast %320 : vector<1x2xf32> to vector<32x2xf32>
      %337 = arith.mulf %335, %336 : vector<32x2xf32>
      %338 = arith.addf %334, %337 : vector<32x2xf32>
      %339 = arith.truncf %arg22 : vector<32x2xf32> to vector<32x2xbf16>
      %cst_103 = arith.constant dense<0.000000e+00> : vector<32x2xf32>
      %340 = tpu.matmul %6, %339, %cst_103 {dimension_numbers = #tpu.dot_dimension_numbers<[1], [0], [0], [1], [0, 0, 1, 1], [], []>} : vector<32x32xbf16>, vector<32x2xbf16>, vector<32x2xf32> -> vector<32x2xf32>
      %341 = arith.addf %338, %340 : vector<32x2xf32>
      %cst_104 = arith.constant 5.000000e-01 : f32
      %342 = vector.broadcast %cst_104 : f32 to vector<32x2xf32>
      %343 = arith.mulf %342, %341 : vector<32x2xf32>
      %344 = math.tanh %343 : vector<32x2xf32>
      %cst_105 = arith.constant 5.000000e-01 : f32
      %345 = vector.broadcast %cst_105 : f32 to vector<32x2xf32>
      %346 = arith.mulf %345, %344 : vector<32x2xf32>
      %cst_106 = arith.constant 5.000000e-01 : f32
      %347 = vector.broadcast %cst_106 : f32 to vector<32x2xf32>
      %348 = arith.addf %346, %347 : vector<32x2xf32>
      %349 = vector.extract_strided_slice %313 {offsets = [1, 0], sizes = [1, 2], strides = [1, 1]} : vector<8x2xf32> to vector<1x2xf32>
      %350 = vector.extract_strided_slice %315 {offsets = [1, 0], sizes = [1, 2], strides = [1, 1]} : vector<8x2xf32> to vector<1x2xf32>
      %351 = vector.extract_strided_slice %317 {offsets = [1, 0], sizes = [1, 2], strides = [1, 1]} : vector<8x2xf32> to vector<1x2xf32>
      %352 = vector.broadcast %350 : vector<1x2xf32> to vector<32x2xf32>
      %353 = arith.addf %352, %330 : vector<32x2xf32>
      %354 = vector.broadcast %2 : vector<32x1xf32> to vector<32x2xf32>
      %355 = arith.mulf %353, %354 : vector<32x2xf32>
      %cst_107 = arith.constant -1.000000e+00 : f32
      %cst_108 = arith.constant 1.000000e+00 : f32
      %356 = vector.broadcast %cst_107 : f32 to vector<32x2xf32>
      %357 = arith.maximumf %356, %355 : vector<32x2xf32>
      %358 = vector.broadcast %cst_108 : f32 to vector<32x2xf32>
      %359 = arith.minimumf %358, %357 : vector<32x2xf32>
      %360 = vector.broadcast %0 : vector<32x1xf32> to vector<32x2xf32>
      %361 = arith.mulf %359, %360 : vector<32x2xf32>
      %362 = vector.broadcast %4 : vector<32x1xf32> to vector<32x2xf32>
      %363 = vector.broadcast %349 : vector<1x2xf32> to vector<32x2xf32>
      %364 = arith.mulf %362, %363 : vector<32x2xf32>
      %365 = arith.addf %3, %364 : vector<32x2xf32>
      %366 = vector.broadcast %5 : vector<32x1xf32> to vector<32x2xf32>
      %367 = vector.broadcast %351 : vector<1x2xf32> to vector<32x2xf32>
      %368 = arith.mulf %366, %367 : vector<32x2xf32>
      %369 = arith.addf %365, %368 : vector<32x2xf32>
      %370 = arith.truncf %348 : vector<32x2xf32> to vector<32x2xbf16>
      %cst_109 = arith.constant dense<0.000000e+00> : vector<32x2xf32>
      %371 = tpu.matmul %6, %370, %cst_109 {dimension_numbers = #tpu.dot_dimension_numbers<[1], [0], [0], [1], [0, 0, 1, 1], [], []>} : vector<32x32xbf16>, vector<32x2xbf16>, vector<32x2xf32> -> vector<32x2xf32>
      %372 = arith.addf %369, %371 : vector<32x2xf32>
      %cst_110 = arith.constant 5.000000e-01 : f32
      %373 = vector.broadcast %cst_110 : f32 to vector<32x2xf32>
      %374 = arith.mulf %373, %372 : vector<32x2xf32>
      %375 = math.tanh %374 : vector<32x2xf32>
      %cst_111 = arith.constant 5.000000e-01 : f32
      %376 = vector.broadcast %cst_111 : f32 to vector<32x2xf32>
      %377 = arith.mulf %376, %375 : vector<32x2xf32>
      %cst_112 = arith.constant 5.000000e-01 : f32
      %378 = vector.broadcast %cst_112 : f32 to vector<32x2xf32>
      %379 = arith.addf %377, %378 : vector<32x2xf32>
      %380 = vector.extract_strided_slice %313 {offsets = [2, 0], sizes = [1, 2], strides = [1, 1]} : vector<8x2xf32> to vector<1x2xf32>
      %381 = vector.extract_strided_slice %315 {offsets = [2, 0], sizes = [1, 2], strides = [1, 1]} : vector<8x2xf32> to vector<1x2xf32>
      %382 = vector.extract_strided_slice %317 {offsets = [2, 0], sizes = [1, 2], strides = [1, 1]} : vector<8x2xf32> to vector<1x2xf32>
      %383 = vector.broadcast %381 : vector<1x2xf32> to vector<32x2xf32>
      %384 = arith.addf %383, %361 : vector<32x2xf32>
      %385 = vector.broadcast %2 : vector<32x1xf32> to vector<32x2xf32>
      %386 = arith.mulf %384, %385 : vector<32x2xf32>
      %cst_113 = arith.constant -1.000000e+00 : f32
      %cst_114 = arith.constant 1.000000e+00 : f32
      %387 = vector.broadcast %cst_113 : f32 to vector<32x2xf32>
      %388 = arith.maximumf %387, %386 : vector<32x2xf32>
      %389 = vector.broadcast %cst_114 : f32 to vector<32x2xf32>
      %390 = arith.minimumf %389, %388 : vector<32x2xf32>
      %391 = vector.broadcast %0 : vector<32x1xf32> to vector<32x2xf32>
      %392 = arith.mulf %390, %391 : vector<32x2xf32>
      %393 = vector.broadcast %4 : vector<32x1xf32> to vector<32x2xf32>
      %394 = vector.broadcast %380 : vector<1x2xf32> to vector<32x2xf32>
      %395 = arith.mulf %393, %394 : vector<32x2xf32>
      %396 = arith.addf %3, %395 : vector<32x2xf32>
      %397 = vector.broadcast %5 : vector<32x1xf32> to vector<32x2xf32>
      %398 = vector.broadcast %382 : vector<1x2xf32> to vector<32x2xf32>
      %399 = arith.mulf %397, %398 : vector<32x2xf32>
      %400 = arith.addf %396, %399 : vector<32x2xf32>
      %401 = arith.truncf %379 : vector<32x2xf32> to vector<32x2xbf16>
      %cst_115 = arith.constant dense<0.000000e+00> : vector<32x2xf32>
      %402 = tpu.matmul %6, %401, %cst_115 {dimension_numbers = #tpu.dot_dimension_numbers<[1], [0], [0], [1], [0, 0, 1, 1], [], []>} : vector<32x32xbf16>, vector<32x2xbf16>, vector<32x2xf32> -> vector<32x2xf32>
      %403 = arith.addf %400, %402 : vector<32x2xf32>
      %cst_116 = arith.constant 5.000000e-01 : f32
      %404 = vector.broadcast %cst_116 : f32 to vector<32x2xf32>
      %405 = arith.mulf %404, %403 : vector<32x2xf32>
      %406 = math.tanh %405 : vector<32x2xf32>
      %cst_117 = arith.constant 5.000000e-01 : f32
      %407 = vector.broadcast %cst_117 : f32 to vector<32x2xf32>
      %408 = arith.mulf %407, %406 : vector<32x2xf32>
      %cst_118 = arith.constant 5.000000e-01 : f32
      %409 = vector.broadcast %cst_118 : f32 to vector<32x2xf32>
      %410 = arith.addf %408, %409 : vector<32x2xf32>
      %411 = vector.extract_strided_slice %313 {offsets = [3, 0], sizes = [1, 2], strides = [1, 1]} : vector<8x2xf32> to vector<1x2xf32>
      %412 = vector.extract_strided_slice %315 {offsets = [3, 0], sizes = [1, 2], strides = [1, 1]} : vector<8x2xf32> to vector<1x2xf32>
      %413 = vector.extract_strided_slice %317 {offsets = [3, 0], sizes = [1, 2], strides = [1, 1]} : vector<8x2xf32> to vector<1x2xf32>
      %414 = vector.broadcast %412 : vector<1x2xf32> to vector<32x2xf32>
      %415 = arith.addf %414, %392 : vector<32x2xf32>
      %416 = vector.broadcast %2 : vector<32x1xf32> to vector<32x2xf32>
      %417 = arith.mulf %415, %416 : vector<32x2xf32>
      %cst_119 = arith.constant -1.000000e+00 : f32
      %cst_120 = arith.constant 1.000000e+00 : f32
      %418 = vector.broadcast %cst_119 : f32 to vector<32x2xf32>
      %419 = arith.maximumf %418, %417 : vector<32x2xf32>
      %420 = vector.broadcast %cst_120 : f32 to vector<32x2xf32>
      %421 = arith.minimumf %420, %419 : vector<32x2xf32>
      %422 = vector.broadcast %0 : vector<32x1xf32> to vector<32x2xf32>
      %423 = arith.mulf %421, %422 : vector<32x2xf32>
      %424 = vector.broadcast %4 : vector<32x1xf32> to vector<32x2xf32>
      %425 = vector.broadcast %411 : vector<1x2xf32> to vector<32x2xf32>
      %426 = arith.mulf %424, %425 : vector<32x2xf32>
      %427 = arith.addf %3, %426 : vector<32x2xf32>
      %428 = vector.broadcast %5 : vector<32x1xf32> to vector<32x2xf32>
      %429 = vector.broadcast %413 : vector<1x2xf32> to vector<32x2xf32>
      %430 = arith.mulf %428, %429 : vector<32x2xf32>
      %431 = arith.addf %427, %430 : vector<32x2xf32>
      %432 = arith.truncf %410 : vector<32x2xf32> to vector<32x2xbf16>
      %cst_121 = arith.constant dense<0.000000e+00> : vector<32x2xf32>
      %433 = tpu.matmul %6, %432, %cst_121 {dimension_numbers = #tpu.dot_dimension_numbers<[1], [0], [0], [1], [0, 0, 1, 1], [], []>} : vector<32x32xbf16>, vector<32x2xbf16>, vector<32x2xf32> -> vector<32x2xf32>
      %434 = arith.addf %431, %433 : vector<32x2xf32>
      %cst_122 = arith.constant 5.000000e-01 : f32
      %435 = vector.broadcast %cst_122 : f32 to vector<32x2xf32>
      %436 = arith.mulf %435, %434 : vector<32x2xf32>
      %437 = math.tanh %436 : vector<32x2xf32>
      %cst_123 = arith.constant 5.000000e-01 : f32
      %438 = vector.broadcast %cst_123 : f32 to vector<32x2xf32>
      %439 = arith.mulf %438, %437 : vector<32x2xf32>
      %cst_124 = arith.constant 5.000000e-01 : f32
      %440 = vector.broadcast %cst_124 : f32 to vector<32x2xf32>
      %441 = arith.addf %439, %440 : vector<32x2xf32>
      %442 = vector.extract_strided_slice %313 {offsets = [4, 0], sizes = [1, 2], strides = [1, 1]} : vector<8x2xf32> to vector<1x2xf32>
      %443 = vector.extract_strided_slice %315 {offsets = [4, 0], sizes = [1, 2], strides = [1, 1]} : vector<8x2xf32> to vector<1x2xf32>
      %444 = vector.extract_strided_slice %317 {offsets = [4, 0], sizes = [1, 2], strides = [1, 1]} : vector<8x2xf32> to vector<1x2xf32>
      %445 = vector.broadcast %443 : vector<1x2xf32> to vector<32x2xf32>
      %446 = arith.addf %445, %423 : vector<32x2xf32>
      %447 = vector.broadcast %2 : vector<32x1xf32> to vector<32x2xf32>
      %448 = arith.mulf %446, %447 : vector<32x2xf32>
      %cst_125 = arith.constant -1.000000e+00 : f32
      %cst_126 = arith.constant 1.000000e+00 : f32
      %449 = vector.broadcast %cst_125 : f32 to vector<32x2xf32>
      %450 = arith.maximumf %449, %448 : vector<32x2xf32>
      %451 = vector.broadcast %cst_126 : f32 to vector<32x2xf32>
      %452 = arith.minimumf %451, %450 : vector<32x2xf32>
      %453 = vector.broadcast %0 : vector<32x1xf32> to vector<32x2xf32>
      %454 = arith.mulf %452, %453 : vector<32x2xf32>
      %455 = vector.broadcast %4 : vector<32x1xf32> to vector<32x2xf32>
      %456 = vector.broadcast %442 : vector<1x2xf32> to vector<32x2xf32>
      %457 = arith.mulf %455, %456 : vector<32x2xf32>
      %458 = arith.addf %3, %457 : vector<32x2xf32>
      %459 = vector.broadcast %5 : vector<32x1xf32> to vector<32x2xf32>
      %460 = vector.broadcast %444 : vector<1x2xf32> to vector<32x2xf32>
      %461 = arith.mulf %459, %460 : vector<32x2xf32>
      %462 = arith.addf %458, %461 : vector<32x2xf32>
      %463 = arith.truncf %441 : vector<32x2xf32> to vector<32x2xbf16>
      %cst_127 = arith.constant dense<0.000000e+00> : vector<32x2xf32>
      %464 = tpu.matmul %6, %463, %cst_127 {dimension_numbers = #tpu.dot_dimension_numbers<[1], [0], [0], [1], [0, 0, 1, 1], [], []>} : vector<32x32xbf16>, vector<32x2xbf16>, vector<32x2xf32> -> vector<32x2xf32>
      %465 = arith.addf %462, %464 : vector<32x2xf32>
      %cst_128 = arith.constant 5.000000e-01 : f32
      %466 = vector.broadcast %cst_128 : f32 to vector<32x2xf32>
      %467 = arith.mulf %466, %465 : vector<32x2xf32>
      %468 = math.tanh %467 : vector<32x2xf32>
      %cst_129 = arith.constant 5.000000e-01 : f32
      %469 = vector.broadcast %cst_129 : f32 to vector<32x2xf32>
      %470 = arith.mulf %469, %468 : vector<32x2xf32>
      %cst_130 = arith.constant 5.000000e-01 : f32
      %471 = vector.broadcast %cst_130 : f32 to vector<32x2xf32>
      %472 = arith.addf %470, %471 : vector<32x2xf32>
      %473 = vector.extract_strided_slice %313 {offsets = [5, 0], sizes = [1, 2], strides = [1, 1]} : vector<8x2xf32> to vector<1x2xf32>
      %474 = vector.extract_strided_slice %315 {offsets = [5, 0], sizes = [1, 2], strides = [1, 1]} : vector<8x2xf32> to vector<1x2xf32>
      %475 = vector.extract_strided_slice %317 {offsets = [5, 0], sizes = [1, 2], strides = [1, 1]} : vector<8x2xf32> to vector<1x2xf32>
      %476 = vector.broadcast %474 : vector<1x2xf32> to vector<32x2xf32>
      %477 = arith.addf %476, %454 : vector<32x2xf32>
      %478 = vector.broadcast %2 : vector<32x1xf32> to vector<32x2xf32>
      %479 = arith.mulf %477, %478 : vector<32x2xf32>
      %cst_131 = arith.constant -1.000000e+00 : f32
      %cst_132 = arith.constant 1.000000e+00 : f32
      %480 = vector.broadcast %cst_131 : f32 to vector<32x2xf32>
      %481 = arith.maximumf %480, %479 : vector<32x2xf32>
      %482 = vector.broadcast %cst_132 : f32 to vector<32x2xf32>
      %483 = arith.minimumf %482, %481 : vector<32x2xf32>
      %484 = vector.broadcast %0 : vector<32x1xf32> to vector<32x2xf32>
      %485 = arith.mulf %483, %484 : vector<32x2xf32>
      %486 = vector.broadcast %4 : vector<32x1xf32> to vector<32x2xf32>
      %487 = vector.broadcast %473 : vector<1x2xf32> to vector<32x2xf32>
      %488 = arith.mulf %486, %487 : vector<32x2xf32>
      %489 = arith.addf %3, %488 : vector<32x2xf32>
      %490 = vector.broadcast %5 : vector<32x1xf32> to vector<32x2xf32>
      %491 = vector.broadcast %475 : vector<1x2xf32> to vector<32x2xf32>
      %492 = arith.mulf %490, %491 : vector<32x2xf32>
      %493 = arith.addf %489, %492 : vector<32x2xf32>
      %494 = arith.truncf %472 : vector<32x2xf32> to vector<32x2xbf16>
      %cst_133 = arith.constant dense<0.000000e+00> : vector<32x2xf32>
      %495 = tpu.matmul %6, %494, %cst_133 {dimension_numbers = #tpu.dot_dimension_numbers<[1], [0], [0], [1], [0, 0, 1, 1], [], []>} : vector<32x32xbf16>, vector<32x2xbf16>, vector<32x2xf32> -> vector<32x2xf32>
      %496 = arith.addf %493, %495 : vector<32x2xf32>
      %cst_134 = arith.constant 5.000000e-01 : f32
      %497 = vector.broadcast %cst_134 : f32 to vector<32x2xf32>
      %498 = arith.mulf %497, %496 : vector<32x2xf32>
      %499 = math.tanh %498 : vector<32x2xf32>
      %cst_135 = arith.constant 5.000000e-01 : f32
      %500 = vector.broadcast %cst_135 : f32 to vector<32x2xf32>
      %501 = arith.mulf %500, %499 : vector<32x2xf32>
      %cst_136 = arith.constant 5.000000e-01 : f32
      %502 = vector.broadcast %cst_136 : f32 to vector<32x2xf32>
      %503 = arith.addf %501, %502 : vector<32x2xf32>
      %504 = vector.extract_strided_slice %313 {offsets = [6, 0], sizes = [1, 2], strides = [1, 1]} : vector<8x2xf32> to vector<1x2xf32>
      %505 = vector.extract_strided_slice %315 {offsets = [6, 0], sizes = [1, 2], strides = [1, 1]} : vector<8x2xf32> to vector<1x2xf32>
      %506 = vector.extract_strided_slice %317 {offsets = [6, 0], sizes = [1, 2], strides = [1, 1]} : vector<8x2xf32> to vector<1x2xf32>
      %507 = vector.broadcast %505 : vector<1x2xf32> to vector<32x2xf32>
      %508 = arith.addf %507, %485 : vector<32x2xf32>
      %509 = vector.broadcast %2 : vector<32x1xf32> to vector<32x2xf32>
      %510 = arith.mulf %508, %509 : vector<32x2xf32>
      %cst_137 = arith.constant -1.000000e+00 : f32
      %cst_138 = arith.constant 1.000000e+00 : f32
      %511 = vector.broadcast %cst_137 : f32 to vector<32x2xf32>
      %512 = arith.maximumf %511, %510 : vector<32x2xf32>
      %513 = vector.broadcast %cst_138 : f32 to vector<32x2xf32>
      %514 = arith.minimumf %513, %512 : vector<32x2xf32>
      %515 = vector.broadcast %0 : vector<32x1xf32> to vector<32x2xf32>
      %516 = arith.mulf %514, %515 : vector<32x2xf32>
      %517 = vector.broadcast %4 : vector<32x1xf32> to vector<32x2xf32>
      %518 = vector.broadcast %504 : vector<1x2xf32> to vector<32x2xf32>
      %519 = arith.mulf %517, %518 : vector<32x2xf32>
      %520 = arith.addf %3, %519 : vector<32x2xf32>
      %521 = vector.broadcast %5 : vector<32x1xf32> to vector<32x2xf32>
      %522 = vector.broadcast %506 : vector<1x2xf32> to vector<32x2xf32>
      %523 = arith.mulf %521, %522 : vector<32x2xf32>
      %524 = arith.addf %520, %523 : vector<32x2xf32>
      %525 = arith.truncf %503 : vector<32x2xf32> to vector<32x2xbf16>
      %cst_139 = arith.constant dense<0.000000e+00> : vector<32x2xf32>
      %526 = tpu.matmul %6, %525, %cst_139 {dimension_numbers = #tpu.dot_dimension_numbers<[1], [0], [0], [1], [0, 0, 1, 1], [], []>} : vector<32x32xbf16>, vector<32x2xbf16>, vector<32x2xf32> -> vector<32x2xf32>
      %527 = arith.addf %524, %526 : vector<32x2xf32>
      %cst_140 = arith.constant 5.000000e-01 : f32
      %528 = vector.broadcast %cst_140 : f32 to vector<32x2xf32>
      %529 = arith.mulf %528, %527 : vector<32x2xf32>
      %530 = math.tanh %529 : vector<32x2xf32>
      %cst_141 = arith.constant 5.000000e-01 : f32
      %531 = vector.broadcast %cst_141 : f32 to vector<32x2xf32>
      %532 = arith.mulf %531, %530 : vector<32x2xf32>
      %cst_142 = arith.constant 5.000000e-01 : f32
      %533 = vector.broadcast %cst_142 : f32 to vector<32x2xf32>
      %534 = arith.addf %532, %533 : vector<32x2xf32>
      %535 = vector.extract_strided_slice %313 {offsets = [7, 0], sizes = [1, 2], strides = [1, 1]} : vector<8x2xf32> to vector<1x2xf32>
      %536 = vector.extract_strided_slice %315 {offsets = [7, 0], sizes = [1, 2], strides = [1, 1]} : vector<8x2xf32> to vector<1x2xf32>
      %537 = vector.extract_strided_slice %317 {offsets = [7, 0], sizes = [1, 2], strides = [1, 1]} : vector<8x2xf32> to vector<1x2xf32>
      %538 = vector.broadcast %536 : vector<1x2xf32> to vector<32x2xf32>
      %539 = arith.addf %538, %516 : vector<32x2xf32>
      %540 = vector.broadcast %2 : vector<32x1xf32> to vector<32x2xf32>
      %541 = arith.mulf %539, %540 : vector<32x2xf32>
      %cst_143 = arith.constant -1.000000e+00 : f32
      %cst_144 = arith.constant 1.000000e+00 : f32
      %542 = vector.broadcast %cst_143 : f32 to vector<32x2xf32>
      %543 = arith.maximumf %542, %541 : vector<32x2xf32>
      %544 = vector.broadcast %cst_144 : f32 to vector<32x2xf32>
      %545 = arith.minimumf %544, %543 : vector<32x2xf32>
      %546 = vector.broadcast %0 : vector<32x1xf32> to vector<32x2xf32>
      %547 = arith.mulf %545, %546 : vector<32x2xf32>
      %548 = vector.broadcast %4 : vector<32x1xf32> to vector<32x2xf32>
      %549 = vector.broadcast %535 : vector<1x2xf32> to vector<32x2xf32>
      %550 = arith.mulf %548, %549 : vector<32x2xf32>
      %551 = arith.addf %3, %550 : vector<32x2xf32>
      %552 = vector.broadcast %5 : vector<32x1xf32> to vector<32x2xf32>
      %553 = vector.broadcast %537 : vector<1x2xf32> to vector<32x2xf32>
      %554 = arith.mulf %552, %553 : vector<32x2xf32>
      %555 = arith.addf %551, %554 : vector<32x2xf32>
      %556 = arith.truncf %534 : vector<32x2xf32> to vector<32x2xbf16>
      %cst_145 = arith.constant dense<0.000000e+00> : vector<32x2xf32>
      %557 = tpu.matmul %6, %556, %cst_145 {dimension_numbers = #tpu.dot_dimension_numbers<[1], [0], [0], [1], [0, 0, 1, 1], [], []>} : vector<32x32xbf16>, vector<32x2xbf16>, vector<32x2xf32> -> vector<32x2xf32>
      %558 = arith.addf %555, %557 : vector<32x2xf32>
      %cst_146 = arith.constant 5.000000e-01 : f32
      %559 = vector.broadcast %cst_146 : f32 to vector<32x2xf32>
      %560 = arith.mulf %559, %558 : vector<32x2xf32>
      %561 = math.tanh %560 : vector<32x2xf32>
      %cst_147 = arith.constant 5.000000e-01 : f32
      %562 = vector.broadcast %cst_147 : f32 to vector<32x2xf32>
      %563 = arith.mulf %562, %561 : vector<32x2xf32>
      %cst_148 = arith.constant 5.000000e-01 : f32
      %564 = vector.broadcast %cst_148 : f32 to vector<32x2xf32>
      %565 = arith.addf %563, %564 : vector<32x2xf32>
      scf.yield %547, %565 : vector<32x2xf32>, vector<32x2xf32>
    }
    %c3_i32_76 = arith.constant 3 : i32
    %c0_i32 = arith.constant 0 : i32
    %c8_i32 = arith.constant 8 : i32
    %281 = arith.addi %c0_i32, %c8_i32 : i32
    %c1_i32_77 = arith.constant 1 : i32
    %282:2 = scf.for %arg20 = %c0_i32 to %281 step %c1_i32_77 iter_args(%arg21 = %280#0, %arg22 = %280#1) -> (vector<32x2xf32>, vector<32x2xf32>)  : i32 {
      %c8_i32_97 = arith.constant 8 : i32
      %310 = arith.muli %arg20, %c8_i32_97 : i32
      %c32_i32 = arith.constant 32 : i32
      %311 = arith.addi %c32_i32, %310 : i32
      %312 = tpu.assume_multiple %311, 8 : i32
      %c8_i32_98 = arith.constant 8 : i32
      %313 = arith.muli %arg20, %c8_i32_98 : i32
      %314 = tpu.assume_multiple %313, 8 : i32
      %315 = arith.index_cast %312 : i32 to index
      %c0_99 = arith.constant 0 : index
      %316 = vector.load %arg1[%315, %c0_99] : memref<96x2xf32, #tpu.memory_space<vmem>>, vector<8x2xf32>
      %317 = arith.index_cast %312 : i32 to index
      %c0_100 = arith.constant 0 : index
      %318 = vector.load %arg2[%317, %c0_100] : memref<96x2xf32, #tpu.memory_space<vmem>>, vector<8x2xf32>
      %319 = arith.index_cast %312 : i32 to index
      %c0_101 = arith.constant 0 : index
      %320 = vector.load %arg3[%319, %c0_101] : memref<96x2xf32, #tpu.memory_space<vmem>>, vector<8x2xf32>
      %321 = vector.extract_strided_slice %316 {offsets = [0, 0], sizes = [1, 2], strides = [1, 1]} : vector<8x2xf32> to vector<1x2xf32>
      %322 = vector.extract_strided_slice %318 {offsets = [0, 0], sizes = [1, 2], strides = [1, 1]} : vector<8x2xf32> to vector<1x2xf32>
      %323 = vector.extract_strided_slice %320 {offsets = [0, 0], sizes = [1, 2], strides = [1, 1]} : vector<8x2xf32> to vector<1x2xf32>
      %324 = vector.broadcast %322 : vector<1x2xf32> to vector<32x2xf32>
      %325 = arith.addf %324, %arg21 : vector<32x2xf32>
      %326 = vector.broadcast %2 : vector<32x1xf32> to vector<32x2xf32>
      %327 = arith.mulf %325, %326 : vector<32x2xf32>
      %cst_102 = arith.constant -1.000000e+00 : f32
      %cst_103 = arith.constant 1.000000e+00 : f32
      %328 = vector.broadcast %cst_102 : f32 to vector<32x2xf32>
      %329 = arith.maximumf %328, %327 : vector<32x2xf32>
      %330 = vector.broadcast %cst_103 : f32 to vector<32x2xf32>
      %331 = arith.minimumf %330, %329 : vector<32x2xf32>
      %332 = vector.broadcast %0 : vector<32x1xf32> to vector<32x2xf32>
      %333 = arith.mulf %331, %332 : vector<32x2xf32>
      %334 = vector.broadcast %4 : vector<32x1xf32> to vector<32x2xf32>
      %335 = vector.broadcast %321 : vector<1x2xf32> to vector<32x2xf32>
      %336 = arith.mulf %334, %335 : vector<32x2xf32>
      %337 = arith.addf %3, %336 : vector<32x2xf32>
      %338 = vector.broadcast %5 : vector<32x1xf32> to vector<32x2xf32>
      %339 = vector.broadcast %323 : vector<1x2xf32> to vector<32x2xf32>
      %340 = arith.mulf %338, %339 : vector<32x2xf32>
      %341 = arith.addf %337, %340 : vector<32x2xf32>
      %342 = arith.truncf %arg22 : vector<32x2xf32> to vector<32x2xbf16>
      %cst_104 = arith.constant dense<0.000000e+00> : vector<32x2xf32>
      %343 = tpu.matmul %6, %342, %cst_104 {dimension_numbers = #tpu.dot_dimension_numbers<[1], [0], [0], [1], [0, 0, 1, 1], [], []>} : vector<32x32xbf16>, vector<32x2xbf16>, vector<32x2xf32> -> vector<32x2xf32>
      %344 = arith.addf %341, %343 : vector<32x2xf32>
      %cst_105 = arith.constant 5.000000e-01 : f32
      %345 = vector.broadcast %cst_105 : f32 to vector<32x2xf32>
      %346 = arith.mulf %345, %344 : vector<32x2xf32>
      %347 = math.tanh %346 : vector<32x2xf32>
      %cst_106 = arith.constant 5.000000e-01 : f32
      %348 = vector.broadcast %cst_106 : f32 to vector<32x2xf32>
      %349 = arith.mulf %348, %347 : vector<32x2xf32>
      %cst_107 = arith.constant 5.000000e-01 : f32
      %350 = vector.broadcast %cst_107 : f32 to vector<32x2xf32>
      %351 = arith.addf %349, %350 : vector<32x2xf32>
      %c0_108 = arith.constant 0 : index
      %c0_109 = arith.constant 0 : index
      %352 = vector.load %arg18[%c0_108, %c0_109] : memref<256x2xf32, #tpu.memory_space<vmem>>, vector<32x2xf32>
      tpu.vector_store %arg18[%c0_108, %c0_109], %333 {strides = array<i32>} : memref<256x2xf32, #tpu.memory_space<vmem>>, vector<32x2xf32>,
      %c0_110 = arith.constant 0 : index
      %c0_111 = arith.constant 0 : index
      %353 = vector.load %arg19[%c0_110, %c0_111] : memref<256x2xf32, #tpu.memory_space<vmem>>, vector<32x2xf32>
      tpu.vector_store %arg19[%c0_110, %c0_111], %351 {strides = array<i32>} : memref<256x2xf32, #tpu.memory_space<vmem>>, vector<32x2xf32>,
      %354 = vector.extract_strided_slice %316 {offsets = [1, 0], sizes = [1, 2], strides = [1, 1]} : vector<8x2xf32> to vector<1x2xf32>
      %355 = vector.extract_strided_slice %318 {offsets = [1, 0], sizes = [1, 2], strides = [1, 1]} : vector<8x2xf32> to vector<1x2xf32>
      %356 = vector.extract_strided_slice %320 {offsets = [1, 0], sizes = [1, 2], strides = [1, 1]} : vector<8x2xf32> to vector<1x2xf32>
      %357 = vector.broadcast %355 : vector<1x2xf32> to vector<32x2xf32>
      %358 = arith.addf %357, %333 : vector<32x2xf32>
      %359 = vector.broadcast %2 : vector<32x1xf32> to vector<32x2xf32>
      %360 = arith.mulf %358, %359 : vector<32x2xf32>
      %cst_112 = arith.constant -1.000000e+00 : f32
      %cst_113 = arith.constant 1.000000e+00 : f32
      %361 = vector.broadcast %cst_112 : f32 to vector<32x2xf32>
      %362 = arith.maximumf %361, %360 : vector<32x2xf32>
      %363 = vector.broadcast %cst_113 : f32 to vector<32x2xf32>
      %364 = arith.minimumf %363, %362 : vector<32x2xf32>
      %365 = vector.broadcast %0 : vector<32x1xf32> to vector<32x2xf32>
      %366 = arith.mulf %364, %365 : vector<32x2xf32>
      %367 = vector.broadcast %4 : vector<32x1xf32> to vector<32x2xf32>
      %368 = vector.broadcast %354 : vector<1x2xf32> to vector<32x2xf32>
      %369 = arith.mulf %367, %368 : vector<32x2xf32>
      %370 = arith.addf %3, %369 : vector<32x2xf32>
      %371 = vector.broadcast %5 : vector<32x1xf32> to vector<32x2xf32>
      %372 = vector.broadcast %356 : vector<1x2xf32> to vector<32x2xf32>
      %373 = arith.mulf %371, %372 : vector<32x2xf32>
      %374 = arith.addf %370, %373 : vector<32x2xf32>
      %375 = arith.truncf %351 : vector<32x2xf32> to vector<32x2xbf16>
      %cst_114 = arith.constant dense<0.000000e+00> : vector<32x2xf32>
      %376 = tpu.matmul %6, %375, %cst_114 {dimension_numbers = #tpu.dot_dimension_numbers<[1], [0], [0], [1], [0, 0, 1, 1], [], []>} : vector<32x32xbf16>, vector<32x2xbf16>, vector<32x2xf32> -> vector<32x2xf32>
      %377 = arith.addf %374, %376 : vector<32x2xf32>
      %cst_115 = arith.constant 5.000000e-01 : f32
      %378 = vector.broadcast %cst_115 : f32 to vector<32x2xf32>
      %379 = arith.mulf %378, %377 : vector<32x2xf32>
      %380 = math.tanh %379 : vector<32x2xf32>
      %cst_116 = arith.constant 5.000000e-01 : f32
      %381 = vector.broadcast %cst_116 : f32 to vector<32x2xf32>
      %382 = arith.mulf %381, %380 : vector<32x2xf32>
      %cst_117 = arith.constant 5.000000e-01 : f32
      %383 = vector.broadcast %cst_117 : f32 to vector<32x2xf32>
      %384 = arith.addf %382, %383 : vector<32x2xf32>
      %c32_118 = arith.constant 32 : index
      %c0_119 = arith.constant 0 : index
      %385 = vector.load %arg18[%c32_118, %c0_119] : memref<256x2xf32, #tpu.memory_space<vmem>>, vector<32x2xf32>
      tpu.vector_store %arg18[%c32_118, %c0_119], %366 {strides = array<i32>} : memref<256x2xf32, #tpu.memory_space<vmem>>, vector<32x2xf32>,
      %c32_120 = arith.constant 32 : index
      %c0_121 = arith.constant 0 : index
      %386 = vector.load %arg19[%c32_120, %c0_121] : memref<256x2xf32, #tpu.memory_space<vmem>>, vector<32x2xf32>
      tpu.vector_store %arg19[%c32_120, %c0_121], %384 {strides = array<i32>} : memref<256x2xf32, #tpu.memory_space<vmem>>, vector<32x2xf32>,
      %387 = vector.extract_strided_slice %316 {offsets = [2, 0], sizes = [1, 2], strides = [1, 1]} : vector<8x2xf32> to vector<1x2xf32>
      %388 = vector.extract_strided_slice %318 {offsets = [2, 0], sizes = [1, 2], strides = [1, 1]} : vector<8x2xf32> to vector<1x2xf32>
      %389 = vector.extract_strided_slice %320 {offsets = [2, 0], sizes = [1, 2], strides = [1, 1]} : vector<8x2xf32> to vector<1x2xf32>
      %390 = vector.broadcast %388 : vector<1x2xf32> to vector<32x2xf32>
      %391 = arith.addf %390, %366 : vector<32x2xf32>
      %392 = vector.broadcast %2 : vector<32x1xf32> to vector<32x2xf32>
      %393 = arith.mulf %391, %392 : vector<32x2xf32>
      %cst_122 = arith.constant -1.000000e+00 : f32
      %cst_123 = arith.constant 1.000000e+00 : f32
      %394 = vector.broadcast %cst_122 : f32 to vector<32x2xf32>
      %395 = arith.maximumf %394, %393 : vector<32x2xf32>
      %396 = vector.broadcast %cst_123 : f32 to vector<32x2xf32>
      %397 = arith.minimumf %396, %395 : vector<32x2xf32>
      %398 = vector.broadcast %0 : vector<32x1xf32> to vector<32x2xf32>
      %399 = arith.mulf %397, %398 : vector<32x2xf32>
      %400 = vector.broadcast %4 : vector<32x1xf32> to vector<32x2xf32>
      %401 = vector.broadcast %387 : vector<1x2xf32> to vector<32x2xf32>
      %402 = arith.mulf %400, %401 : vector<32x2xf32>
      %403 = arith.addf %3, %402 : vector<32x2xf32>
      %404 = vector.broadcast %5 : vector<32x1xf32> to vector<32x2xf32>
      %405 = vector.broadcast %389 : vector<1x2xf32> to vector<32x2xf32>
      %406 = arith.mulf %404, %405 : vector<32x2xf32>
      %407 = arith.addf %403, %406 : vector<32x2xf32>
      %408 = arith.truncf %384 : vector<32x2xf32> to vector<32x2xbf16>
      %cst_124 = arith.constant dense<0.000000e+00> : vector<32x2xf32>
      %409 = tpu.matmul %6, %408, %cst_124 {dimension_numbers = #tpu.dot_dimension_numbers<[1], [0], [0], [1], [0, 0, 1, 1], [], []>} : vector<32x32xbf16>, vector<32x2xbf16>, vector<32x2xf32> -> vector<32x2xf32>
      %410 = arith.addf %407, %409 : vector<32x2xf32>
      %cst_125 = arith.constant 5.000000e-01 : f32
      %411 = vector.broadcast %cst_125 : f32 to vector<32x2xf32>
      %412 = arith.mulf %411, %410 : vector<32x2xf32>
      %413 = math.tanh %412 : vector<32x2xf32>
      %cst_126 = arith.constant 5.000000e-01 : f32
      %414 = vector.broadcast %cst_126 : f32 to vector<32x2xf32>
      %415 = arith.mulf %414, %413 : vector<32x2xf32>
      %cst_127 = arith.constant 5.000000e-01 : f32
      %416 = vector.broadcast %cst_127 : f32 to vector<32x2xf32>
      %417 = arith.addf %415, %416 : vector<32x2xf32>
      %c64 = arith.constant 64 : index
      %c0_128 = arith.constant 0 : index
      %418 = vector.load %arg18[%c64, %c0_128] : memref<256x2xf32, #tpu.memory_space<vmem>>, vector<32x2xf32>
      tpu.vector_store %arg18[%c64, %c0_128], %399 {strides = array<i32>} : memref<256x2xf32, #tpu.memory_space<vmem>>, vector<32x2xf32>,
      %c64_129 = arith.constant 64 : index
      %c0_130 = arith.constant 0 : index
      %419 = vector.load %arg19[%c64_129, %c0_130] : memref<256x2xf32, #tpu.memory_space<vmem>>, vector<32x2xf32>
      tpu.vector_store %arg19[%c64_129, %c0_130], %417 {strides = array<i32>} : memref<256x2xf32, #tpu.memory_space<vmem>>, vector<32x2xf32>,
      %420 = vector.extract_strided_slice %316 {offsets = [3, 0], sizes = [1, 2], strides = [1, 1]} : vector<8x2xf32> to vector<1x2xf32>
      %421 = vector.extract_strided_slice %318 {offsets = [3, 0], sizes = [1, 2], strides = [1, 1]} : vector<8x2xf32> to vector<1x2xf32>
      %422 = vector.extract_strided_slice %320 {offsets = [3, 0], sizes = [1, 2], strides = [1, 1]} : vector<8x2xf32> to vector<1x2xf32>
      %423 = vector.broadcast %421 : vector<1x2xf32> to vector<32x2xf32>
      %424 = arith.addf %423, %399 : vector<32x2xf32>
      %425 = vector.broadcast %2 : vector<32x1xf32> to vector<32x2xf32>
      %426 = arith.mulf %424, %425 : vector<32x2xf32>
      %cst_131 = arith.constant -1.000000e+00 : f32
      %cst_132 = arith.constant 1.000000e+00 : f32
      %427 = vector.broadcast %cst_131 : f32 to vector<32x2xf32>
      %428 = arith.maximumf %427, %426 : vector<32x2xf32>
      %429 = vector.broadcast %cst_132 : f32 to vector<32x2xf32>
      %430 = arith.minimumf %429, %428 : vector<32x2xf32>
      %431 = vector.broadcast %0 : vector<32x1xf32> to vector<32x2xf32>
      %432 = arith.mulf %430, %431 : vector<32x2xf32>
      %433 = vector.broadcast %4 : vector<32x1xf32> to vector<32x2xf32>
      %434 = vector.broadcast %420 : vector<1x2xf32> to vector<32x2xf32>
      %435 = arith.mulf %433, %434 : vector<32x2xf32>
      %436 = arith.addf %3, %435 : vector<32x2xf32>
      %437 = vector.broadcast %5 : vector<32x1xf32> to vector<32x2xf32>
      %438 = vector.broadcast %422 : vector<1x2xf32> to vector<32x2xf32>
      %439 = arith.mulf %437, %438 : vector<32x2xf32>
      %440 = arith.addf %436, %439 : vector<32x2xf32>
      %441 = arith.truncf %417 : vector<32x2xf32> to vector<32x2xbf16>
      %cst_133 = arith.constant dense<0.000000e+00> : vector<32x2xf32>
      %442 = tpu.matmul %6, %441, %cst_133 {dimension_numbers = #tpu.dot_dimension_numbers<[1], [0], [0], [1], [0, 0, 1, 1], [], []>} : vector<32x32xbf16>, vector<32x2xbf16>, vector<32x2xf32> -> vector<32x2xf32>
      %443 = arith.addf %440, %442 : vector<32x2xf32>
      %cst_134 = arith.constant 5.000000e-01 : f32
      %444 = vector.broadcast %cst_134 : f32 to vector<32x2xf32>
      %445 = arith.mulf %444, %443 : vector<32x2xf32>
      %446 = math.tanh %445 : vector<32x2xf32>
      %cst_135 = arith.constant 5.000000e-01 : f32
      %447 = vector.broadcast %cst_135 : f32 to vector<32x2xf32>
      %448 = arith.mulf %447, %446 : vector<32x2xf32>
      %cst_136 = arith.constant 5.000000e-01 : f32
      %449 = vector.broadcast %cst_136 : f32 to vector<32x2xf32>
      %450 = arith.addf %448, %449 : vector<32x2xf32>
      %c96 = arith.constant 96 : index
      %c0_137 = arith.constant 0 : index
      %451 = vector.load %arg18[%c96, %c0_137] : memref<256x2xf32, #tpu.memory_space<vmem>>, vector<32x2xf32>
      tpu.vector_store %arg18[%c96, %c0_137], %432 {strides = array<i32>} : memref<256x2xf32, #tpu.memory_space<vmem>>, vector<32x2xf32>,
      %c96_138 = arith.constant 96 : index
      %c0_139 = arith.constant 0 : index
      %452 = vector.load %arg19[%c96_138, %c0_139] : memref<256x2xf32, #tpu.memory_space<vmem>>, vector<32x2xf32>
      tpu.vector_store %arg19[%c96_138, %c0_139], %450 {strides = array<i32>} : memref<256x2xf32, #tpu.memory_space<vmem>>, vector<32x2xf32>,
      %453 = vector.extract_strided_slice %316 {offsets = [4, 0], sizes = [1, 2], strides = [1, 1]} : vector<8x2xf32> to vector<1x2xf32>
      %454 = vector.extract_strided_slice %318 {offsets = [4, 0], sizes = [1, 2], strides = [1, 1]} : vector<8x2xf32> to vector<1x2xf32>
      %455 = vector.extract_strided_slice %320 {offsets = [4, 0], sizes = [1, 2], strides = [1, 1]} : vector<8x2xf32> to vector<1x2xf32>
      %456 = vector.broadcast %454 : vector<1x2xf32> to vector<32x2xf32>
      %457 = arith.addf %456, %432 : vector<32x2xf32>
      %458 = vector.broadcast %2 : vector<32x1xf32> to vector<32x2xf32>
      %459 = arith.mulf %457, %458 : vector<32x2xf32>
      %cst_140 = arith.constant -1.000000e+00 : f32
      %cst_141 = arith.constant 1.000000e+00 : f32
      %460 = vector.broadcast %cst_140 : f32 to vector<32x2xf32>
      %461 = arith.maximumf %460, %459 : vector<32x2xf32>
      %462 = vector.broadcast %cst_141 : f32 to vector<32x2xf32>
      %463 = arith.minimumf %462, %461 : vector<32x2xf32>
      %464 = vector.broadcast %0 : vector<32x1xf32> to vector<32x2xf32>
      %465 = arith.mulf %463, %464 : vector<32x2xf32>
      %466 = vector.broadcast %4 : vector<32x1xf32> to vector<32x2xf32>
      %467 = vector.broadcast %453 : vector<1x2xf32> to vector<32x2xf32>
      %468 = arith.mulf %466, %467 : vector<32x2xf32>
      %469 = arith.addf %3, %468 : vector<32x2xf32>
      %470 = vector.broadcast %5 : vector<32x1xf32> to vector<32x2xf32>
      %471 = vector.broadcast %455 : vector<1x2xf32> to vector<32x2xf32>
      %472 = arith.mulf %470, %471 : vector<32x2xf32>
      %473 = arith.addf %469, %472 : vector<32x2xf32>
      %474 = arith.truncf %450 : vector<32x2xf32> to vector<32x2xbf16>
      %cst_142 = arith.constant dense<0.000000e+00> : vector<32x2xf32>
      %475 = tpu.matmul %6, %474, %cst_142 {dimension_numbers = #tpu.dot_dimension_numbers<[1], [0], [0], [1], [0, 0, 1, 1], [], []>} : vector<32x32xbf16>, vector<32x2xbf16>, vector<32x2xf32> -> vector<32x2xf32>
      %476 = arith.addf %473, %475 : vector<32x2xf32>
      %cst_143 = arith.constant 5.000000e-01 : f32
      %477 = vector.broadcast %cst_143 : f32 to vector<32x2xf32>
      %478 = arith.mulf %477, %476 : vector<32x2xf32>
      %479 = math.tanh %478 : vector<32x2xf32>
      %cst_144 = arith.constant 5.000000e-01 : f32
      %480 = vector.broadcast %cst_144 : f32 to vector<32x2xf32>
      %481 = arith.mulf %480, %479 : vector<32x2xf32>
      %cst_145 = arith.constant 5.000000e-01 : f32
      %482 = vector.broadcast %cst_145 : f32 to vector<32x2xf32>
      %483 = arith.addf %481, %482 : vector<32x2xf32>
      %c128 = arith.constant 128 : index
      %c0_146 = arith.constant 0 : index
      %484 = vector.load %arg18[%c128, %c0_146] : memref<256x2xf32, #tpu.memory_space<vmem>>, vector<32x2xf32>
      tpu.vector_store %arg18[%c128, %c0_146], %465 {strides = array<i32>} : memref<256x2xf32, #tpu.memory_space<vmem>>, vector<32x2xf32>,
      %c128_147 = arith.constant 128 : index
      %c0_148 = arith.constant 0 : index
      %485 = vector.load %arg19[%c128_147, %c0_148] : memref<256x2xf32, #tpu.memory_space<vmem>>, vector<32x2xf32>
      tpu.vector_store %arg19[%c128_147, %c0_148], %483 {strides = array<i32>} : memref<256x2xf32, #tpu.memory_space<vmem>>, vector<32x2xf32>,
      %486 = vector.extract_strided_slice %316 {offsets = [5, 0], sizes = [1, 2], strides = [1, 1]} : vector<8x2xf32> to vector<1x2xf32>
      %487 = vector.extract_strided_slice %318 {offsets = [5, 0], sizes = [1, 2], strides = [1, 1]} : vector<8x2xf32> to vector<1x2xf32>
      %488 = vector.extract_strided_slice %320 {offsets = [5, 0], sizes = [1, 2], strides = [1, 1]} : vector<8x2xf32> to vector<1x2xf32>
      %489 = vector.broadcast %487 : vector<1x2xf32> to vector<32x2xf32>
      %490 = arith.addf %489, %465 : vector<32x2xf32>
      %491 = vector.broadcast %2 : vector<32x1xf32> to vector<32x2xf32>
      %492 = arith.mulf %490, %491 : vector<32x2xf32>
      %cst_149 = arith.constant -1.000000e+00 : f32
      %cst_150 = arith.constant 1.000000e+00 : f32
      %493 = vector.broadcast %cst_149 : f32 to vector<32x2xf32>
      %494 = arith.maximumf %493, %492 : vector<32x2xf32>
      %495 = vector.broadcast %cst_150 : f32 to vector<32x2xf32>
      %496 = arith.minimumf %495, %494 : vector<32x2xf32>
      %497 = vector.broadcast %0 : vector<32x1xf32> to vector<32x2xf32>
      %498 = arith.mulf %496, %497 : vector<32x2xf32>
      %499 = vector.broadcast %4 : vector<32x1xf32> to vector<32x2xf32>
      %500 = vector.broadcast %486 : vector<1x2xf32> to vector<32x2xf32>
      %501 = arith.mulf %499, %500 : vector<32x2xf32>
      %502 = arith.addf %3, %501 : vector<32x2xf32>
      %503 = vector.broadcast %5 : vector<32x1xf32> to vector<32x2xf32>
      %504 = vector.broadcast %488 : vector<1x2xf32> to vector<32x2xf32>
      %505 = arith.mulf %503, %504 : vector<32x2xf32>
      %506 = arith.addf %502, %505 : vector<32x2xf32>
      %507 = arith.truncf %483 : vector<32x2xf32> to vector<32x2xbf16>
      %cst_151 = arith.constant dense<0.000000e+00> : vector<32x2xf32>
      %508 = tpu.matmul %6, %507, %cst_151 {dimension_numbers = #tpu.dot_dimension_numbers<[1], [0], [0], [1], [0, 0, 1, 1], [], []>} : vector<32x32xbf16>, vector<32x2xbf16>, vector<32x2xf32> -> vector<32x2xf32>
      %509 = arith.addf %506, %508 : vector<32x2xf32>
      %cst_152 = arith.constant 5.000000e-01 : f32
      %510 = vector.broadcast %cst_152 : f32 to vector<32x2xf32>
      %511 = arith.mulf %510, %509 : vector<32x2xf32>
      %512 = math.tanh %511 : vector<32x2xf32>
      %cst_153 = arith.constant 5.000000e-01 : f32
      %513 = vector.broadcast %cst_153 : f32 to vector<32x2xf32>
      %514 = arith.mulf %513, %512 : vector<32x2xf32>
      %cst_154 = arith.constant 5.000000e-01 : f32
      %515 = vector.broadcast %cst_154 : f32 to vector<32x2xf32>
      %516 = arith.addf %514, %515 : vector<32x2xf32>
      %c160 = arith.constant 160 : index
      %c0_155 = arith.constant 0 : index
      %517 = vector.load %arg18[%c160, %c0_155] : memref<256x2xf32, #tpu.memory_space<vmem>>, vector<32x2xf32>
      tpu.vector_store %arg18[%c160, %c0_155], %498 {strides = array<i32>} : memref<256x2xf32, #tpu.memory_space<vmem>>, vector<32x2xf32>,
      %c160_156 = arith.constant 160 : index
      %c0_157 = arith.constant 0 : index
      %518 = vector.load %arg19[%c160_156, %c0_157] : memref<256x2xf32, #tpu.memory_space<vmem>>, vector<32x2xf32>
      tpu.vector_store %arg19[%c160_156, %c0_157], %516 {strides = array<i32>} : memref<256x2xf32, #tpu.memory_space<vmem>>, vector<32x2xf32>,
      %519 = vector.extract_strided_slice %316 {offsets = [6, 0], sizes = [1, 2], strides = [1, 1]} : vector<8x2xf32> to vector<1x2xf32>
      %520 = vector.extract_strided_slice %318 {offsets = [6, 0], sizes = [1, 2], strides = [1, 1]} : vector<8x2xf32> to vector<1x2xf32>
      %521 = vector.extract_strided_slice %320 {offsets = [6, 0], sizes = [1, 2], strides = [1, 1]} : vector<8x2xf32> to vector<1x2xf32>
      %522 = vector.broadcast %520 : vector<1x2xf32> to vector<32x2xf32>
      %523 = arith.addf %522, %498 : vector<32x2xf32>
      %524 = vector.broadcast %2 : vector<32x1xf32> to vector<32x2xf32>
      %525 = arith.mulf %523, %524 : vector<32x2xf32>
      %cst_158 = arith.constant -1.000000e+00 : f32
      %cst_159 = arith.constant 1.000000e+00 : f32
      %526 = vector.broadcast %cst_158 : f32 to vector<32x2xf32>
      %527 = arith.maximumf %526, %525 : vector<32x2xf32>
      %528 = vector.broadcast %cst_159 : f32 to vector<32x2xf32>
      %529 = arith.minimumf %528, %527 : vector<32x2xf32>
      %530 = vector.broadcast %0 : vector<32x1xf32> to vector<32x2xf32>
      %531 = arith.mulf %529, %530 : vector<32x2xf32>
      %532 = vector.broadcast %4 : vector<32x1xf32> to vector<32x2xf32>
      %533 = vector.broadcast %519 : vector<1x2xf32> to vector<32x2xf32>
      %534 = arith.mulf %532, %533 : vector<32x2xf32>
      %535 = arith.addf %3, %534 : vector<32x2xf32>
      %536 = vector.broadcast %5 : vector<32x1xf32> to vector<32x2xf32>
      %537 = vector.broadcast %521 : vector<1x2xf32> to vector<32x2xf32>
      %538 = arith.mulf %536, %537 : vector<32x2xf32>
      %539 = arith.addf %535, %538 : vector<32x2xf32>
      %540 = arith.truncf %516 : vector<32x2xf32> to vector<32x2xbf16>
      %cst_160 = arith.constant dense<0.000000e+00> : vector<32x2xf32>
      %541 = tpu.matmul %6, %540, %cst_160 {dimension_numbers = #tpu.dot_dimension_numbers<[1], [0], [0], [1], [0, 0, 1, 1], [], []>} : vector<32x32xbf16>, vector<32x2xbf16>, vector<32x2xf32> -> vector<32x2xf32>
      %542 = arith.addf %539, %541 : vector<32x2xf32>
      %cst_161 = arith.constant 5.000000e-01 : f32
      %543 = vector.broadcast %cst_161 : f32 to vector<32x2xf32>
      %544 = arith.mulf %543, %542 : vector<32x2xf32>
      %545 = math.tanh %544 : vector<32x2xf32>
      %cst_162 = arith.constant 5.000000e-01 : f32
      %546 = vector.broadcast %cst_162 : f32 to vector<32x2xf32>
      %547 = arith.mulf %546, %545 : vector<32x2xf32>
      %cst_163 = arith.constant 5.000000e-01 : f32
      %548 = vector.broadcast %cst_163 : f32 to vector<32x2xf32>
      %549 = arith.addf %547, %548 : vector<32x2xf32>
      %c192 = arith.constant 192 : index
      %c0_164 = arith.constant 0 : index
      %550 = vector.load %arg18[%c192, %c0_164] : memref<256x2xf32, #tpu.memory_space<vmem>>, vector<32x2xf32>
      tpu.vector_store %arg18[%c192, %c0_164], %531 {strides = array<i32>} : memref<256x2xf32, #tpu.memory_space<vmem>>, vector<32x2xf32>,
      %c192_165 = arith.constant 192 : index
      %c0_166 = arith.constant 0 : index
      %551 = vector.load %arg19[%c192_165, %c0_166] : memref<256x2xf32, #tpu.memory_space<vmem>>, vector<32x2xf32>
      tpu.vector_store %arg19[%c192_165, %c0_166], %549 {strides = array<i32>} : memref<256x2xf32, #tpu.memory_space<vmem>>, vector<32x2xf32>,
      %552 = vector.extract_strided_slice %316 {offsets = [7, 0], sizes = [1, 2], strides = [1, 1]} : vector<8x2xf32> to vector<1x2xf32>
      %553 = vector.extract_strided_slice %318 {offsets = [7, 0], sizes = [1, 2], strides = [1, 1]} : vector<8x2xf32> to vector<1x2xf32>
      %554 = vector.extract_strided_slice %320 {offsets = [7, 0], sizes = [1, 2], strides = [1, 1]} : vector<8x2xf32> to vector<1x2xf32>
      %555 = vector.broadcast %553 : vector<1x2xf32> to vector<32x2xf32>
      %556 = arith.addf %555, %531 : vector<32x2xf32>
      %557 = vector.broadcast %2 : vector<32x1xf32> to vector<32x2xf32>
      %558 = arith.mulf %556, %557 : vector<32x2xf32>
      %cst_167 = arith.constant -1.000000e+00 : f32
      %cst_168 = arith.constant 1.000000e+00 : f32
      %559 = vector.broadcast %cst_167 : f32 to vector<32x2xf32>
      %560 = arith.maximumf %559, %558 : vector<32x2xf32>
      %561 = vector.broadcast %cst_168 : f32 to vector<32x2xf32>
      %562 = arith.minimumf %561, %560 : vector<32x2xf32>
      %563 = vector.broadcast %0 : vector<32x1xf32> to vector<32x2xf32>
      %564 = arith.mulf %562, %563 : vector<32x2xf32>
      %565 = vector.broadcast %4 : vector<32x1xf32> to vector<32x2xf32>
      %566 = vector.broadcast %552 : vector<1x2xf32> to vector<32x2xf32>
      %567 = arith.mulf %565, %566 : vector<32x2xf32>
      %568 = arith.addf %3, %567 : vector<32x2xf32>
      %569 = vector.broadcast %5 : vector<32x1xf32> to vector<32x2xf32>
      %570 = vector.broadcast %554 : vector<1x2xf32> to vector<32x2xf32>
      %571 = arith.mulf %569, %570 : vector<32x2xf32>
      %572 = arith.addf %568, %571 : vector<32x2xf32>
      %573 = arith.truncf %549 : vector<32x2xf32> to vector<32x2xbf16>
      %cst_169 = arith.constant dense<0.000000e+00> : vector<32x2xf32>
      %574 = tpu.matmul %6, %573, %cst_169 {dimension_numbers = #tpu.dot_dimension_numbers<[1], [0], [0], [1], [0, 0, 1, 1], [], []>} : vector<32x32xbf16>, vector<32x2xbf16>, vector<32x2xf32> -> vector<32x2xf32>
      %575 = arith.addf %572, %574 : vector<32x2xf32>
      %cst_170 = arith.constant 5.000000e-01 : f32
      %576 = vector.broadcast %cst_170 : f32 to vector<32x2xf32>
      %577 = arith.mulf %576, %575 : vector<32x2xf32>
      %578 = math.tanh %577 : vector<32x2xf32>
      %cst_171 = arith.constant 5.000000e-01 : f32
      %579 = vector.broadcast %cst_171 : f32 to vector<32x2xf32>
      %580 = arith.mulf %579, %578 : vector<32x2xf32>
      %cst_172 = arith.constant 5.000000e-01 : f32
      %581 = vector.broadcast %cst_172 : f32 to vector<32x2xf32>
      %582 = arith.addf %580, %581 : vector<32x2xf32>
      %c224 = arith.constant 224 : index
      %c0_173 = arith.constant 0 : index
      %583 = vector.load %arg18[%c224, %c0_173] : memref<256x2xf32, #tpu.memory_space<vmem>>, vector<32x2xf32>
      tpu.vector_store %arg18[%c224, %c0_173], %564 {strides = array<i32>} : memref<256x2xf32, #tpu.memory_space<vmem>>, vector<32x2xf32>,
      %c224_174 = arith.constant 224 : index
      %c0_175 = arith.constant 0 : index
      %584 = vector.load %arg19[%c224_174, %c0_175] : memref<256x2xf32, #tpu.memory_space<vmem>>, vector<32x2xf32>
      tpu.vector_store %arg19[%c224_174, %c0_175], %582 {strides = array<i32>} : memref<256x2xf32, #tpu.memory_space<vmem>>, vector<32x2xf32>,
      %c0_176 = arith.constant 0 : index
      %c0_177 = arith.constant 0 : index
      %585 = vector.load %arg18[%c0_176, %c0_177] : memref<256x2xf32, #tpu.memory_space<vmem>>, vector<256x2xf32>
      %cst_178 = arith.constant dense<0.000000e+00> : vector<8x2xf32>
      %586 = tpu.matmul %8, %585, %cst_178 {dimension_numbers = #tpu.dot_dimension_numbers<[1], [0], [0], [1], [0, 0, 1, 1], [], []>} : vector<8x256xf32>, vector<256x2xf32>, vector<8x2xf32> -> vector<8x2xf32>
      %c0_179 = arith.constant 0 : index
      %c0_180 = arith.constant 0 : index
      %587 = vector.load %arg19[%c0_179, %c0_180] : memref<256x2xf32, #tpu.memory_space<vmem>>, vector<256x2xf32>
      %cst_181 = arith.constant dense<0.000000e+00> : vector<8x2xf32>
      %588 = tpu.matmul %9, %587, %cst_181 {dimension_numbers = #tpu.dot_dimension_numbers<[1], [0], [0], [1], [0, 0, 1, 1], [], []>} : vector<8x256xf32>, vector<256x2xf32>, vector<8x2xf32> -> vector<8x2xf32>
      %589 = arith.addf %586, %588 : vector<8x2xf32>
      %590 = vector.broadcast %13 : vector<1x2xf32> to vector<8x2xf32>
      %591 = arith.addf %589, %590 : vector<8x2xf32>
      %592 = arith.index_cast %314 : i32 to index
      %c0_182 = arith.constant 0 : index
      %593 = vector.load %arg17[%592, %c0_182] : memref<64x2xf32, #tpu.memory_space<vmem>>, vector<8x2xf32>
      tpu.vector_store %arg17[%592, %c0_182], %591 {strides = array<i32>} : memref<64x2xf32, #tpu.memory_space<vmem>>, vector<8x2xf32>,
      scf.yield %564, %582 : vector<32x2xf32>, vector<32x2xf32>
    }
    %c8_i32_78 = arith.constant 8 : i32
    %c0_79 = arith.constant 0 : index
    %c0_80 = arith.constant 0 : index
    %283 = vector.load %arg17[%c0_79, %c0_80] : memref<64x2xf32, #tpu.memory_space<vmem>>, vector<64x2xf32>
    %cst_81 = arith.constant 7.61060381 : f32
    %284 = vector.broadcast %cst_81 : f32 to vector<64x2xf32>
    %285 = arith.mulf %283, %284 : vector<64x2xf32>
    %cst_82 = arith.constant 4.023000e-02 : f32
    %286 = vector.broadcast %cst_82 : f32 to vector<64x2xf32>
    %287 = arith.addf %285, %286 : vector<64x2xf32>
    %c32 = arith.constant 32 : index
    %c0_83 = arith.constant 0 : index
    %288 = vector.load %arg1[%c32, %c0_83] : memref<96x2xf32, #tpu.memory_space<vmem>>, vector<64x2xf32>
    %cst_84 = arith.constant 0.0626231506 : f32
    %289 = vector.broadcast %cst_84 : f32 to vector<64x2xf32>
    %290 = arith.mulf %288, %289 : vector<64x2xf32>
    %cst_85 = arith.constant 1.72051202E-13 : f32
    %291 = vector.broadcast %cst_85 : f32 to vector<64x2xf32>
    %292 = arith.addf %290, %291 : vector<64x2xf32>
    %293 = vector.extract_strided_slice %292 {offsets = [1, 0], sizes = [63, 2], strides = [1, 1]} : vector<64x2xf32> to vector<63x2xf32>
    %294 = vector.extract_strided_slice %292 {offsets = [0, 0], sizes = [63, 2], strides = [1, 1]} : vector<64x2xf32> to vector<63x2xf32>
    %295 = arith.subf %293, %294 : vector<63x2xf32>
    %296 = vector.extract_strided_slice %287 {offsets = [1, 0], sizes = [63, 2], strides = [1, 1]} : vector<64x2xf32> to vector<63x2xf32>
    %297 = vector.extract_strided_slice %287 {offsets = [0, 0], sizes = [63, 2], strides = [1, 1]} : vector<64x2xf32> to vector<63x2xf32>
    %298 = arith.addf %296, %297 : vector<63x2xf32>
    %cst_86 = arith.constant 5.000000e-01 : f32
    %299 = vector.broadcast %cst_86 : f32 to vector<63x2xf32>
    %300 = arith.mulf %299, %298 : vector<63x2xf32>
    %301 = arith.mulf %295, %300 : vector<63x2xf32>
    %cst_87 = arith.constant dense<0.000000e+00> : vector<2xf32>
    %302 = vector.multi_reduction <add>, %301, %cst_87 [0] : vector<63x2xf32> to vector<2xf32>
    %303 = vector.shape_cast %302 : vector<2xf32> to vector<1x2xf32>
    %c0_88 = arith.constant 0 : index
    %c0_89 = arith.constant 0 : index
    %304 = vector.load %arg7[%c0_88, %c0_89] : memref<1x2xf32, #tpu.memory_space<vmem>>, vector<1x2xf32>
    %305 = arith.mulf %303, %304 : vector<1x2xf32>
    %c0_90 = arith.constant 0 : index
    %c0_91 = arith.constant 0 : index
    %306 = vector.load %arg15[%c0_90, %c0_91] : memref<1x2xf32, #tpu.memory_space<vmem>>, vector<1x2xf32>
    tpu.vector_store %arg15[%c0_90, %c0_91], %305 {strides = array<i32>} : memref<1x2xf32, #tpu.memory_space<vmem>>, vector<1x2xf32>,
    %c0_92 = arith.constant 0 : index
    %c0_93 = arith.constant 0 : index
    %307 = vector.load %arg14[%c0_92, %c0_93] : memref<64x64xf32, #tpu.memory_space<vmem>>, vector<64x64xf32>
    %cst_94 = arith.constant dense<0.000000e+00> : vector<64x2xf32>
    %308 = tpu.matmul %307, %287, %cst_94 {dimension_numbers = #tpu.dot_dimension_numbers<[1], [0], [0], [1], [0, 0, 1, 1], [], []>} : vector<64x64xf32>, vector<64x2xf32>, vector<64x2xf32> -> vector<64x2xf32>
    %c0_95 = arith.constant 0 : index
    %c0_96 = arith.constant 0 : index
    %309 = vector.load %arg16[%c0_95, %c0_96] : memref<64x2xf32, #tpu.memory_space<vmem>>, vector<64x2xf32>
    tpu.vector_store %arg16[%c0_95, %c0_96], %308 {strides = array<i32>} : memref<64x2xf32, #tpu.memory_space<vmem>>, vector<64x2xf32>,
    return
  }
  func.func @transform_0(%arg0: i32) -> (i32, i32) {
    %c0_i32 = arith.constant 0 : i32
    %c0_i32_0 = arith.constant 0 : i32
    return %c0_i32, %arg0 : i32, i32
  }
  func.func @transform_1(%arg0: i32) -> (i32, i32) {
    %c0_i32 = arith.constant 0 : i32
    %c0_i32_0 = arith.constant 0 : i32
    return %c0_i32, %arg0 : i32, i32
  }
  func.func @transform_2(%arg0: i32) -> (i32, i32) {
    %c0_i32 = arith.constant 0 : i32
    %c0_i32_0 = arith.constant 0 : i32
    return %c0_i32, %arg0 : i32, i32
  }
  func.func @transform_3(%arg0: i32) -> (i32, i32) {
    %c0_i32 = arith.constant 0 : i32
    %c0_i32_0 = arith.constant 0 : i32
    return %c0_i32, %arg0 : i32, i32
  }
  func.func @transform_4(%arg0: i32) -> (i32, i32) {
    %c0_i32 = arith.constant 0 : i32
    %c0_i32_0 = arith.constant 0 : i32
    return %c0_i32, %arg0 : i32, i32
  }
  func.func @transform_5(%arg0: i32) -> (i32, i32) {
    %c0_i32 = arith.constant 0 : i32
    %c0_i32_0 = arith.constant 0 : i32
    return %c0_i32, %arg0 : i32, i32
  }
  func.func @transform_6(%arg0: i32) -> (i32, i32) {
    %c0_i32 = arith.constant 0 : i32
    %c0_i32_0 = arith.constant 0 : i32
    return %c0_i32, %arg0 : i32, i32
  }
  func.func @transform_7(%arg0: i32) -> (i32, i32) {
    %c0_i32 = arith.constant 0 : i32
    %c0_i32_0 = arith.constant 0 : i32
    %c0_i32_1 = arith.constant 0 : i32
    return %c0_i32, %c0_i32_0 : i32, i32
  }
  func.func @transform_8(%arg0: i32) -> (i32, i32) {
    %c0_i32 = arith.constant 0 : i32
    %c0_i32_0 = arith.constant 0 : i32
    %c0_i32_1 = arith.constant 0 : i32
    return %c0_i32, %c0_i32_0 : i32, i32
  }
  func.func @transform_9(%arg0: i32) -> (i32, i32) {
    %c0_i32 = arith.constant 0 : i32
    %c0_i32_0 = arith.constant 0 : i32
    %c0_i32_1 = arith.constant 0 : i32
    return %c0_i32, %c0_i32_0 : i32, i32
  }
  func.func @transform_10(%arg0: i32) -> (i32, i32) {
    %c0_i32 = arith.constant 0 : i32
    %c0_i32_0 = arith.constant 0 : i32
    %c0_i32_1 = arith.constant 0 : i32
    return %c0_i32, %c0_i32_0 : i32, i32
  }
  func.func @transform_11(%arg0: i32) -> (i32, i32) {
    %c0_i32 = arith.constant 0 : i32
    %c0_i32_0 = arith.constant 0 : i32
    %c0_i32_1 = arith.constant 0 : i32
    return %c0_i32, %c0_i32_0 : i32, i32
  }
  func.func @transform_12(%arg0: i32) -> (i32, i32) {
    %c0_i32 = arith.constant 0 : i32
    %c0_i32_0 = arith.constant 0 : i32
    %c0_i32_1 = arith.constant 0 : i32
    return %c0_i32, %c0_i32_0 : i32, i32
  }
  func.func @transform_13(%arg0: i32) -> (i32, i32) {
    %c0_i32 = arith.constant 0 : i32
    %c0_i32_0 = arith.constant 0 : i32
    %c0_i32_1 = arith.constant 0 : i32
    return %c0_i32, %c0_i32_0 : i32, i32
  }
  func.func @transform_14(%arg0: i32) -> (i32, i32) {
    %c0_i32 = arith.constant 0 : i32
    %c0_i32_0 = arith.constant 0 : i32
    return %c0_i32, %arg0 : i32, i32
  }
  func.func @transform_15(%arg0: i32) -> (i32, i32) {
    %c0_i32 = arith.constant 0 : i32
    %c0_i32_0 = arith.constant 0 : i32
    return %c0_i32, %arg0 : i32, i32
  }
}

</mosaic_0001>

<bundles_post_ra>
// kernel: _lambda_.1
= control target key start
LH: loop header
LB: loop body
LE: loop exit
PB: predicated region body
PF: predicated region fallthrough
CT: control target
= control target key end

     0   :  { %s6702_s0 = inlined_call_operand.vmem [shape: f32[96,2], index: 0, kind: input, shape index: {}]   ;;  %s6703_s1 = inlined_call_operand.vmem [shape: f32[96,2], index: 1, kind: input, shape index: {}]   ;;  %s6704_s2 = inlined_call_operand.vmem [shape: f32[96,2], index: 2, kind: input, shape index: {}]   ;;  %s6705_s3 = inlined_call_operand.vmem [shape: f32[32,2], index: 3, kind: input, shape index: {}]   ;;  %s6706_s4 = inlined_call_operand.vmem [shape: f32[32,2], index: 4, kind: input, shape index: {}]   ;;  %s6707_s5 = inlined_call_operand.vmem [shape: f32[1,2], index: 5, kind: input, shape index: {}]   ;;  %s6708_s6 = inlined_call_operand.vmem [shape: f32[1,2], index: 6, kind: input, shape index: {}]   ;;  %s6709_s7 = inlined_call_operand.vmem [shape: f32[32,1], index: 7, kind: input, shape index: {}]   ;;  %s6710_s8 = inlined_call_operand.vmem [shape: f32[32,2], index: 8, kind: input, shape index: {}]   ;;  %s6711_s9 = inlined_call_operand.vmem [shape: bf16[32,32], index: 9, kind: input, shape index: {}]   ;;  %s6712_s10 = inlined_call_operand.vmem [shape: f32[8,256], index: 10, kind: input, shape index: {}]   ;;  %s6713_s11 = inlined_call_operand.vmem [shape: f32[8,256], index: 11, kind: input, shape index: {}]   ;;  %s6714_s12 = inlined_call_operand.<no memory space> [shape: f32[1,1], index: 12, kind: input, shape index: {}]   ;;  %s6715_s13 = inlined_call_operand.vmem [shape: f32[64,64], index: 13, kind: input, shape index: {}]   ;;  %s6716_s14 = inlined_call_operand.hbm [shape: f32[1,2], index: 14, kind: output, shape index: {0}]   ;;  %s6717_s15 = inlined_call_operand.vmem [shape: f32[64,2], index: 15, kind: output, shape index: {1}]  }
   0x1   :  { %v21_v0 = vstv %s6714_s12 }
   0x2   :  { %22 = vst [vmem:[#allocation5] sm:$0x1] %v21_v0 }
   0x3   :  { %v55_v1 = vld [vmem:[%s6709_s7 + $0x10] sm:$0xff]  ;;  %v53_v2 = vld [vmem:[%s6709_s7] sm:$0xff]  ;;  %v5101_v3 = vmov 0   ;;  %v54_v4 = vld [vmem:[%s6709_s7 + $0x8] sm:$0xff] }
   0x4   :  { %4722 = vset.pattern.permute.xlu1 %v5101_v3  ;;  %4721 = vset.pattern.permute.xlu0 %v5101_v3  ;;  %v56_v5 = vld [vmem:[%s6709_s7 + $0x18] sm:$0xff]  ;;  %4729 = vrcp.f32 %v55_v1 }
   0x5   :  { %155 = vperm.xlu1 %4722, %v54_v4   ;;  %4731 = vrcp.f32 %v53_v2 }
   0x6   :  { %23 = vsyncpa [#allocation7], 0  ;;  %4733 = vrcp.f32 %v56_v5  ;;  %v5205_v10 = vld [vmem:[%s6712_s10 + $0x8] sm:$0xff]  ;;  %v69_v11 = vld [vmem:[%s6710_s8] sm:$0xff]  ;;  %v5102_v12 = vmov 0.0|0.0   ;;  %v88_v13 = vlaneseq  ;;  %vm5103_vm0 = vmmov 0  }
   0x7   :  { %4735 = vrcp.f32 %v54_v4  ;;  %6785 = vst [vmem:[#allocation9_spill] sm:$0xff] %v5205_v10  ;;  %4477 = vmatprep.subr.bf16.mxu0 %v5102_v12  ;;  %v70_v14 = vld [vmem:[%s6710_s8 + $0x8] sm:$0xff]  ;;  %v5104_v19 = vmov 0.0   ;;  %v5223_v20 = vld [vmem:[%s6704_s2] sm:$0xff]  ;;  %v6718_v21 = vmov 1   ;;  %vm93_vm1 = vcmask 1040384  }
   0x8   :  { %v89_v15 = vshrl.u32 %v88_v13, 7  ;;  %4254 = vmatprep.mubr.msk.f32.mxu0 %vm5103_vm0, %v5104_v19  ;;  %v5249_v28 = vld [vmem:[%s6713_s11] sm:$0xff]  ;;  %v5254_v29 = vld [vmem:[%s6713_s11 + $0x8] sm:$0xff]  ;;  %v107_v44 = vld [vmem:[%s6705_s3 + $0x18] sm:$0xff]  ;;  %vm172_vm2 = vcmask 261120  }
   0x9   :  { %6791 = vst [vmem:[#allocation15_spill] sm:$0xff] %v5249_v28  ;;  %6792 = vst [vmem:[#allocation16_spill] sm:$0xff] %v5254_v29  ;;  %v94_v32 = vsel %vm93_vm1, %v5249_v28, 0.0  ;;  %v95_v33 = vsel %vm93_vm1, %v5254_v29, 0.0  ;;  %v82_v38 = vld [vmem:[#allocation5] sm:$0x1] }
   0xa   :  { %v5214_v16 = vsub.s32 1, %v89_v15  ;;  %v5216_v17 = vsub.s32 2, %v89_v15  ;;  %v5218_v18 = vsub.s32 3, %v89_v15  ;;  %v5238_v25 = vsub.s32 4, %v89_v15  ;;  %v5282_v40 = vld [vmem:[%s6703_s1] sm:$0xff]  ;;  %v105_v45 = vld [vmem:[%s6705_s3 + $0x8] sm:$0xff] }
   0xb   :  { %v5244_v27 = vsub.s32 5, %v89_v15  ;;  %v5260_v31 = vsub.s32 6, %v89_v15  ;;  %v96_v35 = vadd.f32 %v95_v33, %v94_v32  ;;  %v5270_v36 = vsub.s32 7, %v89_v15  ;;  %v104_v43 = vld [vmem:[%s6705_s3] sm:$0xff]  ;;  %v106_v49 = vld [vmem:[%s6705_s3 + $0x10] sm:$0xff] }
   0xc   :  { %6786 = vst [vmem:[#allocation10_spill] sm:$0xff] %v5214_v16  ;;  %6787 = vst [vmem:[#allocation11_spill] sm:$0xff] %v5216_v17  ;;  %v5228_v22 = vrot.slane %v5223_v20, %v5214_v16  ;;  %v5232_v23 = vrot.slane %v5223_v20, %v5216_v17  ;;  %v5236_v24 = vrot.slane %v5223_v20, %v5218_v18  ;;  %v5277_v39 = vsub.s32 0, %v89_v15  ;;  %v5314_v58 = vld [vmem:[%s6702_s0] sm:$0xff] }
   0xd   :  { %6788 = vst [vmem:[#allocation12_spill] sm:$0xff] %v5218_v18  ;;  %6789 = vst [vmem:[#allocation13_spill] sm:$0xff] %v5238_v25  ;;  %v5242_v26 = vrot.slane %v5223_v20, %v5238_v25  ;;  %v5258_v30 = vrot.slane %v5223_v20, %v5244_v27  ;;  %v5268_v34 = vrot.slane %v5223_v20, %v5260_v31  ;;  %v5347_v32 = vld [vmem:[%s6706_s4] sm:$0xff] }
   0xe   :  { %v4730_v6 = vpop.eup %4729  ;;  %6790 = vst [vmem:[#allocation14_spill] sm:$0xff] %v5244_v27  ;;  %6793 = vst [vmem:[#allocation17_spill] sm:$0xff] %v5260_v31  ;;  %v5274_v37 = vrot.slane %v5223_v20, %v5270_v36  ;;  %v111_v42 = vrot.slane %v5282_v40, %v5277_v39  ;;  %v401_v59 = vrot.slane %v5282_v40, %v5214_v16 }
   0xf   :  { %v4732_v7 = vpop.eup %4731  ;;  %128 = vperm.xlu1 %4722, %v4730_v6   ;;  %6794 = vst [vmem:[#allocation18_spill] sm:$0xff] %v5270_v36  ;;  %v5330_v4 = vrot.slane %v5314_v58, %v5216_v17 }
  0x10   :  { %v4734_v8 = vpop.eup %4733  ;;  %118 = vperm.xlu0 %4721, %v4732_v7   ;;  %v112_v47 = vadd.f32 %v111_v42, %v104_v43  ;;  %v115_v50 = vadd.f32 %v111_v42, %v107_v44  ;;  %v113_v51 = vadd.f32 %v111_v42, %v105_v45  ;;  %v114_v54 = vadd.f32 %v111_v42, %v106_v49 }
  0x11   :  { %v4736_v9 = vpop.eup %4735  ;;  %v5336_v7 = vrot.slane %v5314_v58, %v5218_v18  ;;  %v5358_v43 = vrot.slane %v5314_v58, %v5238_v25 }
  0x13   :  { %133 = vperm.xlu1 %4722, %v4734_v8   ;;  %v5340_v8 = vrot.slane %v5282_v40, %v5216_v17 }
  0x14   :  { %123 = vperm.xlu0 %4721, %v4736_v9  }
  0x17   :  { %165 = vperm.xlu1 %4722, %v56_v5  }
  0x18   :  { %150 = vperm.xlu0 %4721, %v53_v2  }
  0x1b   :  { %254 = vperm.xlu1 %4722, %v69_v11  }
  0x1c   :  { %160 = vperm.xlu0 %4721, %v55_v1  }
  0x1f   :  { %259 = vperm.xlu1 %4722, %v70_v14  }
  0x23   :  { %4723 = vset.pattern.permute.xlu1 %v6718_v21 }
  0x24   :  { %285 = vperm.xlu1 %4723, %v69_v11  }
  0x28   :  { %289 = vperm.xlu1 %4723, %v70_v14  }
  0x2c   :  { %4724 = vset.pattern.permute.xlu1 %v5101_v3  ;;  %v5326_v3 = vrot.slane %v5314_v58, %v5214_v16 }
  0x3b   :  { %97 = vadd.xlane.f32.xlu0 %v96_v35 }
  0x51   :  { %85 = vperm.xlu0 %4721, %v82_v38  }
  0x55   :  { %4726 = vset.pattern.permute.xlu0 %v6718_v21 }
  0x84   :  { %v5284_v41 = vpop.permute.xlu1 %155 }
  0x85   :  { %6795 = vst [vmem:[#allocation19_spill] sm:$0xff] %v5284_v41 }
  0x8e   :  { %v5297_v46 = vpop.permute.xlu1 %128 }
  0x8f   :  { %v5299_v48 = vpop.permute.xlu0 %118  ;;  %v138_v0 = vmul.f32 %v5297_v46, %v114_v54 }
  0x90   :  { %v136_v53 = vmul.f32 %v5299_v48, %v112_v47 }
  0x91   :  { %v3898_v19 = vclamps-f32 %v138_v0, 1.0 }
  0x92   :  { %v5304_v52 = vpop.permute.xlu1 %133  ;;  %v3896_v62 = vclamps-f32 %v136_v53, 1.0 }
  0x93   :  { %6796 = vst [vmem:[#allocation20_spill] sm:$0xff] %v5304_v52  ;;  %v5307_v55 = vpop.permute.xlu0 %123  ;;  %v139_v56 = vmul.f32 %v5304_v52, %v115_v50 }
  0x94   :  { %v137_v57 = vmul.f32 %v5307_v55, %v113_v51 }
  0x95   :  { %v3899_v60 = vclamps-f32 %v139_v56, 1.0 }
  0x96   :  { %v5318_v61 = vpop.permute.xlu1 %165  ;;  %v3897_v63 = vclamps-f32 %v137_v57, 1.0 }
  0x97   :  { %6797 = vst [vmem:[#allocation21_spill] sm:$0xff] %v5318_v61  ;;  %v5321_v1 = vpop.permute.xlu0 %150  ;;  %v171_v2 = vmul.f32 %v3899_v60, %v5318_v61 }
  0x98   :  { %6798 = vst [vmem:[#allocation22_spill] sm:$0xff] %v5321_v1  ;;  %v168_v5 = vmul.f32 %v3896_v62, %v5321_v1  ;;  %v169_v6 = vmul.f32 %v3897_v63, %v5284_v41  ;;  %v5373_v63 = vld [vmem:[%s6706_s4 + $0x8] sm:$0xff] }
  0x99   :  { %v405_v9 = vadd.f32 %v401_v59, %v171_v2 }
  0x9a   :  { %v5342_v11 = vpop.permute.xlu1 %254  ;;  %v4478_v13 = vpack.c.bf16 %v169_v6, %v168_v5  ;;  %v402_v14 = vadd.f32 %v401_v59, %v168_v5  ;;  %v403_v15 = vadd.f32 %v401_v59, %v169_v6  ;;  %v5382_v6 = vrot.slane %v5314_v58, %v5244_v27 }
  0x9b   :  { %6799 = vst [vmem:[#allocation23_spill] sm:$0xff] %v5342_v11  ;;  %v5349_v33 = vpop.permute.xlu0 %160  ;;  %v409_v35 = vmul.f32 %v405_v9, %v5304_v52  ;;  %v426_v38 = vmul.f32 %v5326_v3, %v5342_v11  ;;  %v545_v42 = vmul.f32 %v5330_v4, %v5342_v11  ;;  %v664_v49 = vmul.f32 %v5336_v7, %v5342_v11 }
  0x9c   :  { %6800 = vst [vmem:[#allocation24_spill] sm:$0xff] %v5349_v33  ;;  %4479 = vmatpush3.bf16.msra.mxu0 %v4478_v13  ;;  %v406_v44 = vmul.f32 %v402_v14, %v5299_v48  ;;  %v407_v45 = vmul.f32 %v403_v15, %v5307_v55  ;;  %v170_v47 = vmul.f32 %v3898_v19, %v5349_v33  ;;  %v5390_v13 = vld [vmem:[%s6712_s10] sm:$0xff] }
  0x9d   :  { %4480 = vmatprep.subr.bf16.mxu0 %v5102_v12  ;;  %v3908_v50 = vclamps-f32 %v409_v35, 1.0  ;;  %v430_v51 = vadd.f32 %v426_v38, %v5347_v32  ;;  %v549_v53 = vadd.f32 %v545_v42, %v5347_v32  ;;  %6802 = vst [vmem:[#allocation26_spill] sm:$0xff] %v5390_v13  ;;  %v668_v14 = vadd.f32 %v664_v49, %v5347_v32 }
  0x9e   :  { %v3905_v54 = vclamps-f32 %v406_v44, 1.0  ;;  %v3906_v56 = vclamps-f32 %v407_v45, 1.0  ;;  %v5368_v57 = vpop.permute.xlu1 %259  ;;  %v4481_v60 = vpack.c.bf16 %v171_v2, %v170_v47  ;;  %v404_v62 = vadd.f32 %v401_v59, %v170_v47 }
  0x9f   :  { %6801 = vst [vmem:[#allocation25_spill] sm:$0xff] %v5368_v57  ;;  %v421_v0 = vmul.f32 %v3908_v50, %v5318_v61  ;;  %v427_v12 = vmul.f32 %v5326_v3, %v5368_v57  ;;  %v546_v5 = vmul.f32 %v5330_v4, %v5368_v57  ;;  %v639_v38 = vrot.slane %v5282_v40, %v5218_v18 }
  0xa0   :  { %v418_v2 = vmul.f32 %v3905_v54, %v5321_v1  ;;  %v419_v59 = vmul.f32 %v3906_v56, %v5284_v41  ;;  %4482 = vmatpush3.bf16.msra.mxu0 %v4481_v60  ;;  %v408_v9 = vmul.f32 %v404_v62, %v5297_v46  ;;  %v665_v47 = vmul.f32 %v5336_v7, %v5368_v57 }
  0xa1   :  { %v524_v15 = vadd.f32 %v5340_v8, %v421_v0  ;;  %v431_v19 = vadd.f32 %v427_v12, %v5373_v63  ;;  %v550_v35 = vadd.f32 %v546_v5, %v5373_v63  ;;  %v783_v54 = vmul.f32 %v5358_v43, %v5342_v11 }
  0xa2   :  { %v521_v42 = vadd.f32 %v5340_v8, %v418_v2  ;;  %v522_v44 = vadd.f32 %v5340_v8, %v419_v59  ;;  %v3907_v45 = vclamps-f32 %v408_v9, 1.0  ;;  %v784_v56 = vmul.f32 %v5358_v43, %v5368_v57 }
  0xa3   :  { %v528_v50 = vmul.f32 %v524_v15, %v5304_v52  ;;  %4255 = vmatmul.mubr.msk.f32.vlgmr.msra.gmra.mrb[0].mxu0 %vm172_vm2, %v5390_v13  ;;  %v5405_v49 = vpop.permute.xlu1 %285  ;;  %v902_v60 = vmul.f32 %v5382_v6, %v5342_v11  ;;  %v5418_v5 = vrot.slane %v5314_v58, %v5260_v31 }
  0xa4   :  { %6803 = vst [vmem:[#allocation27_spill] sm:$0xff] %v5405_v49  ;;  %v525_v62 = vmul.f32 %v521_v42, %v5299_v48  ;;  %v526_v0 = vmul.f32 %v522_v44, %v5307_v55  ;;  %v420_v12 = vmul.f32 %v3907_v45, %v5349_v33  ;;  %v438_v59 = vmul.f32 %v5228_v22, %v5405_v49 }
  0xa5   :  { %v3914_v2 = vclamps-f32 %v528_v50, 1.0  ;;  %v557_v9 = vmul.f32 %v5232_v23, %v5405_v49  ;;  %v676_v15 = vmul.f32 %v5236_v24, %v5405_v49  ;;  %v5429_v45 = vrot.slane %v5314_v58, %v5270_v36 }
  0xa6   :  { %v3911_v21 = vclamps-f32 %v525_v62, 1.0  ;;  %v3912_v42 = vclamps-f32 %v526_v0, 1.0  ;;  %v523_v44 = vadd.f32 %v5340_v8, %v420_v12  ;;  %v5434_v13 = vadd.f32 %v438_v59, %v430_v51 }
  0xa7   :  { %v540_v28 = vmul.f32 %v3914_v2, %v5318_v61  ;;  %v5432_v50 = vpop.permute.xlu1 %289  ;;  %v5436_v10 = vadd.f32 %v557_v9, %v549_v53  ;;  %v5438_v29 = vadd.f32 %v676_v15, %v668_v14  ;;  %v758_v0 = vrot.slane %v5282_v40, %v5238_v25 }
  0xa8   :  { %v537_v18 = vmul.f32 %v3911_v21, %v5321_v1  ;;  %v538_v62 = vmul.f32 %v3912_v42, %v5284_v41  ;;  %v527_v8 = vmul.f32 %v523_v44, %v5297_v46  ;;  %v439_v12 = vmul.f32 %v5228_v22, %v5432_v50 }
  0xa9   :  { %v558_v51 = vmul.f32 %v5232_v23, %v5432_v50  ;;  %v643_v2 = vadd.f32 %v639_v38, %v540_v28  ;;  %v669_v53 = vadd.f32 %v665_v47, %v5373_v63  ;;  %v5452_v21 = vrot.slane %v5282_v40, %v5244_v27 }
  0xaa   :  { %v3913_v14 = vclamps-f32 %v527_v8, 1.0  ;;  %v640_v59 = vadd.f32 %v639_v38, %v537_v18  ;;  %v641_v9 = vadd.f32 %v639_v38, %v538_v62  ;;  %v5454_v15 = vadd.f32 %v439_v12, %v431_v19 }
  0xab   :  { %v5456_v42 = vadd.f32 %v558_v51, %v550_v35  ;;  %v647_v44 = vmul.f32 %v643_v2, %v5304_v52  ;;  %v677_v25 = vmul.f32 %v5236_v24, %v5432_v50  ;;  %v787_v62 = vadd.f32 %v783_v54, %v5347_v32 }
  0xac   :  { %v539_v28 = vmul.f32 %v3913_v14, %v5349_v33  ;;  %v644_v47 = vmul.f32 %v640_v59, %v5299_v48  ;;  %v645_v18 = vmul.f32 %v641_v9, %v5307_v55  ;;  %v795_v19 = vmul.f32 %v5242_v26, %v5405_v49 }
  0xad   :  { %v3920_v8 = vclamps-f32 %v647_v44, 1.0  ;;  %v5465_v27 = vadd.f32 %v677_v25, %v669_v53  ;;  %v788_v35 = vadd.f32 %v784_v56, %v5373_v63  ;;  %v796_v14 = vmul.f32 %v5242_v26, %v5432_v50 }
  0xae   :  { %v642_v12 = vadd.f32 %v639_v38, %v539_v28  ;;  %v3917_v51 = vclamps-f32 %v644_v47, 1.0  ;;  %v3918_v2 = vclamps-f32 %v645_v18, 1.0  ;;  %v5473_v17 = vadd.f32 %v795_v19, %v787_v62 }
  0xaf   :  { %v659_v59 = vmul.f32 %v3920_v8, %v5318_v61  ;;  %v906_v54 = vadd.f32 %v902_v60, %v5347_v32  ;;  %v914_v25 = vmul.f32 %v5258_v30, %v5405_v49  ;;  %v5481_v56 = vadd.f32 %v796_v14, %v788_v35 }
  0xb0   :  { %v646_v53 = vmul.f32 %v642_v12, %v5297_v46  ;;  %v656_v9 = vmul.f32 %v3917_v51, %v5321_v1  ;;  %v657_v38 = vmul.f32 %v3918_v2, %v5284_v41  ;;  %v903_v47 = vmul.f32 %v5382_v6, %v5368_v57 }
  0xb1   :  { %6804 = vst [vmem:[#allocation28_spill] sm:$0xff] %v5481_v56  ;;  %v762_v44 = vadd.f32 %v758_v0, %v659_v59  ;;  %v5483_v28 = vadd.f32 %v914_v25, %v906_v54  ;;  %v915_v60 = vmul.f32 %v5258_v30, %v5432_v50  ;;  %v1021_v19 = vmul.f32 %v5418_v5, %v5342_v11 }
  0xb2   :  { %v3919_v18 = vclamps-f32 %v646_v53, 1.0  ;;  %v759_v62 = vadd.f32 %v758_v0, %v656_v9  ;;  %v760_v8 = vadd.f32 %v758_v0, %v657_v38  ;;  %v907_v35 = vadd.f32 %v903_v47, %v5373_v63 }
  0xb3   :  { %6805 = vst [vmem:[#allocation29_spill] sm:$0xff] %v5483_v28  ;;  %v766_v12 = vmul.f32 %v762_v44, %v5304_v52  ;;  %v1033_v51 = vmul.f32 %v5268_v34, %v5405_v49  ;;  %v1022_v2 = vmul.f32 %v5418_v5, %v5368_v57  ;;  %v1025_v25 = vadd.f32 %v1021_v19, %v5347_v32 }
  0xb4   :  { %v658_v14 = vmul.f32 %v3919_v18, %v5349_v33  ;;  %v763_v59 = vmul.f32 %v759_v62, %v5299_v48  ;;  %v764_v54 = vmul.f32 %v760_v8, %v5307_v55  ;;  %v5501_v9 = vadd.f32 %v915_v60, %v907_v35 }
  0xb5   :  { %v3926_v53 = vclamps-f32 %v766_v12, 1.0  ;;  %v1026_v38 = vadd.f32 %v1022_v2, %v5373_v63  ;;  %v1034_v44 = vmul.f32 %v5268_v34, %v5432_v50  ;;  %v5506_v56 = vadd.f32 %v1033_v51, %v1025_v25 }
  0xb6   :  { %v761_v47 = vadd.f32 %v758_v0, %v658_v14  ;;  %v3923_v16 = vclamps-f32 %v763_v59, 1.0  ;;  %v3924_v28 = vclamps-f32 %v764_v54, 1.0  ;;  %v1140_v8 = vmul.f32 %v5429_v45, %v5342_v11 }
  0xb7   :  { %v778_v18 = vmul.f32 %v3926_v53, %v5318_v61  ;;  %v5509_v62 = vadd.f32 %v1034_v44, %v1026_v38  ;;  %v1152_v60 = vmul.f32 %v5274_v37, %v5405_v49  ;;  %v1141_v35 = vmul.f32 %v5429_v45, %v5368_v57 }
  0xb8   :  { %v765_v19 = vmul.f32 %v761_v47, %v5297_v46  ;;  %v775_v12 = vmul.f32 %v3923_v16, %v5321_v1  ;;  %v776_v0 = vmul.f32 %v3924_v28, %v5284_v41  ;;  %v1144_v2 = vadd.f32 %v1140_v8, %v5347_v32 }
  0xb9   :  { %v881_v51 = vadd.f32 %v5452_v21, %v778_v18  ;;  %v1153_v14 = vmul.f32 %v5274_v37, %v5432_v50  ;;  %v1145_v53 = vadd.f32 %v1141_v35, %v5373_v63 }
  0xba   :  { %v3925_v59 = vclamps-f32 %v765_v19, 1.0  ;;  %v878_v54 = vadd.f32 %v5452_v21, %v775_v12  ;;  %v879_v25 = vadd.f32 %v5452_v21, %v776_v0  ;;  %v5528_v28 = vadd.f32 %v1152_v60, %v1144_v2 }
  0xbb   :  { %v885_v16 = vmul.f32 %v881_v51, %v5304_v52  ;;  %v5533_v18 = vadd.f32 %v1153_v14, %v1145_v53  ;;  %v996_v19 = vrot.slane %v5282_v40, %v5260_v31 }
  0xbc   :  { %v777_v38 = vmul.f32 %v3925_v59, %v5349_v33  ;;  %v882_v44 = vmul.f32 %v878_v54, %v5299_v48  ;;  %v883_v47 = vmul.f32 %v879_v25, %v5307_v55 }
  0xbd   :  { %v3932_v8 = vclamps-f32 %v885_v16, 1.0 }
  0xbe   :  { %v880_v12 = vadd.f32 %v5452_v21, %v777_v38  ;;  %v3929_v0 = vclamps-f32 %v882_v44, 1.0  ;;  %v3930_v35 = vclamps-f32 %v883_v47, 1.0  ;;  %v1115_v47 = vrot.slane %v5282_v40, %v5270_v36 }
  0xbf   :  { %v897_v51 = vmul.f32 %v3932_v8, %v5318_v61 }
  0xc0   :  { %v884_v60 = vmul.f32 %v880_v12, %v5297_v46  ;;  %v894_v2 = vmul.f32 %v3929_v0, %v5321_v1  ;;  %v895_v59 = vmul.f32 %v3930_v35, %v5284_v41 }
  0xc1   :  { %v1000_v54 = vadd.f32 %v996_v19, %v897_v51 }
  0xc2   :  { %v3931_v25 = vclamps-f32 %v884_v60, 1.0  ;;  %v997_v14 = vadd.f32 %v996_v19, %v894_v2  ;;  %v998_v53 = vadd.f32 %v996_v19, %v895_v59 }
  0xc3   :  { %v1004_v16 = vmul.f32 %v1000_v54, %v5304_v52 }
  0xc4   :  { %v896_v31 = vmul.f32 %v3931_v25, %v5349_v33  ;;  %v1001_v21 = vmul.f32 %v997_v14, %v5299_v48  ;;  %v1002_v38 = vmul.f32 %v998_v53, %v5307_v55 }
  0xc5   :  { %v3938_v44 = vclamps-f32 %v1004_v16, 1.0 }
  0xc6   :  { %v999_v8 = vadd.f32 %v996_v19, %v896_v31  ;;  %v3935_v12 = vclamps-f32 %v1001_v21, 1.0  ;;  %v3936_v0 = vclamps-f32 %v1002_v38, 1.0 }
  0xc7   :  { %v1016_v35 = vmul.f32 %v3938_v44, %v5318_v61 }
  0xc8   :  { %v1003_v51 = vmul.f32 %v999_v8, %v5297_v46  ;;  %v1013_v60 = vmul.f32 %v3935_v12, %v5321_v1  ;;  %v1014_v2 = vmul.f32 %v3936_v0, %v5284_v41  ;;  %v98_v54 = vpop.xlane.xlu0 %97 }
  0xc9   :  { %v1119_v59 = vadd.f32 %v1115_v47, %v1016_v35  ;;  %v77_v35 = vld [vmem:[%s6707_s5] sm:$0x1]  ;;  %4737 = vrcp.f32 %v98_v54 }
  0xca   :  { %v3937_v25 = vclamps-f32 %v1003_v51, 1.0  ;;  %v1116_v14 = vadd.f32 %v1115_v47, %v1013_v60  ;;  %v1117_v53 = vadd.f32 %v1115_v47, %v1014_v2 }
  0xcb   :  { %v1123_v16 = vmul.f32 %v1119_v59, %v5304_v52 }
  0xcc   :  { %v1015_v40 = vmul.f32 %v3937_v25, %v5349_v33  ;;  %v1120_v31 = vmul.f32 %v1116_v14, %v5299_v48  ;;  %v1121_v19 = vmul.f32 %v1117_v53, %v5307_v55  ;;  %v5578_v53 = vld [vmem:[%s6711_s9] sm:$0xff]  }
  0xcd   :  { %v3944_v21 = vclamps-f32 %v1123_v16, 1.0  ;;  %4261 = vmatprep.mubr.msk.bf16.mxu1 %vm172_vm2, %v5578_v53  ;;  %4269 = vmatprep.mubr.msk.bf16.mxu0 %vm172_vm2, %v5578_v53  ;;  %v71_v16 = vld [vmem:[%s6710_s8 + $0x10] sm:$0xff] }
  0xce   :  { %v1118_v38 = vadd.f32 %v1115_v47, %v1015_v40  ;;  %v3941_v44 = vclamps-f32 %v1120_v31, 1.0  ;;  %v3942_v8 = vclamps-f32 %v1121_v19, 1.0  ;;  %264 = vperm.xlu1 %4724, %v71_v16   ;;  %v72_v40 = vld [vmem:[%s6710_s8 + $0x18] sm:$0xff]  ;;  %v6807_v31 = vmov 1  }
  0xcf   :  { %v5557_v12 = vmul.f32 %v3944_v21, %v5318_v61  }
  0xd0   :  { %v86_v0 = vpop.permute.xlu0 %85  ;;  %v1122_v51 = vmul.f32 %v1118_v38, %v5297_v46  ;;  %v5564_v60 = vmul.f32 %v3941_v44, %v5321_v1   ;;  %v5567_v2 = vmul.f32 %v3942_v8, %v5284_v41  }
  0xd1   :  { %v91_v47 = vrot.slane %v86_v0, %v5277_v39 }
  0xd2   :  { %v3943_v59 = vclamps-f32 %v1122_v51, 1.0  ;;  %269 = vperm.xlu1 %4724, %v72_v40  }
  0xd3   :  { %v5570_v25 = vadd.f32 %v91_v47, %v77_v35  ;;  %v4738_v44 = vpop.eup %4737 }
  0xd4   :  { %v5573_v14 = vmul.f32 %v3943_v59, %v5349_v33   ;;  %v5596_v59 = vld [vmem:[%s6711_s9 + $0x8] sm:$0xff]  }
  0xd5   :  { %6806 = vst [vmem:[#allocation30_spill] sm:$0xff] %v5570_v25 }
  0xd6   :  { %4725 = vset.pattern.permute.xlu1 %v6807_v31 }
  0xd7   :  { %293 = vperm.xlu1 %4725, %v71_v16  }
  0xdb   :  { %297 = vperm.xlu1 %4725, %v72_v40   ;;  %v5611_v40 = vld [vmem:[%s6706_s4 + $0x10] sm:$0xff] }
  0xdc   :  { %6811 = vst [vmem:[#allocation34_spill] sm:$0xff] %v5611_v40 }
 0x14d   :  { %v5602_v54 = vpop.permute.xlu1 %264 }
 0x14e   :  { %6808 = vst [vmem:[#allocation31_spill] sm:$0xff] %v5602_v54 }
 0x176   :  { %v242_v19 = vpop.f32.mrb[0].mxu0 }
 0x177   :  { %v243_v21 = vadd.f32 %v242_v19, %v77_v35  ;;  %v4256_v38 = vpop.f32.mrb[1].mxu0  ;;  %v5604_v35 = vpop.permute.xlu1 %269  ;;  %v428_v19 = vmul.f32 %v5326_v3, %v5602_v54 }
 0x178   :  { %6809 = vst [vmem:[#allocation32_spill] sm:$0xff] %v5604_v35  ;;  %v547_v38 = vmul.f32 %v5330_v4, %v5602_v54 }
 0x179   :  { %v246_v8 = vsub.f32 %v5314_v58, %v243_v21  ;;  %v429_v21 = vmul.f32 %v5326_v3, %v5604_v35 }
 0x17a   :  { %v551_v36 = vadd.f32 %v547_v38, %v5611_v40 }
 0x17b   :  { %v247_v0 = vmul.f32 %v4738_v44, %v246_v8  ;;  %v5606_v16 = vpop.permute.xlu1 %293  ;;  %v5624_v44 = vld [vmem:[%s6706_s4 + $0x18] sm:$0xff]  ;;  %v548_v8 = vmul.f32 %v5330_v4, %v5604_v35  ;;  %s5806_s4 = smov 1  }
 0x17c   :  { %6810 = vst [vmem:[#allocation33_spill] sm:$0xff] %v5606_v16  ;;  %6813 = vst [vmem:[#allocation36_spill] sm:$0xff] %v5624_v44  ;;  %v433_v3 = vadd.f32 %v429_v21, %v5624_v44  ;;  %v559_v61 = vmul.f32 %v5232_v23, %v5606_v16 }
 0x17d   :  { %v251_v51 = vrot.slane %v247_v0, %v5277_v39  ;;  %v666_v0 = vmul.f32 %v5336_v7, %v5602_v54  ;;  %v552_v4 = vadd.f32 %v548_v8, %v5624_v44 }
 0x17e   :  { %v5646_v1 = vadd.f32 %v559_v61, %v551_v36 }
 0x17f   :  { %v312_v47 = vpack.c.bf16 %v251_v51, %v251_v51  ;;  %v5613_v31 = vpop.permute.xlu1 %297  ;;  %v432_v51 = vadd.f32 %v428_v19, %v5611_v40  ;;  %v670_v21 = vadd.f32 %v666_v0, %v5611_v40 }
 0x180   :  { %6812 = vst [vmem:[#allocation35_spill] sm:$0xff] %v5613_v31  ;;  %v441_v25 = vmul.f32 %v5228_v22, %v5613_v31  ;;  %v560_v19 = vmul.f32 %v5232_v23, %v5613_v31  ;;  %v679_v8 = vmul.f32 %v5236_v24, %v5613_v31  ;;  %v785_v23 = vmul.f32 %v5358_v43, %v5602_v54 }
 0x181   :  { %4257 = vmatprep.subr.bf16.mxu1 %v312_v47 }
 0x182   :  { %4258 = vmatpush3.bf16.msra.mxu1 %v312_v47  ;;  %v5644_v41 = vadd.f32 %v441_v25, %v433_v3  ;;  %v5651_v38 = vadd.f32 %v560_v19, %v552_v4  ;;  %v789_v61 = vadd.f32 %v785_v23, %v5611_v40  ;;  %v797_v25 = vmul.f32 %v5242_v26, %v5606_v16 }
 0x183   :  { %4259 = vmatprep.subr.bf16.mxu1 %v312_v47  ;;  %v798_v19 = vmul.f32 %v5242_v26, %v5613_v31  ;;  %v917_v26 = vmul.f32 %v5258_v30, %v5613_v31 }
 0x184   :  { %v5667_v3 = vadd.f32 %v797_v25, %v789_v61  ;;  %v1035_v25 = vmul.f32 %v5268_v34, %v5606_v16 }
 0x186   :  { %4260 = vmatpush3.bf16.msra.mxu1 %v312_v47  ;;  %v440_v47 = vmul.f32 %v5228_v22, %v5606_v16  ;;  %v678_v22 = vmul.f32 %v5236_v24, %v5606_v16  ;;  %v904_v24 = vmul.f32 %v5382_v6, %v5602_v54 }
 0x188   :  { %v5639_v33 = vadd.f32 %v440_v47, %v432_v51  ;;  %v667_v51 = vmul.f32 %v5336_v7, %v5604_v35  ;;  %v5657_v47 = vadd.f32 %v678_v22, %v670_v21  ;;  %v786_v7 = vmul.f32 %v5358_v43, %v5604_v35 }
 0x189   :  { %4262 = vmatmul.mubr.msk.bf16.vlgmr.msra.gmra.mrb[0].mxu1 %vm172_vm2, %v5596_v59  ;;  %v908_v21 = vadd.f32 %v904_v24, %v5611_v40  ;;  %v916_v22 = vmul.f32 %v5258_v30, %v5606_v16  ;;  %v1024_v24 = vmul.f32 %v5418_v5, %v5604_v35  ;;  %v1036_v30 = vmul.f32 %v5268_v34, %v5613_v31 }
 0x18a   :  { %4277 = vmatprep.mubr.msk.bf16.mxu1 %vm172_vm2, %v5578_v53  ;;  %v671_v36 = vadd.f32 %v667_v51, %v5624_v44  ;;  %v790_v4 = vadd.f32 %v786_v7, %v5624_v44  ;;  %v905_v51 = vmul.f32 %v5382_v6, %v5604_v35  ;;  %v275_v34 = vrot.slane %v5314_v58, %v5277_v39 }
 0x18b   :  { %v5685_v23 = vadd.f32 %v916_v22, %v908_v21  ;;  %v1154_v22 = vmul.f32 %v5274_v37, %v5606_v16 }
 0x18c   :  { %v5665_v0 = vadd.f32 %v679_v8, %v671_v36  ;;  %v1023_v8 = vmul.f32 %v5418_v5, %v5602_v54  ;;  %v5683_v43 = vadd.f32 %v798_v19, %v790_v4  ;;  %v909_v36 = vadd.f32 %v905_v51, %v5624_v44 }
 0x18d   :  { %v1142_v4 = vmul.f32 %v5429_v45, %v5602_v54  ;;  %v1028_v19 = vadd.f32 %v1024_v24, %v5624_v44  ;;  %v1143_v5 = vmul.f32 %v5429_v45, %v5604_v35  ;;  %v303_v24 = vrot.slane %v5223_v20, %v5277_v39 }
 0x18e   :  { %v1027_v61 = vadd.f32 %v1023_v8, %v5611_v40  ;;  %v5693_v7 = vadd.f32 %v917_v26, %v909_v36  ;;  %v1155_v26 = vmul.f32 %v5274_v37, %v5613_v31 }
 0x18f   :  { %v1146_v21 = vadd.f32 %v1142_v4, %v5611_v40  ;;  %v5707_v51 = vadd.f32 %v1036_v30, %v1028_v19  ;;  %v1147_v36 = vadd.f32 %v1143_v5, %v5624_v44  ;;  %v279_v4 = vmul.f32 %v275_v34, %v5604_v35 }
 0x190   :  { %v5695_v6 = vadd.f32 %v1035_v25, %v1027_v61  ;;  %v278_v25 = vmul.f32 %v275_v34, %v5602_v54  ;;  %v276_v19 = vmul.f32 %v275_v34, %v5342_v11  ;;  %v306_v30 = vmul.f32 %v303_v24, %v5606_v16 }
 0x191   :  { %v5709_v8 = vadd.f32 %v1154_v22, %v1146_v21  ;;  %v5716_v61 = vadd.f32 %v1155_v26, %v1147_v36  ;;  %v304_v37 = vmul.f32 %v303_v24, %v5405_v49  ;;  %v277_v21 = vmul.f32 %v275_v34, %v5368_v57 }
 0x192   :  { %v282_v45 = vadd.f32 %v278_v25, %v5611_v40  ;;  %v283_v22 = vadd.f32 %v279_v4, %v5624_v44  ;;  %v307_v58 = vmul.f32 %v303_v24, %v5613_v31  ;;  %v280_v5 = vadd.f32 %v276_v19, %v5347_v32 }
 0x193   :  { %v305_v20 = vmul.f32 %v303_v24, %v5432_v50  ;;  %v281_v11 = vadd.f32 %v277_v21, %v5373_v63 }
 0x194   :  { %v310_v36 = vadd.f32 %v306_v30, %v282_v45  ;;  %v308_v35 = vadd.f32 %v304_v37, %v280_v5  ;;  %v311_v16 = vadd.f32 %v307_v58, %v283_v22 }
 0x195   :  { %v309_v52 = vadd.f32 %v305_v20, %v281_v11 }
 0x25c   :  { %v4263_v26 = vpop.f32.mrb[0].mxu1 }
 0x25d   :  { %v380_v25 = vadd.f32 %v4263_v26, %v310_v36  ;;  %v363_v40 = vpop.f32.mrb[1].mxu1 }
 0x25e   :  { %v378_v54 = vadd.f32 %v363_v40, %v308_v35  ;;  %v4264_v49 = vpop.f32.mrb[2].mxu1 }
 0x25f   :  { %v384_v34 = vmul.f32 0.5, %v380_v25  ;;  %v381_v57 = vadd.f32 %v4264_v49, %v311_v16  ;;  %v366_v4 = vpop.f32.mrb[3].mxu1 }
 0x260   :  { %v382_v44 = vmul.f32 0.5, %v378_v54  ;;  %v379_v31 = vadd.f32 %v366_v4, %v309_v52 }
 0x261   :  { %4739 = vtanh.f32 %v384_v34  ;;  %v385_v19 = vmul.f32 0.5, %v381_v57 }
 0x262   :  { %4741 = vtanh.f32 %v382_v44  ;;  %v383_v24 = vmul.f32 0.5, %v379_v31 }
 0x263   :  { %4743 = vtanh.f32 %v385_v19 }
 0x264   :  { %4745 = vtanh.f32 %v383_v24 }
 0x26b   :  { %v4740_v45 = vpop.eup %4739 }
 0x26c   :  { %v4742_v30 = vpop.eup %4741  ;;  %v392_v37 = vmul.f32 0.5, %v4740_v45 }
 0x26d   :  { %v4744_v21 = vpop.eup %4743  ;;  %v390_v5 = vmul.f32 0.5, %v4742_v30 }
 0x26e   :  { %v4746_v22 = vpop.eup %4745  ;;  %v393_v35 = vmul.f32 0.5, %v4744_v21  ;;  %v396_v11 = vadd.f32 0.5, %v392_v37 }
 0x26f   :  { %v391_v40 = vmul.f32 0.5, %v4746_v22  ;;  %v394_v49 = vadd.f32 0.5, %v390_v5 }
 0x270   :  { %v397_v58 = vadd.f32 0.5, %v393_v35 }
 0x271   :  { %v395_v16 = vadd.f32 0.5, %v391_v40 }
 0x272   :  { %v447_v54 = vpack.c.bf16 %v397_v58, %v396_v11 }
 0x273   :  { %v446_v52 = vpack.c.bf16 %v395_v16, %v394_v49 }
 0x275   :  { %4265 = vmatprep.subr.bf16.mxu0 %v446_v52 }
 0x276   :  { %4266 = vmatpush3.bf16.msra.mxu0 %v446_v52 }
 0x277   :  { %4267 = vmatprep.subr.bf16.mxu0 %v447_v54 }
 0x27a   :  { %4268 = vmatpush3.bf16.msra.mxu0 %v447_v54 }
 0x27d   :  { %4270 = vmatmul.mubr.msk.bf16.vlgmr.msra.gmra.mrb[4].mxu0 %vm172_vm2, %v5596_v59 }
 0x27e   :  { %4285 = vmatprep.mubr.msk.bf16.mxu0 %vm172_vm2, %v5578_v53 }
 0x350   :  { %v4271_v57 = vpop.f32.mrb[4].mxu0 }
 0x351   :  { %v499_v31 = vadd.f32 %v4271_v57, %v5639_v33  ;;  %v482_v44 = vpop.f32.mrb[5].mxu0 }
 0x352   :  { %v497_v20 = vadd.f32 %v482_v44, %v5434_v13  ;;  %v4272_v36 = vpop.f32.mrb[6].mxu0 }
 0x353   :  { %v503_v26 = vmul.f32 0.5, %v499_v31  ;;  %v500_v25 = vadd.f32 %v4272_v36, %v5644_v41  ;;  %v485_v34 = vpop.f32.mrb[7].mxu0 }
 0x354   :  { %v501_v4 = vmul.f32 0.5, %v497_v20  ;;  %v498_v19 = vadd.f32 %v485_v34, %v5454_v15 }
 0x355   :  { %4747 = vtanh.f32 %v503_v26  ;;  %v504_v24 = vmul.f32 0.5, %v500_v25 }
 0x356   :  { %4749 = vtanh.f32 %v501_v4  ;;  %v502_v45 = vmul.f32 0.5, %v498_v19 }
 0x357   :  { %4751 = vtanh.f32 %v504_v24 }
 0x358   :  { %4753 = vtanh.f32 %v502_v45 }
 0x35f   :  { %v4748_v30 = vpop.eup %4747 }
 0x360   :  { %v4750_v37 = vpop.eup %4749  ;;  %v511_v33 = vmul.f32 0.5, %v4748_v30 }
 0x361   :  { %v4752_v21 = vpop.eup %4751  ;;  %v509_v5 = vmul.f32 0.5, %v4750_v37 }
 0x362   :  { %v4754_v13 = vpop.eup %4753  ;;  %v512_v22 = vmul.f32 0.5, %v4752_v21  ;;  %v515_v40 = vadd.f32 0.5, %v511_v33 }
 0x363   :  { %v510_v35 = vmul.f32 0.5, %v4754_v13  ;;  %v513_v11 = vadd.f32 0.5, %v509_v5 }
 0x364   :  { %v516_v41 = vadd.f32 0.5, %v512_v22 }
 0x365   :  { %v514_v58 = vadd.f32 0.5, %v510_v35 }
 0x366   :  { %v566_v49 = vpack.c.bf16 %v516_v41, %v515_v40 }
 0x367   :  { %v565_v15 = vpack.c.bf16 %v514_v58, %v513_v11 }
 0x369   :  { %4273 = vmatprep.subr.bf16.mxu1 %v565_v15 }
 0x36a   :  { %4274 = vmatpush3.bf16.msra.mxu1 %v565_v15 }
 0x36b   :  { %4275 = vmatprep.subr.bf16.mxu1 %v566_v49 }
 0x36e   :  { %4276 = vmatpush3.bf16.msra.mxu1 %v566_v49 }
 0x371   :  { %4278 = vmatmul.mubr.msk.bf16.vlgmr.msra.gmra.mrb[4].mxu1 %vm172_vm2, %v5596_v59 }
 0x372   :  { %4293 = vmatprep.mubr.msk.bf16.mxu1 %vm172_vm2, %v5578_v53 }
 0x444   :  { %v4279_v16 = vpop.f32.mrb[4].mxu1 }
 0x445   :  { %v618_v54 = vadd.f32 %v4279_v16, %v5646_v1  ;;  %v601_v52 = vpop.f32.mrb[5].mxu1 }
 0x446   :  { %v616_v57 = vadd.f32 %v601_v52, %v5436_v10  ;;  %v4280_v31 = vpop.f32.mrb[6].mxu1 }
 0x447   :  { %v622_v44 = vmul.f32 0.5, %v618_v54  ;;  %v619_v20 = vadd.f32 %v4280_v31, %v5651_v38  ;;  %v604_v36 = vpop.f32.mrb[7].mxu1 }
 0x448   :  { %v620_v26 = vmul.f32 0.5, %v616_v57  ;;  %v617_v25 = vadd.f32 %v604_v36, %v5456_v42 }
 0x449   :  { %4755 = vtanh.f32 %v622_v44  ;;  %v623_v34 = vmul.f32 0.5, %v619_v20 }
 0x44a   :  { %4757 = vtanh.f32 %v620_v26  ;;  %v621_v4 = vmul.f32 0.5, %v617_v25 }
 0x44b   :  { %4759 = vtanh.f32 %v623_v34 }
 0x44c   :  { %4761 = vtanh.f32 %v621_v4 }
 0x453   :  { %v4756_v19 = vpop.eup %4755 }
 0x454   :  { %v4758_v24 = vpop.eup %4757  ;;  %v630_v1 = vmul.f32 0.5, %v4756_v19 }
 0x455   :  { %v4760_v45 = vpop.eup %4759  ;;  %v628_v30 = vmul.f32 0.5, %v4758_v24 }
 0x456   :  { %v4762_v10 = vpop.eup %4761  ;;  %v631_v37 = vmul.f32 0.5, %v4760_v45  ;;  %v634_v21 = vadd.f32 0.5, %v630_v1 }
 0x457   :  { %v629_v33 = vmul.f32 0.5, %v4762_v10  ;;  %v632_v5 = vadd.f32 0.5, %v628_v30 }
 0x458   :  { %v635_v38 = vadd.f32 0.5, %v631_v37 }
 0x459   :  { %v633_v13 = vadd.f32 0.5, %v629_v33 }
 0x45a   :  { %v685_v22 = vpack.c.bf16 %v635_v38, %v634_v21 }
 0x45b   :  { %v684_v42 = vpack.c.bf16 %v633_v13, %v632_v5 }
 0x45d   :  { %4281 = vmatprep.subr.bf16.mxu0 %v684_v42 }
 0x45e   :  { %4282 = vmatpush3.bf16.msra.mxu0 %v684_v42 }
 0x45f   :  { %4283 = vmatprep.subr.bf16.mxu0 %v685_v22 }
 0x462   :  { %4284 = vmatpush3.bf16.msra.mxu0 %v685_v22  ;;  %v6814_v22 = vld [vmem:[#allocation28_spill] sm:$0xff] }
 0x465   :  { %4286 = vmatmul.mubr.msk.bf16.vlgmr.msra.gmra.mrb[8].mxu0 %vm172_vm2, %v5596_v59 }
 0x466   :  { %4301 = vmatprep.mubr.msk.bf16.mxu0 %vm172_vm2, %v5578_v53 }
 0x538   :  { %v4287_v35 = vpop.f32.mrb[8].mxu0 }
 0x539   :  { %v737_v40 = vadd.f32 %v4287_v35, %v5657_v47  ;;  %v720_v41 = vpop.f32.mrb[9].mxu0 }
 0x53a   :  { %v735_v11 = vadd.f32 %v720_v41, %v5438_v29  ;;  %v4288_v58 = vpop.f32.mrb[10].mxu0 }
 0x53b   :  { %v741_v49 = vmul.f32 0.5, %v737_v40  ;;  %v738_v15 = vadd.f32 %v4288_v58, %v5665_v0  ;;  %v723_v16 = vpop.f32.mrb[11].mxu0 }
 0x53c   :  { %v739_v54 = vmul.f32 0.5, %v735_v11  ;;  %v736_v52 = vadd.f32 %v723_v16, %v5465_v27 }
 0x53d   :  { %4763 = vtanh.f32 %v741_v49  ;;  %v742_v57 = vmul.f32 0.5, %v738_v15 }
 0x53e   :  { %4765 = vtanh.f32 %v739_v54  ;;  %v740_v31 = vmul.f32 0.5, %v736_v52 }
 0x53f   :  { %4767 = vtanh.f32 %v742_v57 }
 0x540   :  { %4769 = vtanh.f32 %v740_v31 }
 0x547   :  { %v4764_v44 = vpop.eup %4763 }
 0x548   :  { %v4766_v20 = vpop.eup %4765  ;;  %v749_v47 = vmul.f32 0.5, %v4764_v44 }
 0x549   :  { %v4768_v36 = vpop.eup %4767  ;;  %v747_v26 = vmul.f32 0.5, %v4766_v20 }
 0x54a   :  { %v4770_v29 = vpop.eup %4769  ;;  %v750_v25 = vmul.f32 0.5, %v4768_v36  ;;  %v753_v4 = vadd.f32 0.5, %v749_v47 }
 0x54b   :  { %v748_v34 = vmul.f32 0.5, %v4770_v29  ;;  %v751_v19 = vadd.f32 0.5, %v747_v26  ;;  %v6815_v26 = vld [vmem:[#allocation29_spill] sm:$0xff] }
 0x54c   :  { %v754_v0 = vadd.f32 0.5, %v750_v25 }
 0x54d   :  { %v752_v24 = vadd.f32 0.5, %v748_v34 }
 0x54e   :  { %v804_v1 = vpack.c.bf16 %v754_v0, %v753_v4 }
 0x54f   :  { %v803_v27 = vpack.c.bf16 %v752_v24, %v751_v19 }
 0x551   :  { %4289 = vmatprep.subr.bf16.mxu1 %v803_v27 }
 0x552   :  { %4290 = vmatpush3.bf16.msra.mxu1 %v803_v27 }
 0x553   :  { %4291 = vmatprep.subr.bf16.mxu1 %v804_v1 }
 0x556   :  { %4292 = vmatpush3.bf16.msra.mxu1 %v804_v1 }
 0x559   :  { %4294 = vmatmul.mubr.msk.bf16.vlgmr.msra.gmra.mrb[8].mxu1 %vm172_vm2, %v5596_v59 }
 0x55a   :  { %4309 = vmatprep.mubr.msk.bf16.mxu1 %vm172_vm2, %v5578_v53 }
 0x62c   :  { %v4295_v45 = vpop.f32.mrb[8].mxu1 }
 0x62d   :  { %v856_v30 = vadd.f32 %v4295_v45, %v5667_v3  ;;  %v839_v10 = vpop.f32.mrb[9].mxu1 }
 0x62e   :  { %v854_v37 = vadd.f32 %v839_v10, %v5473_v17  ;;  %v4296_v33 = vpop.f32.mrb[10].mxu1 }
 0x62f   :  { %v860_v21 = vmul.f32 0.5, %v856_v30  ;;  %v857_v38 = vadd.f32 %v4296_v33, %v5683_v43  ;;  %v842_v5 = vpop.f32.mrb[11].mxu1 }
 0x630   :  { %v858_v13 = vmul.f32 0.5, %v854_v37  ;;  %v855_v42 = vadd.f32 %v842_v5, %v6814_v22 }
 0x631   :  { %4771 = vtanh.f32 %v860_v21  ;;  %v861_v35 = vmul.f32 0.5, %v857_v38 }
 0x632   :  { %4773 = vtanh.f32 %v858_v13  ;;  %v859_v40 = vmul.f32 0.5, %v855_v42 }
 0x633   :  { %4775 = vtanh.f32 %v861_v35 }
 0x634   :  { %4777 = vtanh.f32 %v859_v40 }
 0x63b   :  { %v4772_v41 = vpop.eup %4771 }
 0x63c   :  { %v4774_v11 = vpop.eup %4773  ;;  %v868_v3 = vmul.f32 0.5, %v4772_v41 }
 0x63d   :  { %v4776_v58 = vpop.eup %4775  ;;  %v866_v49 = vmul.f32 0.5, %v4774_v11 }
 0x63e   :  { %v4778_v17 = vpop.eup %4777  ;;  %v869_v15 = vmul.f32 0.5, %v4776_v58  ;;  %v872_v54 = vadd.f32 0.5, %v868_v3 }
 0x63f   :  { %v867_v16 = vmul.f32 0.5, %v4778_v17  ;;  %v870_v52 = vadd.f32 0.5, %v866_v49 }
 0x640   :  { %v873_v43 = vadd.f32 0.5, %v869_v15 }
 0x641   :  { %v871_v57 = vadd.f32 0.5, %v867_v16 }
 0x642   :  { %v923_v31 = vpack.c.bf16 %v873_v43, %v872_v54 }
 0x643   :  { %v922_v44 = vpack.c.bf16 %v871_v57, %v870_v52 }
 0x645   :  { %4297 = vmatprep.subr.bf16.mxu0 %v922_v44 }
 0x646   :  { %4298 = vmatpush3.bf16.msra.mxu0 %v922_v44 }
 0x647   :  { %4299 = vmatprep.subr.bf16.mxu0 %v923_v31 }
 0x64a   :  { %4300 = vmatpush3.bf16.msra.mxu0 %v923_v31 }
 0x64d   :  { %4302 = vmatmul.mubr.msk.bf16.vlgmr.msra.gmra.mrb[12].mxu0 %vm172_vm2, %v5596_v59 }
 0x64e   :  { %4317 = vmatprep.mubr.msk.bf16.mxu0 %vm172_vm2, %v5578_v53 }
 0x720   :  { %v4303_v20 = vpop.f32.mrb[12].mxu0 }
 0x721   :  { %v975_v47 = vadd.f32 %v4303_v20, %v5685_v23  ;;  %v958_v36 = vpop.f32.mrb[13].mxu0 }
 0x722   :  { %v973_v29 = vadd.f32 %v958_v36, %v6815_v26  ;;  %v4304_v25 = vpop.f32.mrb[14].mxu0 }
 0x723   :  { %v979_v34 = vmul.f32 0.5, %v975_v47  ;;  %v976_v4 = vadd.f32 %v4304_v25, %v5693_v7  ;;  %v961_v0 = vpop.f32.mrb[15].mxu0 }
 0x724   :  { %v977_v19 = vmul.f32 0.5, %v973_v29  ;;  %v974_v24 = vadd.f32 %v961_v0, %v5501_v9 }
 0x725   :  { %4779 = vtanh.f32 %v979_v34  ;;  %v980_v1 = vmul.f32 0.5, %v976_v4 }
 0x726   :  { %4781 = vtanh.f32 %v977_v19  ;;  %v978_v27 = vmul.f32 0.5, %v974_v24 }
 0x727   :  { %4783 = vtanh.f32 %v980_v1 }
 0x728   :  { %4785 = vtanh.f32 %v978_v27 }
 0x72f   :  { %v4780_v45 = vpop.eup %4779 }
 0x730   :  { %v4782_v30 = vpop.eup %4781  ;;  %v987_v23 = vmul.f32 0.5, %v4780_v45 }
 0x731   :  { %v4784_v10 = vpop.eup %4783  ;;  %v985_v37 = vmul.f32 0.5, %v4782_v30 }
 0x732   :  { %v4786_v33 = vpop.eup %4785  ;;  %v988_v21 = vmul.f32 0.5, %v4784_v10  ;;  %v991_v5 = vadd.f32 0.5, %v987_v23 }
 0x733   :  { %v986_v38 = vmul.f32 0.5, %v4786_v33  ;;  %v989_v13 = vadd.f32 0.5, %v985_v37 }
 0x734   :  { %v992_v7 = vadd.f32 0.5, %v988_v21 }
 0x735   :  { %v990_v22 = vadd.f32 0.5, %v986_v38 }
 0x736   :  { %v1042_v42 = vpack.c.bf16 %v992_v7, %v991_v5 }
 0x737   :  { %v1041_v9 = vpack.c.bf16 %v990_v22, %v989_v13 }
 0x739   :  { %4305 = vmatprep.subr.bf16.mxu1 %v1041_v9 }
 0x73a   :  { %4306 = vmatpush3.bf16.msra.mxu1 %v1041_v9 }
 0x73b   :  { %4307 = vmatprep.subr.bf16.mxu1 %v1042_v42 }
 0x73e   :  { %4308 = vmatpush3.bf16.msra.mxu1 %v1042_v42 }
 0x741   :  { %4310 = vmatmul.mubr.msk.bf16.vlgmr.msra.gmra.mrb[12].mxu1 %vm172_vm2, %v5596_v59 }
 0x814   :  { %v4311_v35 = vpop.f32.mrb[12].mxu1 }
 0x815   :  { %v1094_v40 = vadd.f32 %v4311_v35, %v5695_v6  ;;  %v1077_v41 = vpop.f32.mrb[13].mxu1 }
 0x816   :  { %v1092_v11 = vadd.f32 %v1077_v41, %v5506_v56  ;;  %v4312_v3 = vpop.f32.mrb[14].mxu1 }
 0x817   :  { %v1098_v58 = vmul.f32 0.5, %v1094_v40  ;;  %v1095_v49 = vadd.f32 %v4312_v3, %v5707_v51  ;;  %v1080_v17 = vpop.f32.mrb[15].mxu1 }
 0x818   :  { %v1096_v15 = vmul.f32 0.5, %v1092_v11  ;;  %v1093_v16 = vadd.f32 %v1080_v17, %v5509_v62 }
 0x819   :  { %4787 = vtanh.f32 %v1098_v58  ;;  %v1099_v54 = vmul.f32 0.5, %v1095_v49 }
 0x81a   :  { %4789 = vtanh.f32 %v1096_v15  ;;  %v1097_v43 = vmul.f32 0.5, %v1093_v16 }
 0x81b   :  { %4791 = vtanh.f32 %v1099_v54 }
 0x81c   :  { %4793 = vtanh.f32 %v1097_v43 }
 0x823   :  { %v4788_v52 = vpop.eup %4787 }
 0x824   :  { %v4790_v57 = vpop.eup %4789  ;;  %v1106_v6 = vmul.f32 0.5, %v4788_v52 }
 0x825   :  { %v4792_v31 = vpop.eup %4791  ;;  %v1104_v44 = vmul.f32 0.5, %v4790_v57 }
 0x826   :  { %v4794_v56 = vpop.eup %4793  ;;  %v1107_v20 = vmul.f32 0.5, %v4792_v31  ;;  %v1110_v36 = vadd.f32 0.5, %v1106_v6 }
 0x827   :  { %v1105_v47 = vmul.f32 0.5, %v4794_v56  ;;  %v1108_v26 = vadd.f32 0.5, %v1104_v44 }
 0x828   :  { %v1111_v51 = vadd.f32 0.5, %v1107_v20 }
 0x829   :  { %v1109_v29 = vadd.f32 0.5, %v1105_v47 }
 0x82a   :  { %v1161_v25 = vpack.c.bf16 %v1111_v51, %v1110_v36 }
 0x82b   :  { %v1160_v62 = vpack.c.bf16 %v1109_v29, %v1108_v26 }
 0x82d   :  { %4313 = vmatprep.subr.bf16.mxu0 %v1160_v62 }
 0x82e   :  { %4314 = vmatpush3.bf16.msra.mxu0 %v1160_v62 }
 0x82f   :  { %4315 = vmatprep.subr.bf16.mxu0 %v1161_v25 }
 0x832   :  { %4316 = vmatpush3.bf16.msra.mxu0 %v1161_v25 }
 0x835   :  { %4318 = vmatmul.mubr.msk.bf16.vlgmr.msra.gmra.mrb[16].mxu0 %vm172_vm2, %v5596_v59 }
 0x908   :  { %v4319_v34 = vpop.f32.mrb[16].mxu0 }
 0x909   :  { %v1213_v4 = vadd.f32 %v4319_v34, %v5709_v8  ;;  %v1196_v0 = vpop.f32.mrb[17].mxu0 }
 0x90a   :  { %v1211_v19 = vadd.f32 %v1196_v0, %v5528_v28  ;;  %v4320_v24 = vpop.f32.mrb[18].mxu0 }
 0x90b   :  { %v1217_v1 = vmul.f32 0.5, %v1213_v4  ;;  %v1214_v27 = vadd.f32 %v4320_v24, %v5716_v61  ;;  %v1199_v45 = vpop.f32.mrb[19].mxu0 }
 0x90c   :  { %v1215_v30 = vmul.f32 0.5, %v1211_v19  ;;  %v1212_v23 = vadd.f32 %v1199_v45, %v5533_v18 }
 0x90d   :  { %4795 = vtanh.f32 %v1217_v1  ;;  %v1218_v10 = vmul.f32 0.5, %v1214_v27 }
 0x90e   :  { %4797 = vtanh.f32 %v1215_v30  ;;  %v1216_v37 = vmul.f32 0.5, %v1212_v23 }
 0x90f   :  { %4799 = vtanh.f32 %v1218_v10 }
 0x910   :  { %4801 = vtanh.f32 %v1216_v37 }
 0x917   :  { %v4796_v33 = vpop.eup %4795 }
 0x918   :  { %v4798_v21 = vpop.eup %4797  ;;  %v1225_v8 = vmul.f32 0.5, %v4796_v33 }
 0x919   :  { %v4800_v38 = vpop.eup %4799  ;;  %v1223_v5 = vmul.f32 0.5, %v4798_v21 }
 0x91a   :  { %v4802_v28 = vpop.eup %4801  ;;  %v1229_v7 = vadd.f32 0.5, %v1225_v8   ;;  %v1226_v13 = vmul.f32 0.5, %v4800_v38 }
 0x91b   :  { %v1227_v22 = vadd.f32 0.5, %v1223_v5   ;;  %v1224_v61 = vmul.f32 0.5, %v4802_v28 }
 0x91c   :  { %v1230_v42 = vadd.f32 0.5, %v1226_v13  }
 0x91d   :  { %v1228_v9 = vadd.f32 0.5, %v1224_v61  }
 0x91e LB: > { %4325 = vmatprep.mubr.msk.bf16.mxu0 %vm172_vm2, %v5578_v53  ;;  %4333 = vmatprep.mubr.msk.bf16.mxu1 %vm172_vm2, %v5578_v53  ;;  %v1300_v18 = vpack.c.bf16 %v5039_v9, %v5043_v22  ;;  %v1301_v35 = vpack.c.bf16 %v5031_v42, %v5035_v7  ;;  %s5828_s29 = sshll.u32 %s5063_s4, 3  ;;  %v6816_v54 = vld [vmem:[#allocation20_spill] sm:$0xff]  ;;  %v6817_v44 = vld [vmem:[#allocation22_spill] sm:$0xff]  ;;  %v6818_v20 = vld [vmem:[#allocation19_spill] sm:$0xff]  ;;  %s1236_s4 = sadd.s32 1, %s5063_s4   ;;  %s5063_s4 = sphi %s5806_s4, %s1236_s4   ;;  %v5059_v60 = vphi %v5564_v60, %v6846_v60   ;;  %v5055_v2 = vphi %v5567_v2, %v6845_v2   ;;  %v5051_v14 = vphi %v5573_v14, %v6844_v14   ;;  %v5047_v12 = vphi %v5557_v12, %v6843_v12   ;;  %v5043_v22 = vphi %v1227_v22, %v6842_v22   ;;  %v5039_v9 = vphi %v1228_v9, %v6841_v9   ;;  %v5035_v7 = vphi %v1229_v7, %v6840_v7   ;;  %v5031_v42 = vphi %v1230_v42, %v6839_v42  }
 0x91f   : > { %s1248_s3 = scalar_lea.vmem %s6703_s1, %s5828_s29  ;;  %v6821_v36 = vld [vmem:[#allocation10_spill] sm:$0xff]  ;;  %v6822_v24 = vld [vmem:[#allocation11_spill] sm:$0xff]  ;;  %v6823_v42 = vld [vmem:[#allocation12_spill] sm:$0xff]  ;;  %s1246_s19 = scalar_lea.vmem %s6702_s0, %s5828_s29 }
 0x920   : > { %4321 = vmatprep.subr.bf16.mxu0 %v1300_v18  ;;  %v5834_v40 = vld [vmem:[%s1248_s3] sm:$0xff]  ;;  %s1250_s10 = scalar_lea.vmem %s6704_s2, %s5828_s29  ;;  %p1233_p0 = scmp.ge.s32.totalorder %s1236_s4, 4  }
 0x921   : > { %4322 = vmatpush3.bf16.msra.mxu0 %v1300_v18  ;;  %v1255_v41 = vrot.slane %v5834_v40, %v5277_v39  ;;  %v1374_v51 = vrot.slane %v5834_v40, %v6821_v36  ;;  %v1493_v1 = vrot.slane %v5834_v40, %v6822_v24  ;;  %v1612_v9 = vrot.slane %v5834_v40, %v6823_v42  ;;  %s6131_s22 = smov (%p1233_p0), 0  }
 0x922   : > { %4323 = vmatprep.subr.bf16.mxu0 %v1301_v35 }
 0x923   : > { %v1256_v11 = vadd.f32 %v5059_v60, %v1255_v41  ;;  %v1257_v3 = vadd.f32 %v5055_v2, %v1255_v41  ;;  %v1258_v58 = vadd.f32 %v5051_v14, %v1255_v41  ;;  %v1259_v49 = vadd.f32 %v5047_v12, %v1255_v41  ;;  %v6819_v60 = vld [vmem:[#allocation24_spill] sm:$0xff]  ;;  %v6820_v14 = vld [vmem:[#allocation21_spill] sm:$0xff] }
 0x925   : > { %4324 = vmatpush3.bf16.msra.mxu0 %v1301_v35  ;;  %v1260_v17 = vmul.f32 %v1256_v11, %v5299_v48  ;;  %v1261_v15 = vmul.f32 %v1257_v3, %v5307_v55  ;;  %v1262_v16 = vmul.f32 %v1258_v58, %v5297_v46  ;;  %v1263_v43 = vmul.f32 %v1259_v49, %v6816_v54 }
 0x927   : > { %v3948_v52 = vclamps-f32 %v1260_v17, 1.0  ;;  %v3949_v57 = vclamps-f32 %v1261_v15, 1.0  ;;  %v3950_v6 = vclamps-f32 %v1262_v16, 1.0  ;;  %v3951_v31 = vclamps-f32 %v1263_v43, 1.0 }
 0x928   : > { %4326 = vmatmul.mubr.msk.bf16.vlgmr.msra.gmra.mrb[0].mxu0 %vm172_vm2, %v5596_v59 }
 0x929   : > { %4341 = vmatprep.mubr.msk.bf16.mxu0 %vm172_vm2, %v5578_v53  ;;  %v1272_v56 = vmul.f32 %v3948_v52, %v6817_v44  ;;  %v1273_v47 = vmul.f32 %v3949_v57, %v6818_v20  ;;  %v1274_v2 = vmul.f32 %v3950_v6, %v6819_v60  ;;  %v1275_v12 = vmul.f32 %v3951_v31, %v6820_v14 }
 0x92b   : > { %v1375_v26 = vadd.f32 %v1374_v51, %v1272_v56  ;;  %v1376_v29 = vadd.f32 %v1374_v51, %v1273_v47  ;;  %v1377_v25 = vadd.f32 %v1374_v51, %v1274_v2  ;;  %v1378_v62 = vadd.f32 %v1374_v51, %v1275_v12  ;;  %v6824_v47 = vld [vmem:[#allocation13_spill] sm:$0xff] }
 0x92c   : > { %v1731_v2 = vrot.slane %v5834_v40, %v6824_v47 }
 0x92d   : > { %v1379_v34 = vmul.f32 %v1375_v26, %v5299_v48  ;;  %v1380_v4 = vmul.f32 %v1376_v29, %v5307_v55  ;;  %v1381_v0 = vmul.f32 %v1377_v25, %v5297_v46  ;;  %v1382_v19 = vmul.f32 %v1378_v62, %v6816_v54 }
 0x92f   : > { %v3954_v27 = vclamps-f32 %v1379_v34, 1.0  ;;  %v3955_v45 = vclamps-f32 %v1380_v4, 1.0  ;;  %v3956_v30 = vclamps-f32 %v1381_v0, 1.0  ;;  %v3957_v23 = vclamps-f32 %v1382_v19, 1.0 }
 0x931   : > { %v1391_v10 = vmul.f32 %v3954_v27, %v6817_v44  ;;  %v1392_v37 = vmul.f32 %v3955_v45, %v6818_v20  ;;  %v1393_v33 = vmul.f32 %v3956_v30, %v6819_v60  ;;  %v1394_v21 = vmul.f32 %v3957_v23, %v6820_v14 }
 0x933   : > { %v1494_v8 = vadd.f32 %v1493_v1, %v1391_v10  ;;  %v1495_v38 = vadd.f32 %v1493_v1, %v1392_v37  ;;  %v1496_v5 = vadd.f32 %v1493_v1, %v1393_v33  ;;  %v1497_v28 = vadd.f32 %v1493_v1, %v1394_v21  ;;  %v6825_v37 = vld [vmem:[#allocation14_spill] sm:$0xff] }
 0x934   : > { %v1850_v33 = vrot.slane %v5834_v40, %v6825_v37 }
 0x935   : > { %v1498_v7 = vmul.f32 %v1494_v8, %v5299_v48  ;;  %v1499_v13 = vmul.f32 %v1495_v38, %v5307_v55  ;;  %v1500_v22 = vmul.f32 %v1496_v5, %v5297_v46  ;;  %v1501_v61 = vmul.f32 %v1497_v28, %v6816_v54 }
 0x937   : > { %v3960_v18 = vclamps-f32 %v1498_v7, 1.0  ;;  %v3961_v35 = vclamps-f32 %v1499_v13, 1.0  ;;  %v3962_v41 = vclamps-f32 %v1500_v22, 1.0  ;;  %v3963_v11 = vclamps-f32 %v1501_v61, 1.0 }
 0x939   : > { %v1510_v3 = vmul.f32 %v3960_v18, %v6817_v44  ;;  %v1511_v58 = vmul.f32 %v3961_v35, %v6818_v20  ;;  %v1512_v49 = vmul.f32 %v3962_v41, %v6819_v60  ;;  %v1513_v17 = vmul.f32 %v3963_v11, %v6820_v14 }
 0x93b   : > { %v1613_v15 = vadd.f32 %v1612_v9, %v1510_v3  ;;  %v1614_v16 = vadd.f32 %v1612_v9, %v1511_v58  ;;  %v1615_v43 = vadd.f32 %v1612_v9, %v1512_v49  ;;  %v1616_v52 = vadd.f32 %v1612_v9, %v1513_v17  ;;  %v6826_v49 = vld [vmem:[#allocation17_spill] sm:$0xff] }
 0x93c   : > { %v1969_v17 = vrot.slane %v5834_v40, %v6826_v49 }
 0x93d   : > { %v1617_v57 = vmul.f32 %v1613_v15, %v5299_v48  ;;  %v1618_v6 = vmul.f32 %v1614_v16, %v5307_v55  ;;  %v1619_v31 = vmul.f32 %v1615_v43, %v5297_v46  ;;  %v1620_v56 = vmul.f32 %v1616_v52, %v6816_v54 }
 0x93f   : > { %v3966_v12 = vclamps-f32 %v1617_v57, 1.0  ;;  %v3967_v51 = vclamps-f32 %v1618_v6, 1.0  ;;  %v3968_v26 = vclamps-f32 %v1619_v31, 1.0  ;;  %v3969_v29 = vclamps-f32 %v1620_v56, 1.0 }
 0x941   : > { %v1629_v25 = vmul.f32 %v3966_v12, %v6817_v44  ;;  %v1630_v62 = vmul.f32 %v3967_v51, %v6818_v20  ;;  %v1631_v34 = vmul.f32 %v3968_v26, %v6819_v60  ;;  %v1632_v4 = vmul.f32 %v3969_v29, %v6820_v14 }
 0x943   : > { %v1732_v0 = vadd.f32 %v1731_v2, %v1629_v25  ;;  %v1733_v19 = vadd.f32 %v1731_v2, %v1630_v62  ;;  %v1734_v1 = vadd.f32 %v1731_v2, %v1631_v34  ;;  %v1735_v27 = vadd.f32 %v1731_v2, %v1632_v4  ;;  %v6827_v4 = vld [vmem:[#allocation18_spill] sm:$0xff] }
 0x945   : > { %v1736_v45 = vmul.f32 %v1732_v0, %v5299_v48  ;;  %v1737_v30 = vmul.f32 %v1733_v19, %v5307_v55  ;;  %v1738_v23 = vmul.f32 %v1734_v1, %v5297_v46  ;;  %v1739_v10 = vmul.f32 %v1735_v27, %v6816_v54 }
 0x946   : > { %v2088_v0 = vrot.slane %v5834_v40, %v6827_v4 }
 0x947   : > { %v3972_v21 = vclamps-f32 %v1736_v45, 1.0  ;;  %v3973_v8 = vclamps-f32 %v1737_v30, 1.0  ;;  %v3974_v38 = vclamps-f32 %v1738_v23, 1.0  ;;  %v3975_v5 = vclamps-f32 %v1739_v10, 1.0 }
 0x949   : > { %v1748_v28 = vmul.f32 %v3972_v21, %v6817_v44  ;;  %v1749_v7 = vmul.f32 %v3973_v8, %v6818_v20  ;;  %v1750_v13 = vmul.f32 %v3974_v38, %v6819_v60  ;;  %v1751_v22 = vmul.f32 %v3975_v5, %v6820_v14 }
 0x94b   : > { %v1851_v61 = vadd.f32 %v1850_v33, %v1748_v28  ;;  %v1852_v9 = vadd.f32 %v1850_v33, %v1749_v7  ;;  %v1853_v18 = vadd.f32 %v1850_v33, %v1750_v13  ;;  %v1854_v35 = vadd.f32 %v1850_v33, %v1751_v22 }
 0x94d   : > { %v1855_v41 = vmul.f32 %v1851_v61, %v5299_v48  ;;  %v1856_v11 = vmul.f32 %v1852_v9, %v5307_v55  ;;  %v1857_v3 = vmul.f32 %v1853_v18, %v5297_v46  ;;  %v1858_v58 = vmul.f32 %v1854_v35, %v6816_v54 }
 0x94f   : > { %v3978_v15 = vclamps-f32 %v1855_v41, 1.0  ;;  %v3979_v16 = vclamps-f32 %v1856_v11, 1.0  ;;  %v3980_v43 = vclamps-f32 %v1857_v3, 1.0  ;;  %v3981_v52 = vclamps-f32 %v1858_v58, 1.0 }
 0x951   : > { %v1867_v57 = vmul.f32 %v3978_v15, %v6817_v44  ;;  %v1868_v6 = vmul.f32 %v3979_v16, %v6818_v20  ;;  %v1869_v31 = vmul.f32 %v3980_v43, %v6819_v60  ;;  %v1870_v56 = vmul.f32 %v3981_v52, %v6820_v14  ;;  %v6832_v16 = vld [vmem:[#allocation32_spill] sm:$0xff]  ;;  %v6833_v52 = vld [vmem:[#allocation25_spill] sm:$0xff] }
 0x953   : > { %v1970_v2 = vadd.f32 %v1969_v17, %v1867_v57  ;;  %v1971_v12 = vadd.f32 %v1969_v17, %v1868_v6  ;;  %v1972_v51 = vadd.f32 %v1969_v17, %v1869_v31  ;;  %v1973_v26 = vadd.f32 %v1969_v17, %v1870_v56  ;;  %v6831_v17 = vld [vmem:[#allocation23_spill] sm:$0xff]  ;;  %v6834_v6 = vld [vmem:[#allocation34_spill] sm:$0xff]  ;;  %v6835_v56 = vld [vmem:[#allocation33_spill] sm:$0xff] }
 0x955   : > { %v1974_v29 = vmul.f32 %v1970_v2, %v5299_v48  ;;  %v1975_v25 = vmul.f32 %v1971_v12, %v5307_v55  ;;  %v1976_v62 = vmul.f32 %v1972_v51, %v5297_v46  ;;  %v1977_v34 = vmul.f32 %v1973_v26, %v6816_v54  ;;  %v6836_v51 = vld [vmem:[#allocation27_spill] sm:$0xff] }
 0x957   : > { %v3984_v19 = vclamps-f32 %v1974_v29, 1.0  ;;  %v3985_v1 = vclamps-f32 %v1975_v25, 1.0  ;;  %v3986_v27 = vclamps-f32 %v1976_v62, 1.0  ;;  %v3987_v45 = vclamps-f32 %v1977_v34, 1.0  ;;  %v6837_v29 = vld [vmem:[#allocation36_spill] sm:$0xff]  ;;  %v6838_v62 = vld [vmem:[#allocation35_spill] sm:$0xff] }
 0x959   : > { %v1986_v30 = vmul.f32 %v3984_v19, %v6817_v44  ;;  %v1987_v23 = vmul.f32 %v3985_v1, %v6818_v20  ;;  %v1988_v10 = vmul.f32 %v3986_v27, %v6819_v60  ;;  %v1989_v33 = vmul.f32 %v3987_v45, %v6820_v14 }
 0x95b   : > { %v2089_v21 = vadd.f32 %v2088_v0, %v1986_v30  ;;  %v2090_v8 = vadd.f32 %v2088_v0, %v1987_v23  ;;  %v2091_v38 = vadd.f32 %v2088_v0, %v1988_v10  ;;  %v2092_v5 = vadd.f32 %v2088_v0, %v1989_v33 }
 0x95d   : > { %v2093_v40 = vmul.f32 %v2089_v21, %v5299_v48  ;;  %v2094_v28 = vmul.f32 %v2090_v8, %v5307_v55  ;;  %v2095_v7 = vmul.f32 %v2091_v38, %v5297_v46  ;;  %v2096_v13 = vmul.f32 %v2092_v5, %v6816_v54  ;;  %v5928_v54 = vld [vmem:[%s1246_s19] sm:$0xff] }
 0x95f   : > { %v3990_v22 = vclamps-f32 %v2093_v40, 1.0  ;;  %v3991_v61 = vclamps-f32 %v2094_v28, 1.0  ;;  %v3992_v9 = vclamps-f32 %v2095_v7, 1.0  ;;  %v3993_v18 = vclamps-f32 %v2096_v13, 1.0 }
 0x961   : > { %v5913_v35 = vmul.f32 %v3990_v22, %v6817_v44   ;;  %v5916_v2 = vmul.f32 %v3991_v61, %v6818_v20   ;;  %v5919_v11 = vmul.f32 %v3992_v9, %v6819_v60   ;;  %v5922_v12 = vmul.f32 %v3993_v18, %v6820_v14   ;;  %v5936_v20 = vld [vmem:[%s1250_s10] sm:$0xff]  ;;  %v6830_v60 = vld [vmem:[#allocation31_spill] sm:$0xff] }
 0x962   : > { %v1279_v44 = vrot.slane %v5928_v54, %v5277_v39  ;;  %v1291_v14 = vrot.slane %v5936_v20, %v5277_v39 }
 0x963   : > { %v6828_v41 = vmov %v5916_v2  ;;  %v6829_v3 = vmov %v5922_v12 }
 0x964   : > { %v1282_v58 = vmul.f32 %v1279_v44, %v6830_v60  ;;  %v1280_v15 = vmul.f32 %v1279_v44, %v6831_v17  ;;  %v1283_v43 = vmul.f32 %v1279_v44, %v6832_v16  ;;  %v1281_v57 = vmul.f32 %v1279_v44, %v6833_v52 }
 0x965   : > { %v1294_v2 = vmul.f32 %v1291_v14, %v6835_v56  ;;  %v1292_v26 = vmul.f32 %v1291_v14, %v6836_v51  ;;  %v1295_v34 = vmul.f32 %v1291_v14, %v6838_v62  ;;  %v1293_v19 = vmul.f32 %v1291_v14, %v5432_v50 }
 0x966   : > { %v1286_v31 = vadd.f32 %v1282_v58, %v6834_v6  ;;  %v1284_v12 = vadd.f32 %v1280_v15, %v5347_v32  ;;  %v1287_v25 = vadd.f32 %v1283_v43, %v6837_v29  ;;  %v1285_v0 = vadd.f32 %v1281_v57, %v5373_v63 }
 0x968   : > { %v1298_v1 = vadd.f32 %v1294_v2, %v1286_v31  ;;  %v1296_v27 = vadd.f32 %v1292_v26, %v1284_v12  ;;  %v1299_v45 = vadd.f32 %v1295_v34, %v1287_v25  ;;  %v1297_v23 = vadd.f32 %v1293_v19, %v1285_v0 }
 0x969   : > { %v1398_v34 = vrot.slane %v5928_v54, %v6821_v36  ;;  %v1410_v19 = vrot.slane %v5936_v20, %v6821_v36 }
 0x96b   : > { %v1401_v0 = vmul.f32 %v1398_v34, %v6830_v60 }
 0x9fb   : > { %v4327_v30 = vpop.f32.mrb[0].mxu0 }
 0x9fc   : > { %v1353_v10 = vadd.f32 %v4327_v30, %v1298_v1  ;;  %v1336_v33 = vpop.f32.mrb[1].mxu0  ;;  %v1399_v1 = vmul.f32 %v1398_v34, %v6831_v17  ;;  %v1405_v30 = vadd.f32 %v1401_v0, %v6834_v6 }
 0x9fd   : > { %v1351_v21 = vadd.f32 %v1336_v33, %v1296_v27  ;;  %v4328_v8 = vpop.f32.mrb[2].mxu0  ;;  %v1402_v27 = vmul.f32 %v1398_v34, %v6832_v16  ;;  %v1411_v33 = vmul.f32 %v1410_v19, %v6836_v51 }
 0x9fe   : > { %v1357_v38 = vmul.f32 0.5, %v1353_v10  ;;  %v1354_v5 = vadd.f32 %v4328_v8, %v1299_v45  ;;  %v1339_v40 = vpop.f32.mrb[3].mxu0  ;;  %v1400_v45 = vmul.f32 %v1398_v34, %v6833_v52  ;;  %v1403_v10 = vadd.f32 %v1399_v1, %v5347_v32 }
 0x9ff   : > { %v1355_v28 = vmul.f32 0.5, %v1351_v21  ;;  %v1352_v7 = vadd.f32 %v1339_v40, %v1297_v23  ;;  %v1413_v23 = vmul.f32 %v1410_v19, %v6835_v56  ;;  %v1406_v21 = vadd.f32 %v1402_v27, %v6837_v29 }
 0xa00   : > { %4803 = vtanh.f32 %v1357_v38  ;;  %v1358_v13 = vmul.f32 0.5, %v1354_v5  ;;  %v1414_v8 = vmul.f32 %v1410_v19, %v6838_v62  ;;  %v1404_v36 = vadd.f32 %v1400_v45, %v5373_v63 }
 0xa01   : > { %4805 = vtanh.f32 %v1355_v28  ;;  %v1356_v22 = vmul.f32 0.5, %v1352_v7  ;;  %v1412_v38 = vmul.f32 %v1410_v19, %v5432_v50  ;;  %v1417_v5 = vadd.f32 %v1413_v23, %v1405_v30 }
 0xa02   : > { %4807 = vtanh.f32 %v1358_v13  ;;  %v1415_v40 = vadd.f32 %v1411_v33, %v1403_v10  ;;  %v1418_v28 = vadd.f32 %v1414_v8, %v1406_v21  ;;  %v1517_v21 = vrot.slane %v5928_v54, %v6822_v24 }
 0xa03   : > { %4809 = vtanh.f32 %v1356_v22  ;;  %v1416_v13 = vadd.f32 %v1412_v38, %v1404_v36  ;;  %v1529_v36 = vrot.slane %v5936_v20, %v6822_v24 }
 0xa04   : > { %v1520_v8 = vmul.f32 %v1517_v21, %v6830_v60  ;;  %v1518_v38 = vmul.f32 %v1517_v21, %v6831_v17 }
 0xa0a   : > { %v4804_v61 = vpop.eup %4803 }
 0xa0b   : > { %v4806_v9 = vpop.eup %4805  ;;  %v1365_v18 = vmul.f32 0.5, %v4804_v61 }
 0xa0c   : > { %v4808_v44 = vpop.eup %4807  ;;  %v1363_v58 = vmul.f32 0.5, %v4806_v9 }
 0xa0d   : > { %v4810_v14 = vpop.eup %4809  ;;  %v1366_v15 = vmul.f32 0.5, %v4808_v44  ;;  %v1369_v57 = vadd.f32 0.5, %v1365_v18 }
 0xa0e   : > { %v1364_v43 = vmul.f32 0.5, %v4810_v14  ;;  %v1367_v2 = vadd.f32 0.5, %v1363_v58 }
 0xa0f   : > { %v1370_v31 = vadd.f32 0.5, %v1366_v15 }
 0xa10   : > { %v1368_v12 = vadd.f32 0.5, %v1364_v43 }
 0xa11   : > { %v1420_v26 = vpack.c.bf16 %v1370_v31, %v1369_v57 }
 0xa12   : > { %v1419_v25 = vpack.c.bf16 %v1368_v12, %v1367_v2 }
 0xa14   : > { %4329 = vmatprep.subr.bf16.mxu1 %v1419_v25 }
 0xa15   : > { %4330 = vmatpush3.bf16.msra.mxu1 %v1419_v25 }
 0xa16   : > { %4331 = vmatprep.subr.bf16.mxu1 %v1420_v26 }
 0xa19   : > { %4332 = vmatpush3.bf16.msra.mxu1 %v1420_v26 }
 0xa1c   : > { %4334 = vmatmul.mubr.msk.bf16.vlgmr.msra.gmra.mrb[0].mxu1 %vm172_vm2, %v5596_v59 }
 0xa1d   : > { %4349 = vmatprep.mubr.msk.bf16.mxu1 %vm172_vm2, %v5578_v53 }
 0xaef   : > { %v4335_v7 = vpop.f32.mrb[0].mxu1 }
 0xaf0   : > { %v1472_v22 = vadd.f32 %v4335_v7, %v1417_v5  ;;  %v1455_v61 = vpop.f32.mrb[1].mxu1  ;;  %v1521_v5 = vmul.f32 %v1517_v21, %v6832_v16  ;;  %v1532_v7 = vmul.f32 %v1529_v36, %v6835_v56 }
 0xaf1   : > { %v1470_v9 = vadd.f32 %v1455_v61, %v1415_v40  ;;  %v4336_v18 = vpop.f32.mrb[2].mxu1  ;;  %v1519_v40 = vmul.f32 %v1517_v21, %v6833_v52 }
 0xaf2   : > { %v1476_v44 = vmul.f32 0.5, %v1472_v22  ;;  %v1473_v58 = vadd.f32 %v4336_v18, %v1418_v28  ;;  %v1458_v14 = vpop.f32.mrb[3].mxu1  ;;  %v1524_v28 = vadd.f32 %v1520_v8, %v6834_v6  ;;  %v1530_v22 = vmul.f32 %v1529_v36, %v6836_v51 }
 0xaf3   : > { %v1474_v15 = vmul.f32 0.5, %v1470_v9  ;;  %v1471_v43 = vadd.f32 %v1458_v14, %v1416_v13  ;;  %v1522_v13 = vadd.f32 %v1518_v38, %v5347_v32  ;;  %v1525_v61 = vadd.f32 %v1521_v5, %v6837_v29 }
 0xaf4   : > { %4811 = vtanh.f32 %v1476_v44  ;;  %v1477_v57 = vmul.f32 0.5, %v1473_v58  ;;  %v1533_v9 = vmul.f32 %v1529_v36, %v6838_v62  ;;  %v1523_v24 = vadd.f32 %v1519_v40, %v5373_v63 }
 0xaf5   : > { %4813 = vtanh.f32 %v1474_v15  ;;  %v1475_v31 = vmul.f32 0.5, %v1471_v43  ;;  %v1531_v18 = vmul.f32 %v1529_v36, %v5432_v50  ;;  %v1536_v44 = vadd.f32 %v1532_v7, %v1524_v28 }
 0xaf6   : > { %4815 = vtanh.f32 %v1477_v57  ;;  %v1534_v58 = vadd.f32 %v1530_v22, %v1522_v13  ;;  %v1537_v14 = vadd.f32 %v1533_v9, %v1525_v61  ;;  %v1636_v22 = vrot.slane %v5928_v54, %v6823_v42 }
 0xaf7   : > { %4817 = vtanh.f32 %v1475_v31  ;;  %v1535_v43 = vadd.f32 %v1531_v18, %v1523_v24  ;;  %v1648_v9 = vrot.slane %v5936_v20, %v6823_v42 }
 0xaf8   : > { %v1639_v61 = vmul.f32 %v1636_v22, %v6830_v60  ;;  %v1637_v24 = vmul.f32 %v1636_v22, %v6831_v17  ;;  %v1640_v18 = vmul.f32 %v1636_v22, %v6832_v16 }
 0xafe   : > { %v4812_v2 = vpop.eup %4811 }
 0xaff   : > { %v4814_v12 = vpop.eup %4813  ;;  %v1484_v26 = vmul.f32 0.5, %v4812_v2 }
 0xb00   : > { %v4816_v25 = vpop.eup %4815  ;;  %v1482_v34 = vmul.f32 0.5, %v4814_v12 }
 0xb01   : > { %v4818_v0 = vpop.eup %4817  ;;  %v1485_v19 = vmul.f32 0.5, %v4816_v25  ;;  %v1488_v27 = vadd.f32 0.5, %v1484_v26 }
 0xb02   : > { %v1483_v1 = vmul.f32 0.5, %v4818_v0  ;;  %v1486_v30 = vadd.f32 0.5, %v1482_v34 }
 0xb03   : > { %v1489_v45 = vadd.f32 0.5, %v1485_v19 }
 0xb04   : > { %v1487_v23 = vadd.f32 0.5, %v1483_v1 }
 0xb05   : > { %v1539_v10 = vpack.c.bf16 %v1489_v45, %v1488_v27 }
 0xb06   : > { %v1538_v33 = vpack.c.bf16 %v1487_v23, %v1486_v30 }
 0xb08   : > { %4337 = vmatprep.subr.bf16.mxu0 %v1538_v33 }
 0xb09   : > { %4338 = vmatpush3.bf16.msra.mxu0 %v1538_v33 }
 0xb0a   : > { %4339 = vmatprep.subr.bf16.mxu0 %v1539_v10 }
 0xb0d   : > { %4340 = vmatpush3.bf16.msra.mxu0 %v1539_v10 }
 0xb10   : > { %4342 = vmatmul.mubr.msk.bf16.vlgmr.msra.gmra.mrb[4].mxu0 %vm172_vm2, %v5596_v59 }
 0xb11   : > { %4357 = vmatprep.mubr.msk.bf16.mxu0 %vm172_vm2, %v5578_v53 }
 0xbe3   : > { %v4343_v15 = vpop.f32.mrb[4].mxu0 }
 0xbe4   : > { %v1591_v57 = vadd.f32 %v4343_v15, %v1536_v44  ;;  %v1574_v31 = vpop.f32.mrb[5].mxu0  ;;  %v1638_v44 = vmul.f32 %v1636_v22, %v6833_v52  ;;  %v1641_v15 = vadd.f32 %v1637_v24, %v5347_v32 }
 0xbe5   : > { %v1589_v2 = vadd.f32 %v1574_v31, %v1534_v58  ;;  %v4344_v12 = vpop.f32.mrb[6].mxu0  ;;  %v1643_v58 = vadd.f32 %v1639_v61, %v6834_v6  ;;  %v1652_v31 = vmul.f32 %v1648_v9, %v6838_v62 }
 0xbe6   : > { %v1595_v26 = vmul.f32 0.5, %v1591_v57  ;;  %v1592_v25 = vadd.f32 %v4344_v12, %v1537_v14  ;;  %v1577_v34 = vpop.f32.mrb[7].mxu0  ;;  %v1651_v14 = vmul.f32 %v1648_v9, %v6835_v56  ;;  %v1644_v57 = vadd.f32 %v1640_v18, %v6837_v29 }
 0xbe7   : > { %v1593_v0 = vmul.f32 0.5, %v1589_v2  ;;  %v1590_v19 = vadd.f32 %v1577_v34, %v1535_v43  ;;  %v1649_v43 = vmul.f32 %v1648_v9, %v6836_v51  ;;  %v1642_v42 = vadd.f32 %v1638_v44, %v5373_v63 }
 0xbe8   : > { %4819 = vtanh.f32 %v1595_v26  ;;  %v1596_v1 = vmul.f32 0.5, %v1592_v25  ;;  %v1650_v2 = vmul.f32 %v1648_v9, %v5432_v50  ;;  %v1655_v12 = vadd.f32 %v1651_v14, %v1643_v58 }
 0xbe9   : > { %4821 = vtanh.f32 %v1593_v0  ;;  %v1594_v27 = vmul.f32 0.5, %v1590_v19  ;;  %v1653_v26 = vadd.f32 %v1649_v43, %v1641_v15  ;;  %v1656_v25 = vadd.f32 %v1652_v31, %v1644_v57 }
 0xbea   : > { %4823 = vtanh.f32 %v1596_v1  ;;  %v1654_v0 = vadd.f32 %v1650_v2, %v1642_v42  ;;  %v1755_v15 = vrot.slane %v5928_v54, %v6824_v47  ;;  %v1767_v57 = vrot.slane %v5936_v20, %v6824_v47 }
 0xbeb   : > { %4825 = vtanh.f32 %v1594_v27 }
 0xbec   : > { %v1758_v43 = vmul.f32 %v1755_v15, %v6830_v60  ;;  %v1756_v31 = vmul.f32 %v1755_v15, %v6831_v17  ;;  %v1759_v42 = vmul.f32 %v1755_v15, %v6832_v16  ;;  %v1757_v2 = vmul.f32 %v1755_v15, %v6833_v52 }
 0xbee   : > { %v1761_v47 = vadd.f32 %v1757_v2, %v5373_v63 }
 0xbf2   : > { %v4820_v45 = vpop.eup %4819 }
 0xbf3   : > { %v4822_v30 = vpop.eup %4821  ;;  %v1603_v23 = vmul.f32 0.5, %v4820_v45 }
 0xbf4   : > { %v4824_v10 = vpop.eup %4823  ;;  %v1601_v33 = vmul.f32 0.5, %v4822_v30 }
 0xbf5   : > { %v4826_v21 = vpop.eup %4825  ;;  %v1604_v8 = vmul.f32 0.5, %v4824_v10  ;;  %v1607_v38 = vadd.f32 0.5, %v1603_v23 }
 0xbf6   : > { %v1602_v36 = vmul.f32 0.5, %v4826_v21  ;;  %v1605_v40 = vadd.f32 0.5, %v1601_v33 }
 0xbf7   : > { %v1608_v5 = vadd.f32 0.5, %v1604_v8 }
 0xbf8   : > { %v1606_v28 = vadd.f32 0.5, %v1602_v36 }
 0xbf9   : > { %v1658_v7 = vpack.c.bf16 %v1608_v5, %v1607_v38 }
 0xbfa   : > { %v1657_v13 = vpack.c.bf16 %v1606_v28, %v1605_v40 }
 0xbfc   : > { %4345 = vmatprep.subr.bf16.mxu1 %v1657_v13 }
 0xbfd   : > { %4346 = vmatpush3.bf16.msra.mxu1 %v1657_v13 }
 0xbfe   : > { %4347 = vmatprep.subr.bf16.mxu1 %v1658_v7 }
 0xc01   : > { %4348 = vmatpush3.bf16.msra.mxu1 %v1658_v7 }
 0xc04   : > { %4350 = vmatmul.mubr.msk.bf16.vlgmr.msra.gmra.mrb[4].mxu1 %vm172_vm2, %v5596_v59 }
 0xc05   : > { %4365 = vmatprep.mubr.msk.bf16.mxu1 %vm172_vm2, %v5578_v53 }
 0xcd7   : > { %v4351_v34 = vpop.f32.mrb[4].mxu1 }
 0xcd8   : > { %v1710_v19 = vadd.f32 %v4351_v34, %v1655_v12  ;;  %v1693_v1 = vpop.f32.mrb[5].mxu1  ;;  %v1762_v12 = vadd.f32 %v1758_v43, %v6834_v6  ;;  %v1768_v34 = vmul.f32 %v1767_v57, %v6836_v51 }
 0xcd9   : > { %v1708_v27 = vadd.f32 %v1693_v1, %v1653_v26  ;;  %v4352_v45 = vpop.f32.mrb[6].mxu1  ;;  %v1770_v26 = vmul.f32 %v1767_v57, %v6835_v56  ;;  %v1769_v1 = vmul.f32 %v1767_v57, %v5432_v50 }
 0xcda   : > { %v1714_v30 = vmul.f32 0.5, %v1710_v19  ;;  %v1711_v23 = vadd.f32 %v4352_v45, %v1656_v25  ;;  %v1696_v10 = vpop.f32.mrb[7].mxu1  ;;  %v1760_v25 = vadd.f32 %v1756_v31, %v5347_v32  ;;  %v1771_v19 = vmul.f32 %v1767_v57, %v6838_v62 }
 0xcdb   : > { %v1712_v33 = vmul.f32 0.5, %v1708_v27  ;;  %v1709_v21 = vadd.f32 %v1696_v10, %v1654_v0  ;;  %v1763_v0 = vadd.f32 %v1759_v42, %v6837_v29  ;;  %v1774_v27 = vadd.f32 %v1770_v26, %v1762_v12 }
 0xcdc   : > { %4827 = vtanh.f32 %v1714_v30  ;;  %v1715_v8 = vmul.f32 0.5, %v1711_v23  ;;  %v1772_v45 = vadd.f32 %v1768_v34, %v1760_v25  ;;  %v1773_v10 = vadd.f32 %v1769_v1, %v1761_v47 }
 0xcdd   : > { %4829 = vtanh.f32 %v1712_v33  ;;  %v1713_v36 = vmul.f32 0.5, %v1709_v21  ;;  %v1775_v30 = vadd.f32 %v1771_v19, %v1763_v0  ;;  %v1874_v26 = vrot.slane %v5928_v54, %v6825_v37 }
 0xcde   : > { %4831 = vtanh.f32 %v1715_v8  ;;  %v1886_v34 = vrot.slane %v5936_v20, %v6825_v37 }
 0xcdf   : > { %4833 = vtanh.f32 %v1713_v36  ;;  %v1877_v25 = vmul.f32 %v1874_v26, %v6830_v60  ;;  %v1875_v0 = vmul.f32 %v1874_v26, %v6831_v17  ;;  %v1878_v19 = vmul.f32 %v1874_v26, %v6832_v16 }
 0xce0   : > { %v1876_v47 = vmul.f32 %v1874_v26, %v6833_v52 }
 0xce1   : > { %v1881_v1 = vadd.f32 %v1877_v25, %v6834_v6 }
 0xce2   : > { %v1880_v37 = vadd.f32 %v1876_v47, %v5373_v63 }
 0xce6   : > { %v4828_v38 = vpop.eup %4827 }
 0xce7   : > { %v4830_v5 = vpop.eup %4829  ;;  %v1722_v40 = vmul.f32 0.5, %v4828_v38 }
 0xce8   : > { %v4832_v28 = vpop.eup %4831  ;;  %v1720_v7 = vmul.f32 0.5, %v4830_v5 }
 0xce9   : > { %v4834_v13 = vpop.eup %4833  ;;  %v1723_v22 = vmul.f32 0.5, %v4832_v28  ;;  %v1726_v9 = vadd.f32 0.5, %v1722_v40 }
 0xcea   : > { %v1721_v61 = vmul.f32 0.5, %v4834_v13  ;;  %v1724_v18 = vadd.f32 0.5, %v1720_v7 }
 0xceb   : > { %v1727_v24 = vadd.f32 0.5, %v1723_v22 }
 0xcec   : > { %v1725_v44 = vadd.f32 0.5, %v1721_v61 }
 0xced   : > { %v1777_v58 = vpack.c.bf16 %v1727_v24, %v1726_v9 }
 0xcee   : > { %v1776_v14 = vpack.c.bf16 %v1725_v44, %v1724_v18 }
 0xcf0   : > { %4353 = vmatprep.subr.bf16.mxu0 %v1776_v14 }
 0xcf1   : > { %4354 = vmatpush3.bf16.msra.mxu0 %v1776_v14 }
 0xcf2   : > { %4355 = vmatprep.subr.bf16.mxu0 %v1777_v58 }
 0xcf5   : > { %4356 = vmatpush3.bf16.msra.mxu0 %v1777_v58 }
 0xcf8   : > { %4358 = vmatmul.mubr.msk.bf16.vlgmr.msra.gmra.mrb[8].mxu0 %vm172_vm2, %v5596_v59 }
 0xcf9   : > { %4373 = vmatprep.mubr.msk.bf16.mxu0 %vm172_vm2, %v5578_v53 }
 0xdcb   : > { %v4359_v23 = vpop.f32.mrb[8].mxu0 }
 0xdcc   : > { %v1829_v33 = vadd.f32 %v4359_v23, %v1774_v27  ;;  %v1812_v21 = vpop.f32.mrb[9].mxu0  ;;  %v1889_v27 = vmul.f32 %v1886_v34, %v6835_v56  ;;  %v1882_v23 = vadd.f32 %v1878_v19, %v6837_v29 }
 0xdcd   : > { %v1827_v8 = vadd.f32 %v1812_v21, %v1772_v45  ;;  %v4360_v36 = vpop.f32.mrb[10].mxu0  ;;  %v1879_v45 = vadd.f32 %v1875_v0, %v5347_v32 }
 0xdce   : > { %v1833_v38 = vmul.f32 0.5, %v1829_v33  ;;  %v1830_v5 = vadd.f32 %v4360_v36, %v1775_v30  ;;  %v1815_v40 = vpop.f32.mrb[11].mxu0  ;;  %v1887_v30 = vmul.f32 %v1886_v34, %v6836_v51  ;;  %v1888_v33 = vmul.f32 %v1886_v34, %v5432_v50 }
 0xdcf   : > { %v1831_v28 = vmul.f32 0.5, %v1827_v8  ;;  %v1828_v7 = vadd.f32 %v1815_v40, %v1773_v10  ;;  %v1890_v10 = vmul.f32 %v1886_v34, %v6838_v62  ;;  %v1893_v21 = vadd.f32 %v1889_v27, %v1881_v1 }
 0xdd0   : > { %4835 = vtanh.f32 %v1833_v38  ;;  %v1834_v13 = vmul.f32 0.5, %v1830_v5  ;;  %v1891_v8 = vadd.f32 %v1887_v30, %v1879_v45  ;;  %v1892_v5 = vadd.f32 %v1888_v33, %v1880_v37 }
 0xdd1   : > { %4837 = vtanh.f32 %v1831_v28  ;;  %v1832_v22 = vmul.f32 0.5, %v1828_v7  ;;  %v1894_v36 = vadd.f32 %v1890_v10, %v1882_v23  ;;  %v1993_v1 = vrot.slane %v5928_v54, %v6826_v49 }
 0xdd2   : > { %4839 = vtanh.f32 %v1834_v13  ;;  %v2005_v45 = vrot.slane %v5936_v20, %v6826_v49 }
 0xdd3   : > { %4841 = vtanh.f32 %v1832_v22  ;;  %v1996_v27 = vmul.f32 %v1993_v1, %v6830_v60  ;;  %v1994_v30 = vmul.f32 %v1993_v1, %v6831_v17  ;;  %v1997_v23 = vmul.f32 %v1993_v1, %v6832_v16 }
 0xdd4   : > { %v1995_v10 = vmul.f32 %v1993_v1, %v6833_v52  ;;  %v2008_v33 = vmul.f32 %v2005_v45, %v6835_v56 }
 0xdd5   : > { %v2000_v37 = vadd.f32 %v1996_v27, %v6834_v6 }
 0xdd6   : > { %v1999_v49 = vadd.f32 %v1995_v10, %v5373_v63  ;;  %v2112_v10 = vrot.slane %v5928_v54, %v6827_v4 }
 0xdda   : > { %v4836_v61 = vpop.eup %4835 }
 0xddb   : > { %v4838_v9 = vpop.eup %4837  ;;  %v1841_v24 = vmul.f32 0.5, %v4836_v61 }
 0xddc   : > { %v4840_v18 = vpop.eup %4839  ;;  %v1839_v44 = vmul.f32 0.5, %v4838_v9 }
 0xddd   : > { %v4842_v58 = vpop.eup %4841  ;;  %v1842_v14 = vmul.f32 0.5, %v4840_v18  ;;  %v1845_v43 = vadd.f32 0.5, %v1841_v24 }
 0xdde   : > { %v1840_v15 = vmul.f32 0.5, %v4842_v58  ;;  %v1843_v31 = vadd.f32 0.5, %v1839_v44 }
 0xddf   : > { %v1846_v57 = vadd.f32 0.5, %v1842_v14 }
 0xde0   : > { %v1844_v42 = vadd.f32 0.5, %v1840_v15 }
 0xde1   : > { %v1896_v2 = vpack.c.bf16 %v1846_v57, %v1845_v43 }
 0xde2   : > { %v1895_v12 = vpack.c.bf16 %v1844_v42, %v1843_v31 }
 0xde4   : > { %4361 = vmatprep.subr.bf16.mxu1 %v1895_v12 }
 0xde5   : > { %4362 = vmatpush3.bf16.msra.mxu1 %v1895_v12 }
 0xde6   : > { %4363 = vmatprep.subr.bf16.mxu1 %v1896_v2 }
 0xde9   : > { %4364 = vmatpush3.bf16.msra.mxu1 %v1896_v2 }
 0xdec   : > { %4366 = vmatmul.mubr.msk.bf16.vlgmr.msra.gmra.mrb[8].mxu1 %vm172_vm2, %v5596_v59 }
 0xded   : > { %4381 = vmatprep.mubr.msk.bf16.mxu1 %vm172_vm2, %v5578_v53 }
 0xebf   : > { %v4367_v38 = vpop.f32.mrb[8].mxu1 }
 0xec0   : > { %v1948_v40 = vadd.f32 %v4367_v38, %v1893_v21  ;;  %v1931_v28 = vpop.f32.mrb[9].mxu1  ;;  %v1998_v21 = vadd.f32 %v1994_v30, %v5347_v32  ;;  %v2009_v38 = vmul.f32 %v2005_v45, %v6838_v62 }
 0xec1   : > { %v1946_v7 = vadd.f32 %v1931_v28, %v1891_v8  ;;  %v4368_v13 = vpop.f32.mrb[10].mxu1  ;;  %v2006_v8 = vmul.f32 %v2005_v45, %v6836_v51 }
 0xec2   : > { %v1952_v22 = vmul.f32 0.5, %v1948_v40  ;;  %v1949_v61 = vadd.f32 %v4368_v13, %v1894_v36  ;;  %v1934_v9 = vpop.f32.mrb[11].mxu1  ;;  %v2001_v36 = vadd.f32 %v1997_v23, %v6837_v29  ;;  %v2012_v40 = vadd.f32 %v2008_v33, %v2000_v37 }
 0xec3   : > { %v1950_v24 = vmul.f32 0.5, %v1946_v7  ;;  %v1947_v18 = vadd.f32 %v1934_v9, %v1892_v5  ;;  %v2007_v5 = vmul.f32 %v2005_v45, %v5432_v50  ;;  %v2010_v28 = vadd.f32 %v2006_v8, %v1998_v21 }
 0xec4   : > { %4843 = vtanh.f32 %v1952_v22  ;;  %v1953_v44 = vmul.f32 0.5, %v1949_v61  ;;  %v2013_v7 = vadd.f32 %v2009_v38, %v2001_v36  ;;  %v2115_v37 = vmul.f32 %v2112_v10, %v6830_v60 }
 0xec5   : > { %4845 = vtanh.f32 %v1950_v24  ;;  %v1951_v58 = vmul.f32 0.5, %v1947_v18  ;;  %v2011_v22 = vadd.f32 %v2007_v5, %v1999_v49  ;;  %v2124_v33 = vrot.slane %v5936_v20, %v6827_v4 }
 0xec6   : > { %4847 = vtanh.f32 %v1953_v44  ;;  %v2113_v21 = vmul.f32 %v2112_v10, %v6831_v17  ;;  %v2116_v8 = vmul.f32 %v2112_v10, %v6832_v16  ;;  %v2114_v36 = vmul.f32 %v2112_v10, %v6833_v52 }
 0xec7   : > { %4849 = vtanh.f32 %v1951_v58  ;;  %v2119_v38 = vadd.f32 %v2115_v37, %v6834_v6  ;;  %v2127_v49 = vmul.f32 %v2124_v33, %v6835_v56  ;;  %v2128_v60 = vmul.f32 %v2124_v33, %v6838_v62 }
 0xec8   : > { %v2117_v5 = vadd.f32 %v2113_v21, %v5347_v32  ;;  %v2120_v54 = vadd.f32 %v2116_v8, %v6837_v29  ;;  %v2118_v4 = vadd.f32 %v2114_v36, %v5373_v63  ;;  %v2126_v20 = vmul.f32 %v2124_v33, %v5432_v50 }
 0xec9   : > { %v2131_v17 = vadd.f32 %v2127_v49, %v2119_v38 }
 0xece   : > { %v4844_v14 = vpop.eup %4843 }
 0xecf   : > { %v4846_v15 = vpop.eup %4845  ;;  %v1960_v43 = vmul.f32 0.5, %v4844_v14 }
 0xed0   : > { %v4848_v57 = vpop.eup %4847  ;;  %v1958_v31 = vmul.f32 0.5, %v4846_v15 }
 0xed1   : > { %v4850_v42 = vpop.eup %4849  ;;  %v1961_v2 = vmul.f32 0.5, %v4848_v57  ;;  %v1964_v26 = vadd.f32 0.5, %v1960_v43 }
 0xed2   : > { %v1959_v12 = vmul.f32 0.5, %v4850_v42  ;;  %v1962_v34 = vadd.f32 0.5, %v1958_v31 }
 0xed3   : > { %v1965_v25 = vadd.f32 0.5, %v1961_v2 }
 0xed4   : > { %v1963_v0 = vadd.f32 0.5, %v1959_v12 }
 0xed5   : > { %v2015_v19 = vpack.c.bf16 %v1965_v25, %v1964_v26 }
 0xed6   : > { %v2014_v47 = vpack.c.bf16 %v1963_v0, %v1962_v34 }
 0xed8   : > { %4369 = vmatprep.subr.bf16.mxu0 %v2014_v47 }
 0xed9   : > { %4370 = vmatpush3.bf16.msra.mxu0 %v2014_v47 }
 0xeda   : > { %4371 = vmatprep.subr.bf16.mxu0 %v2015_v19 }
 0xedd   : > { %4372 = vmatpush3.bf16.msra.mxu0 %v2015_v19 }
 0xee0   : > { %4374 = vmatmul.mubr.msk.bf16.vlgmr.msra.gmra.mrb[12].mxu0 %vm172_vm2, %v5596_v59 }
 0xfb3   : > { %v4375_v13 = vpop.f32.mrb[12].mxu0 }
 0xfb4   : > { %v2067_v61 = vadd.f32 %v4375_v13, %v2012_v40  ;;  %v2050_v9 = vpop.f32.mrb[13].mxu0  ;;  %v2125_v40 = vmul.f32 %v2124_v33, %v6836_v51 }
 0xfb5   : > { %v2065_v24 = vadd.f32 %v2050_v9, %v2010_v28  ;;  %v4376_v18 = vpop.f32.mrb[14].mxu0  ;;  %v2132_v28 = vadd.f32 %v2128_v60, %v2120_v54  ;;  %v6846_v60 = vmov %v5913_v35 }
 0xfb6   : > { %v2071_v44 = vmul.f32 0.5, %v2067_v61  ;;  %v2068_v58 = vadd.f32 %v4376_v18, %v2013_v7  ;;  %v2053_v14 = vpop.f32.mrb[15].mxu0  ;;  %v2129_v16 = vadd.f32 %v2125_v40, %v2117_v5  ;;  %v2130_v7 = vadd.f32 %v2126_v20, %v2118_v4 }
 0xfb7   : > { %v2069_v15 = vmul.f32 0.5, %v2065_v24  ;;  %v2066_v43 = vadd.f32 %v2053_v14, %v2011_v22 }
 0xfb8   : > { %4851 = vtanh.f32 %v2071_v44  ;;  %v2072_v57 = vmul.f32 0.5, %v2068_v58 }
 0xfb9   : > { %4853 = vtanh.f32 %v2069_v15  ;;  %v2070_v31 = vmul.f32 0.5, %v2066_v43 }
 0xfba   : > { %4855 = vtanh.f32 %v2072_v57 }
 0xfbb   : > { %4857 = vtanh.f32 %v2070_v31 }
 0xfc2   : > { %v4852_v42 = vpop.eup %4851 }
 0xfc3   : > { %v4854_v2 = vpop.eup %4853  ;;  %v2079_v12 = vmul.f32 0.5, %v4852_v42 }
 0xfc4   : > { %v4856_v26 = vpop.eup %4855  ;;  %v2077_v25 = vmul.f32 0.5, %v4854_v2 }
 0xfc5   : > { %v4858_v34 = vpop.eup %4857  ;;  %v2080_v0 = vmul.f32 0.5, %v4856_v26  ;;  %v2083_v47 = vadd.f32 0.5, %v2079_v12  ;;  %v6843_v12 = vmov %v6829_v3 }
 0xfc6   : > { %v2078_v19 = vmul.f32 0.5, %v4858_v34  ;;  %v2081_v27 = vadd.f32 0.5, %v2077_v25 }
 0xfc7   : > { %v2084_v1 = vadd.f32 0.5, %v2080_v0 }
 0xfc8   : > { %v2082_v45 = vadd.f32 0.5, %v2078_v19 }
 0xfc9   : > { %v2134_v30 = vpack.c.bf16 %v2084_v1, %v2083_v47 }
 0xfca   : > { %v2133_v23 = vpack.c.bf16 %v2082_v45, %v2081_v27 }
 0xfcc   : > { %4377 = vmatprep.subr.bf16.mxu1 %v2133_v23 }
 0xfcd   : > { %4378 = vmatpush3.bf16.msra.mxu1 %v2133_v23 }
 0xfce   : > { %4379 = vmatprep.subr.bf16.mxu1 %v2134_v30 }
 0xfd1   : > { %4380 = vmatpush3.bf16.msra.mxu1 %v2134_v30 }
 0xfd4   : > { %4382 = vmatmul.mubr.msk.bf16.vlgmr.msra.gmra.mrb[12].mxu1 %vm172_vm2, %v5596_v59 }
0x10a7   : > { %v4383_v52 = vpop.f32.mrb[12].mxu1 }
0x10a8   : > { %v2186_v6 = vadd.f32 %v4383_v52, %v2131_v17  ;;  %v2169_v13 = vpop.f32.mrb[13].mxu1 }
0x10a9   : > { %v2184_v56 = vadd.f32 %v2169_v13, %v2129_v16  ;;  %v4384_v22 = vpop.f32.mrb[14].mxu1 }
0x10aa   : > { %v2190_v61 = vmul.f32 0.5, %v2186_v6  ;;  %v2187_v9 = vadd.f32 %v4384_v22, %v2132_v28  ;;  %v2172_v51 = vpop.f32.mrb[15].mxu1 }
0x10ab   : > { %v2188_v24 = vmul.f32 0.5, %v2184_v56  ;;  %v2185_v29 = vadd.f32 %v2172_v51, %v2130_v7 }
0x10ac   : > { %4859 = vtanh.f32 %v2190_v61  ;;  %v2191_v62 = vmul.f32 0.5, %v2187_v9 }
0x10ad   : > { %4861 = vtanh.f32 %v2188_v24  ;;  %v2189_v18 = vmul.f32 0.5, %v2185_v29 }
0x10ae   : > { %4863 = vtanh.f32 %v2191_v62 }
0x10af   : > { %4865 = vtanh.f32 %v2189_v18 }
0x10b6   : > { %v4860_v44 = vpop.eup %4859 }
0x10b7   : > { %v4862_v58 = vpop.eup %4861  ;;  %v2198_v14 = vmul.f32 0.5, %v4860_v44 }
0x10b8   : > { %v4864_v15 = vpop.eup %4863  ;;  %v2196_v43 = vmul.f32 0.5, %v4862_v58  ;;  %1235 = sbr.rel (!%p1233_p0) target bundleno = 2334 (0x91e), region = 105 }
0x10b9   : > { %v4866_v57 = vpop.eup %4865  ;;  %v2202_v31 = vadd.f32 0.5, %v2198_v14   ;;  %v2199_v42 = vmul.f32 0.5, %v4864_v15  ;;  %v6844_v14 = vmov %v5919_v11 }
0x10ba   : > { %v2200_v26 = vadd.f32 0.5, %v2196_v43   ;;  %v2197_v2 = vmul.f32 0.5, %v4866_v57 }
0x10bb   : > { %v2203_v25 = vadd.f32 0.5, %v2199_v42   ;;  %v6840_v7 = vmov %v2202_v31 }
0x10bc   : > { %v2201_v34 = vadd.f32 0.5, %v2197_v2   ;;  %v6842_v22 = vmov %v2200_v26  ;;  %v6845_v2 = vmov %v6828_v41 }
0x10bd   : > { %v6839_v42 = vmov %v2203_v25 }
0x10be   : > { %v6841_v9 = vmov %v2201_v34 }
0x10bf LB: > { %4389 = vmatprep.mubr.msk.bf16.mxu0 %vm172_vm2, %v5578_v53  ;;  %4397 = vmatprep.mubr.msk.bf16.mxu1 %vm172_vm2, %v5578_v53  ;;  %v2274_v12 = vpack.c.bf16 %v5075_v34, %v5079_v26  ;;  %v2275_v0 = vpack.c.bf16 %v5067_v25, %v5071_v31  ;;  %s6161_s11 = sshll.u32 %s5099_s22, 3  ;;  %v6847_v27 = vld [vmem:[#allocation31_spill] sm:$0xff]  ;;  %v6849_v37 = vld [vmem:[#allocation32_spill] sm:$0xff]  ;;  %v6850_v21 = vld [vmem:[#allocation25_spill] sm:$0xff]  ;;  %vm2345_vm3 = vcmask 15360   ;;  %s2209_s22 = sadd.s32 1, %s5099_s22   ;;  %s5099_s22 = sphi %s6131_s22, %s2209_s22   ;;  %v5095_v35 = vphi %v5913_v35, %v6461_v35   ;;  %v5091_v41 = vphi %v6828_v41, %v6465_v41   ;;  %v5087_v11 = vphi %v5919_v11, %v6470_v11   ;;  %v5083_v3 = vphi %v6829_v3, %v6475_v3   ;;  %v5079_v26 = vphi %v2200_v26, %v3231_v26   ;;  %v5075_v34 = vphi %v2201_v34, %v3232_v34   ;;  %v5071_v31 = vphi %v2202_v31, %v6873_v31   ;;  %v5067_v25 = vphi %v2203_v25, %v3234_v25  }
0x10c0   : > { %s6167_s24 = scalar_lea.vmem %s6702_s0, %s6161_s11  ;;  %s6176_s8 = scalar_lea.vmem %s6704_s2, %s6161_s11  ;;  %v6848_v23 = vld [vmem:[#allocation23_spill] sm:$0xff]  ;;  %v6851_v36 = vld [vmem:[#allocation34_spill] sm:$0xff]  ;;  %v6852_v49 = vld [vmem:[#allocation33_spill] sm:$0xff] }
0x10c1   : > { %4385 = vmatprep.subr.bf16.mxu0 %v2274_v12  ;;  %v6170_v19 = vld [vmem:[%s6167_s24 + $0x20] sm:$0xff]  ;;  %v6853_v54 = vld [vmem:[#allocation27_spill] sm:$0xff]  ;;  %s3831_s28 = scalar_lea.vmem %s6703_s1, %s6161_s11  ;;  %s3454_s9 = scalar_lea.vmem [#allocation2], %s6161_s11 }
0x10c2   : > { %4386 = vmatpush3.bf16.msra.mxu0 %v2274_v12  ;;  %v2253_v47 = vrot.slane %v6170_v19, %v5277_v39  ;;  %v6181_v1 = vld [vmem:[%s6176_s8 + $0x20] sm:$0xff]  ;;  %v6855_v17 = vld [vmem:[#allocation35_spill] sm:$0xff]  ;;  %p2206_p1 = scmp.ge.s32.totalorder %s2209_s22, 8  }
0x10c3   : > { %4387 = vmatprep.subr.bf16.mxu0 %v2275_v0  ;;  %v2265_v30 = vrot.slane %v6181_v1, %v5277_v39  ;;  %v6854_v4 = vld [vmem:[#allocation36_spill] sm:$0xff]  ;;  %vm3665_vm4 = vcmask (%p2206_p1), 523264   ;;  %vm3606_vm5 = vcmask (%p2206_p1), 1046528   ;;  %vm3644_vm6 = vcmask (%p2206_p1), 14336   ;;  %s5106_s16 = smov (%p2206_p1), [#allocation6]  }
0x10c4   : > { %v2256_v45 = vmul.f32 %v2253_v47, %v6847_v27  ;;  %v2254_v10 = vmul.f32 %v2253_v47, %v6848_v23  ;;  %v2257_v33 = vmul.f32 %v2253_v47, %v6849_v37  ;;  %v2255_v8 = vmul.f32 %v2253_v47, %v6850_v21  ;;  %s3809_s3 = sshll.u32 (%p2206_p1), %s5106_s16, 4  ;;  %s3810_s3 = int_to_ptr.vmem [resolvable:$true] %s3809_s3 }
0x10c5   : > { %v2268_v5 = vmul.f32 %v2265_v30, %v6852_v49  ;;  %v2266_v60 = vmul.f32 %v2265_v30, %v6853_v54  ;;  %v2269_v16 = vmul.f32 %v2265_v30, %v6855_v17  ;;  %v2267_v52 = vmul.f32 %v2265_v30, %v5432_v50  ;;  %s4933_s17 = scalar_lea.vmem (%p2206_p1), %s3810_s3, 16  ;;  %s4937_s18 = scalar_lea.vmem (%p2206_p1), %s3810_s3, 32 }
0x10c6   : > { %4388 = vmatpush3.bf16.msra.mxu0 %v2275_v0  ;;  %v2260_v38 = vadd.f32 %v2256_v45, %v6851_v36  ;;  %v2258_v40 = vadd.f32 %v2254_v10, %v5347_v32  ;;  %v2261_v20 = vadd.f32 %v2257_v33, %v6854_v4  ;;  %v2259_v28 = vadd.f32 %v2255_v8, %v5373_v63  ;;  %v6856_v33 = vld [vmem:[#allocation10_spill] sm:$0xff]  ;;  %p4934_p2 = scmp.ne.s32.totalorder (%p2206_p1), %s3810_s3, %s4933_s17  ;;  %p4938_p3 = scmp.lt.s32.totalorder (%p2206_p1), %s3810_s3, %s3810_s3 }
0x10c7   : > { %v2381_v8 = vrot.slane %v6170_v19, %v6856_v33  ;;  %vm3655_vm7 = vcmask (%p2206_p1), 8192   ;;  %p4939_p4 = scmp.lt.s32.totalorder (%p2206_p1), %s4937_s18, %s4933_s17 }
0x10c8   : > { %v2272_v7 = vadd.f32 %v2268_v5, %v2260_v38  ;;  %v2270_v6 = vadd.f32 %v2266_v60, %v2258_v40  ;;  %v2273_v13 = vadd.f32 %v2269_v16, %v2261_v20  ;;  %v2271_v22 = vadd.f32 %v2267_v52, %v2259_v28 }
0x10c9   : > { %4390 = vmatmul.mubr.msk.bf16.vlgmr.msra.gmra.mrb[0].mxu0 %vm172_vm2, %v5596_v59  ;;  %v2384_v38 = vmul.f32 %v2381_v8, %v6847_v27  ;;  %v2393_v5 = vrot.slane %v6181_v1, %v6856_v33  ;;  %v2382_v40 = vmul.f32 %v2381_v8, %v6848_v23  ;;  %v2385_v60 = vmul.f32 %v2381_v8, %v6849_v37  ;;  %p4940_p5 = por (%p2206_p1), %p4939_p4, %p4938_p3 }
0x10ca   : > { %4405 = vmatprep.mubr.msk.bf16.mxu0 %vm172_vm2, %v5578_v53  ;;  %v2383_v20 = vmul.f32 %v2381_v8, %v6850_v21 }
0x10cb   : > { %v2388_v16 = vadd.f32 %v2384_v38, %v6851_v36  ;;  %v2396_v28 = vmul.f32 %v2393_v5, %v6852_v49  ;;  %v2386_v52 = vadd.f32 %v2382_v40, %v5347_v32  ;;  %p4941_p6 = pnand (%p2206_p1), %p4940_p5, %p4934_p2 }
0x119c   : > { %v4391_v56 = vpop.f32.mrb[0].mxu0 }
0x119d   : > { %v2327_v61 = vadd.f32 %v4391_v56, %v2272_v7  ;;  %v2310_v9 = vpop.f32.mrb[1].mxu0  ;;  %v2394_v7 = vmul.f32 %v2393_v5, %v6853_v54  ;;  %v2387_v56 = vadd.f32 %v2383_v20, %v5373_v63  ;;  %v6857_v20 = vld [vmem:[#allocation11_spill] sm:$0xff] }
0x119e   : > { %v2325_v51 = vadd.f32 %v2310_v9, %v2270_v6  ;;  %v4392_v24 = vpop.f32.mrb[2].mxu0  ;;  %v2389_v6 = vadd.f32 %v2385_v60, %v6854_v4 }
0x119f   : > { %v2331_v29 = vmul.f32 0.5, %v2327_v61  ;;  %v2328_v62 = vadd.f32 %v4392_v24, %v2273_v13  ;;  %v2313_v18 = vpop.f32.mrb[3].mxu0  ;;  %v2397_v13 = vmul.f32 %v2393_v5, %v6855_v17  ;;  %v2400_v61 = vadd.f32 %v2396_v28, %v2388_v16 }
0x11a0   : > { %v2329_v44 = vmul.f32 0.5, %v2325_v51  ;;  %v2326_v58 = vadd.f32 %v2313_v18, %v2271_v22  ;;  %v2395_v22 = vmul.f32 %v2393_v5, %v5432_v50  ;;  %v2398_v9 = vadd.f32 %v2394_v7, %v2386_v52 }
0x11a1   : > { %4867 = vtanh.f32 %v2331_v29  ;;  %v2332_v14 = vmul.f32 0.5, %v2328_v62  ;;  %v2401_v51 = vadd.f32 %v2397_v13, %v2389_v6  ;;  %v2508_v16 = vrot.slane %v6170_v19, %v6857_v20 }
0x11a2   : > { %4869 = vtanh.f32 %v2329_v44  ;;  %v2330_v15 = vmul.f32 0.5, %v2326_v58  ;;  %v2399_v29 = vadd.f32 %v2395_v22, %v2387_v56  ;;  %v2520_v52 = vrot.slane %v6181_v1, %v6857_v20 }
0x11a3   : > { %4871 = vtanh.f32 %v2332_v14  ;;  %v2511_v28 = vmul.f32 %v2508_v16, %v6847_v27  ;;  %v2509_v7 = vmul.f32 %v2508_v16, %v6848_v23  ;;  %v2512_v6 = vmul.f32 %v2508_v16, %v6849_v37 }
0x11a4   : > { %4873 = vtanh.f32 %v2330_v15  ;;  %v2510_v13 = vmul.f32 %v2508_v16, %v6850_v21  ;;  %v2523_v22 = vmul.f32 %v2520_v52, %v6852_v49 }
0x11a5   : > { %v2515_v56 = vadd.f32 %v2511_v28, %v6851_v36 }
0x11ab   : > { %v4868_v43 = vpop.eup %4867 }
0x11ac   : > { %v4870_v57 = vpop.eup %4869  ;;  %v2339_v31 = vmul.f32 0.5, %v4868_v43 }
0x11ad   : > { %v4872_v42 = vpop.eup %4871  ;;  %v2337_v26 = vmul.f32 0.5, %v4870_v57 }
0x11ae   : > { %v4874_v2 = vpop.eup %4873  ;;  %v2343_v25 = vadd.f32 0.5, %v2339_v31  ;;  %v2340_v34 = vmul.f32 0.5, %v4872_v42 }
0x11af   : > { %v2338_v12 = vmul.f32 0.5, %v4874_v2  ;;  %v2341_v0 = vadd.f32 0.5, %v2337_v26 }
0x11b0   : > { %2352 = vst.msk [vmem:[#allocation4 + $0x10] sm:$0xff] %vm2345_vm3, %v2343_v25  ;;  %v2344_v47 = vadd.f32 0.5, %v2340_v34 }
0x11b1   : > { %v2342_v45 = vadd.f32 0.5, %v2338_v12  ;;  %2350 = vst.msk [vmem:[#allocation4] sm:$0xff] %vm2345_vm3, %v2341_v0 }
0x11b2   : > { %2353 = vst.msk [vmem:[#allocation4 + $0x18] sm:$0xff] %vm2345_vm3, %v2344_v47  ;;  %v2403_v30 = vpack.c.bf16 %v2344_v47, %v2343_v25 }
0x11b3   : > { %2351 = vst.msk [vmem:[#allocation4 + $0x8] sm:$0xff] %vm2345_vm3, %v2342_v45  ;;  %v2402_v10 = vpack.c.bf16 %v2342_v45, %v2341_v0 }
0x11b5   : > { %4393 = vmatprep.subr.bf16.mxu1 %v2402_v10 }
0x11b6   : > { %4394 = vmatpush3.bf16.msra.mxu1 %v2402_v10 }
0x11b7   : > { %4395 = vmatprep.subr.bf16.mxu1 %v2403_v30 }
0x11ba   : > { %4396 = vmatpush3.bf16.msra.mxu1 %v2403_v30 }
0x11bd   : > { %4398 = vmatmul.mubr.msk.bf16.vlgmr.msra.gmra.mrb[0].mxu1 %vm172_vm2, %v5596_v59 }
0x11be   : > { %4413 = vmatprep.mubr.msk.bf16.mxu1 %vm172_vm2, %v5578_v53 }
0x1290   : > { %v4399_v24 = vpop.f32.mrb[0].mxu1 }
0x1291   : > { %v2455_v62 = vadd.f32 %v4399_v24, %v2400_v61  ;;  %v2438_v18 = vpop.f32.mrb[1].mxu1  ;;  %v2513_v61 = vadd.f32 %v2509_v7, %v5347_v32  ;;  %v2524_v24 = vmul.f32 %v2520_v52, %v6855_v17 }
0x1292   : > { %v2453_v44 = vadd.f32 %v2438_v18, %v2398_v9  ;;  %v4400_v58 = vpop.f32.mrb[2].mxu1  ;;  %v2521_v9 = vmul.f32 %v2520_v52, %v6853_v54  ;;  %v2527_v18 = vadd.f32 %v2523_v22, %v2515_v56  ;;  %v6858_v56 = vld [vmem:[#allocation12_spill] sm:$0xff] }
0x1293   : > { %v2459_v14 = vmul.f32 0.5, %v2455_v62  ;;  %v2456_v15 = vadd.f32 %v4400_v58, %v2401_v51  ;;  %v2441_v43 = vpop.f32.mrb[3].mxu1  ;;  %v2516_v51 = vadd.f32 %v2512_v6, %v6854_v4  ;;  %v2522_v62 = vmul.f32 %v2520_v52, %v5432_v50 }
0x1294   : > { %v2457_v57 = vmul.f32 0.5, %v2453_v44  ;;  %v2454_v31 = vadd.f32 %v2441_v43, %v2399_v29  ;;  %v2514_v29 = vadd.f32 %v2510_v13, %v5373_v63  ;;  %v2525_v44 = vadd.f32 %v2521_v9, %v2513_v61 }
0x1295   : > { %4875 = vtanh.f32 %v2459_v14  ;;  %v2460_v42 = vmul.f32 0.5, %v2456_v15  ;;  %v2528_v58 = vadd.f32 %v2524_v24, %v2516_v51  ;;  %v2635_v22 = vrot.slane %v6170_v19, %v6858_v56 }
0x1296   : > { %4877 = vtanh.f32 %v2457_v57  ;;  %v2458_v26 = vmul.f32 0.5, %v2454_v31  ;;  %v2526_v15 = vadd.f32 %v2522_v62, %v2514_v29  ;;  %v2647_v9 = vrot.slane %v6181_v1, %v6858_v56 }
0x1297   : > { %4879 = vtanh.f32 %v2460_v42  ;;  %v2638_v61 = vmul.f32 %v2635_v22, %v6847_v27  ;;  %v2636_v51 = vmul.f32 %v2635_v22, %v6848_v23  ;;  %v2639_v24 = vmul.f32 %v2635_v22, %v6849_v37 }
0x1298   : > { %4881 = vtanh.f32 %v2458_v26  ;;  %v2637_v29 = vmul.f32 %v2635_v22, %v6850_v21 }
0x1299   : > { %v2642_v62 = vadd.f32 %v2638_v61, %v6851_v36 }
0x129f   : > { %v4876_v2 = vpop.eup %4875 }
0x12a0   : > { %v4878_v25 = vpop.eup %4877  ;;  %v2467_v34 = vmul.f32 0.5, %v4876_v2 }
0x12a1   : > { %v4880_v12 = vpop.eup %4879  ;;  %v2465_v0 = vmul.f32 0.5, %v4878_v25 }
0x12a2   : > { %v4882_v47 = vpop.eup %4881  ;;  %v2471_v45 = vadd.f32 0.5, %v2467_v34  ;;  %v2468_v30 = vmul.f32 0.5, %v4880_v12 }
0x12a3   : > { %v2469_v10 = vadd.f32 0.5, %v2465_v0  ;;  %v2466_v8 = vmul.f32 0.5, %v4882_v47 }
0x12a4   : > { %2479 = vst.msk [vmem:[#allocation4 + $0x30] sm:$0xff] %vm2345_vm3, %v2471_v45  ;;  %v2472_v38 = vadd.f32 0.5, %v2468_v30 }
0x12a5   : > { %2477 = vst.msk [vmem:[#allocation4 + $0x20] sm:$0xff] %vm2345_vm3, %v2469_v10  ;;  %v2470_v5 = vadd.f32 0.5, %v2466_v8 }
0x12a6   : > { %2480 = vst.msk [vmem:[#allocation4 + $0x38] sm:$0xff] %vm2345_vm3, %v2472_v38  ;;  %v2530_v40 = vpack.c.bf16 %v2472_v38, %v2471_v45 }
0x12a7   : > { %2478 = vst.msk [vmem:[#allocation4 + $0x28] sm:$0xff] %vm2345_vm3, %v2470_v5  ;;  %v2529_v60 = vpack.c.bf16 %v2470_v5, %v2469_v10 }
0x12a9   : > { %4401 = vmatprep.subr.bf16.mxu0 %v2529_v60 }
0x12aa   : > { %4402 = vmatpush3.bf16.msra.mxu0 %v2529_v60 }
0x12ab   : > { %4403 = vmatprep.subr.bf16.mxu0 %v2530_v40 }
0x12ae   : > { %4404 = vmatpush3.bf16.msra.mxu0 %v2530_v40 }
0x12b1   : > { %4406 = vmatmul.mubr.msk.bf16.vlgmr.msra.gmra.mrb[4].mxu0 %vm172_vm2, %v5596_v59 }
0x12b2   : > { %4421 = vmatprep.mubr.msk.bf16.mxu0 %vm172_vm2, %v5578_v53 }
0x1384   : > { %v4407_v14 = vpop.f32.mrb[4].mxu0 }
0x1385   : > { %v2582_v43 = vadd.f32 %v4407_v14, %v2527_v18  ;;  %v2565_v57 = vpop.f32.mrb[5].mxu0  ;;  %v2650_v18 = vmul.f32 %v2647_v9, %v6852_v49  ;;  %v2643_v14 = vadd.f32 %v2639_v24, %v6854_v4 }
0x1386   : > { %v2580_v31 = vadd.f32 %v2565_v57, %v2525_v44  ;;  %v4408_v42 = vpop.f32.mrb[6].mxu0  ;;  %v2640_v44 = vadd.f32 %v2636_v51, %v5347_v32  ;;  %v2649_v57 = vmul.f32 %v2647_v9, %v5432_v50 }
0x1387   : > { %v2586_v26 = vmul.f32 0.5, %v2582_v43  ;;  %v2583_v2 = vadd.f32 %v4408_v42, %v2528_v58  ;;  %v2568_v25 = vpop.f32.mrb[7].mxu0  ;;  %v2648_v58 = vmul.f32 %v2647_v9, %v6853_v54  ;;  %v2641_v43 = vadd.f32 %v2637_v29, %v5373_v63 }
0x1388   : > { %v2584_v34 = vmul.f32 0.5, %v2580_v31  ;;  %v2581_v12 = vadd.f32 %v2568_v25, %v2526_v15  ;;  %v2651_v15 = vmul.f32 %v2647_v9, %v6855_v17  ;;  %v2654_v31 = vadd.f32 %v2650_v18, %v2642_v62  ;;  %v6859_v18 = vld [vmem:[#allocation13_spill] sm:$0xff] }
0x1389   : > { %4883 = vtanh.f32 %v2586_v26  ;;  %v2587_v0 = vmul.f32 0.5, %v2583_v2  ;;  %v2652_v42 = vadd.f32 %v2648_v58, %v2640_v44  ;;  %v2653_v25 = vadd.f32 %v2649_v57, %v2641_v43 }
0x138a   : > { %4885 = vtanh.f32 %v2584_v34  ;;  %v2585_v47 = vmul.f32 0.5, %v2581_v12  ;;  %v2655_v26 = vadd.f32 %v2651_v15, %v2643_v14  ;;  %v2762_v44 = vrot.slane %v6170_v19, %v6859_v18 }
0x138b   : > { %4887 = vtanh.f32 %v2587_v0  ;;  %v2774_v14 = vrot.slane %v6181_v1, %v6859_v18 }
0x138c   : > { %4889 = vtanh.f32 %v2585_v47  ;;  %v2765_v58 = vmul.f32 %v2762_v44, %v6847_v27  ;;  %v2763_v15 = vmul.f32 %v2762_v44, %v6848_v23  ;;  %v2766_v43 = vmul.f32 %v2762_v44, %v6849_v37 }
0x138d   : > { %v2764_v57 = vmul.f32 %v2762_v44, %v6850_v21 }
0x1393   : > { %v4884_v45 = vpop.eup %4883 }
0x1394   : > { %v4886_v30 = vpop.eup %4885  ;;  %v2594_v10 = vmul.f32 0.5, %v4884_v45 }
0x1395   : > { %v4888_v8 = vpop.eup %4887  ;;  %v2592_v38 = vmul.f32 0.5, %v4886_v30 }
0x1396   : > { %v4890_v5 = vpop.eup %4889  ;;  %v2598_v40 = vadd.f32 0.5, %v2594_v10  ;;  %v2595_v60 = vmul.f32 0.5, %v4888_v8 }
0x1397   : > { %v2596_v16 = vadd.f32 0.5, %v2592_v38  ;;  %v2593_v28 = vmul.f32 0.5, %v4890_v5 }
0x1398   : > { %2606 = vst.msk [vmem:[#allocation4 + $0x50] sm:$0xff] %vm2345_vm3, %v2598_v40  ;;  %v2599_v52 = vadd.f32 0.5, %v2595_v60 }
0x1399   : > { %2604 = vst.msk [vmem:[#allocation4 + $0x40] sm:$0xff] %vm2345_vm3, %v2596_v16  ;;  %v2597_v7 = vadd.f32 0.5, %v2593_v28 }
0x139a   : > { %2607 = vst.msk [vmem:[#allocation4 + $0x58] sm:$0xff] %vm2345_vm3, %v2599_v52  ;;  %v2657_v6 = vpack.c.bf16 %v2599_v52, %v2598_v40 }
0x139b   : > { %2605 = vst.msk [vmem:[#allocation4 + $0x48] sm:$0xff] %vm2345_vm3, %v2597_v7  ;;  %v2656_v13 = vpack.c.bf16 %v2597_v7, %v2596_v16 }
0x139d   : > { %4409 = vmatprep.subr.bf16.mxu1 %v2656_v13 }
0x139e   : > { %4410 = vmatpush3.bf16.msra.mxu1 %v2656_v13 }
0x139f   : > { %4411 = vmatprep.subr.bf16.mxu1 %v2657_v6 }
0x13a2   : > { %4412 = vmatpush3.bf16.msra.mxu1 %v2657_v6 }
0x13a5   : > { %4414 = vmatmul.mubr.msk.bf16.vlgmr.msra.gmra.mrb[4].mxu1 %vm172_vm2, %v5596_v59 }
0x13a6   : > { %4429 = vmatprep.mubr.msk.bf16.mxu1 %vm172_vm2, %v5578_v53 }
0x1478   : > { %v4415_v2 = vpop.f32.mrb[4].mxu1 }
0x1479   : > { %v2709_v34 = vadd.f32 %v4415_v2, %v2654_v31  ;;  %v2692_v12 = vpop.f32.mrb[5].mxu1  ;;  %v2769_v31 = vadd.f32 %v2765_v58, %v6851_v36  ;;  %v2775_v2 = vmul.f32 %v2774_v14, %v6853_v54 }
0x147a   : > { %v2707_v0 = vadd.f32 %v2692_v12, %v2652_v42  ;;  %v4416_v47 = vpop.f32.mrb[6].mxu1  ;;  %v2777_v42 = vmul.f32 %v2774_v14, %v6852_v49  ;;  %v2768_v12 = vadd.f32 %v2764_v57, %v5373_v63 }
0x147b   : > { %v2713_v45 = vmul.f32 0.5, %v2709_v34  ;;  %v2710_v30 = vadd.f32 %v4416_v47, %v2655_v26  ;;  %v2695_v10 = vpop.f32.mrb[7].mxu1  ;;  %v2767_v26 = vadd.f32 %v2763_v15, %v5347_v32  ;;  %v2778_v34 = vmul.f32 %v2774_v14, %v6855_v17 }
0x147c   : > { %v2711_v8 = vmul.f32 0.5, %v2707_v0  ;;  %v2708_v38 = vadd.f32 %v2695_v10, %v2653_v25  ;;  %v2770_v25 = vadd.f32 %v2766_v43, %v6854_v4  ;;  %v2776_v0 = vmul.f32 %v2774_v14, %v5432_v50 }
0x147d   : > { %4891 = vtanh.f32 %v2713_v45  ;;  %v2714_v5 = vmul.f32 0.5, %v2710_v30  ;;  %v2781_v47 = vadd.f32 %v2777_v42, %v2769_v31  ;;  %v2779_v45 = vadd.f32 %v2775_v2, %v2767_v26  ;;  %v6860_v26 = vld [vmem:[#allocation14_spill] sm:$0xff] }
0x147e   : > { %4893 = vtanh.f32 %v2711_v8  ;;  %v2712_v40 = vmul.f32 0.5, %v2708_v38  ;;  %v2782_v30 = vadd.f32 %v2778_v34, %v2770_v25  ;;  %v2780_v8 = vadd.f32 %v2776_v0, %v2768_v12 }
0x147f   : > { %4895 = vtanh.f32 %v2714_v5  ;;  %v2889_v2 = vrot.slane %v6170_v19, %v6860_v26  ;;  %v2901_v34 = vrot.slane %v6181_v1, %v6860_v26 }
0x1480   : > { %4897 = vtanh.f32 %v2712_v40 }
0x1481   : > { %v2892_v25 = vmul.f32 %v2889_v2, %v6847_v27  ;;  %v2890_v12 = vmul.f32 %v2889_v2, %v6848_v23  ;;  %v2893_v0 = vmul.f32 %v2889_v2, %v6849_v37 }
0x1487   : > { %v4892_v60 = vpop.eup %4891 }
0x1488   : > { %v4894_v16 = vpop.eup %4893  ;;  %v2721_v28 = vmul.f32 0.5, %v4892_v60 }
0x1489   : > { %v4896_v52 = vpop.eup %4895  ;;  %v2719_v7 = vmul.f32 0.5, %v4894_v16 }
0x148a   : > { %v4898_v6 = vpop.eup %4897  ;;  %v2725_v13 = vadd.f32 0.5, %v2721_v28  ;;  %v2722_v22 = vmul.f32 0.5, %v4896_v52 }
0x148b   : > { %v2723_v61 = vadd.f32 0.5, %v2719_v7  ;;  %v2720_v9 = vmul.f32 0.5, %v4898_v6 }
0x148c   : > { %2733 = vst.msk [vmem:[#allocation4 + $0x70] sm:$0xff] %vm2345_vm3, %v2725_v13  ;;  %v2726_v51 = vadd.f32 0.5, %v2722_v22 }
0x148d   : > { %2731 = vst.msk [vmem:[#allocation4 + $0x60] sm:$0xff] %vm2345_vm3, %v2723_v61  ;;  %v2724_v24 = vadd.f32 0.5, %v2720_v9 }
0x148e   : > { %2734 = vst.msk [vmem:[#allocation4 + $0x78] sm:$0xff] %vm2345_vm3, %v2726_v51  ;;  %v2784_v29 = vpack.c.bf16 %v2726_v51, %v2725_v13 }
0x148f   : > { %2732 = vst.msk [vmem:[#allocation4 + $0x68] sm:$0xff] %vm2345_vm3, %v2724_v24  ;;  %v2783_v62 = vpack.c.bf16 %v2724_v24, %v2723_v61 }
0x1491   : > { %4417 = vmatprep.subr.bf16.mxu0 %v2783_v62 }
0x1492   : > { %4418 = vmatpush3.bf16.msra.mxu0 %v2783_v62 }
0x1493   : > { %4419 = vmatprep.subr.bf16.mxu0 %v2784_v29 }
0x1496   : > { %4420 = vmatpush3.bf16.msra.mxu0 %v2784_v29 }
0x1499   : > { %4422 = vmatmul.mubr.msk.bf16.vlgmr.msra.gmra.mrb[8].mxu0 %vm172_vm2, %v5596_v59 }
0x149a   : > { %4437 = vmatprep.mubr.msk.bf16.mxu0 %vm172_vm2, %v5578_v53 }
0x156c   : > { %v4423_v10 = vpop.f32.mrb[8].mxu0 }
0x156d   : > { %v2836_v38 = vadd.f32 %v4423_v10, %v2781_v47  ;;  %v2819_v5 = vpop.f32.mrb[9].mxu0  ;;  %v2891_v47 = vmul.f32 %v2889_v2, %v6850_v21  ;;  %v2894_v10 = vadd.f32 %v2890_v12, %v5347_v32 }
0x156e   : > { %v2834_v40 = vadd.f32 %v2819_v5, %v2779_v45  ;;  %v4424_v60 = vpop.f32.mrb[10].mxu0  ;;  %v2896_v45 = vadd.f32 %v2892_v25, %v6851_v36  ;;  %v2905_v5 = vmul.f32 %v2901_v34, %v6855_v17 }
0x156f   : > { %v2840_v16 = vmul.f32 0.5, %v2836_v38  ;;  %v2837_v28 = vadd.f32 %v4424_v60, %v2782_v30  ;;  %v2822_v52 = vpop.f32.mrb[11].mxu0  ;;  %v2904_v30 = vmul.f32 %v2901_v34, %v6852_v49  ;;  %v2897_v38 = vadd.f32 %v2893_v0, %v6854_v4 }
0x1570   : > { %v2838_v7 = vmul.f32 0.5, %v2834_v40  ;;  %v2835_v6 = vadd.f32 %v2822_v52, %v2780_v8  ;;  %v2902_v8 = vmul.f32 %v2901_v34, %v6853_v54  ;;  %v2895_v40 = vadd.f32 %v2891_v47, %v5373_v63 }
0x1571   : > { %4899 = vtanh.f32 %v2840_v16  ;;  %v2841_v13 = vmul.f32 0.5, %v2837_v28  ;;  %v2903_v60 = vmul.f32 %v2901_v34, %v5432_v50  ;;  %v2908_v16 = vadd.f32 %v2904_v30, %v2896_v45 }
0x1572   : > { %4901 = vtanh.f32 %v2838_v7  ;;  %v2839_v22 = vmul.f32 0.5, %v2835_v6  ;;  %v2906_v28 = vadd.f32 %v2902_v8, %v2894_v10  ;;  %v2909_v52 = vadd.f32 %v2905_v5, %v2897_v38 }
0x1573   : > { %4903 = vtanh.f32 %v2841_v13  ;;  %v2907_v6 = vadd.f32 %v2903_v60, %v2895_v40  ;;  %v3276_v40 = vld [vmem:[#allocation4 + $0x8] sm:$0xff] }
0x1574   : > { %4905 = vtanh.f32 %v2839_v22 }
0x157b   : > { %v4900_v61 = vpop.eup %4899 }
0x157c   : > { %v4902_v9 = vpop.eup %4901  ;;  %v2848_v51 = vmul.f32 0.5, %v4900_v61 }
0x157d   : > { %v4904_v24 = vpop.eup %4903  ;;  %v2846_v29 = vmul.f32 0.5, %v4902_v9 }
0x157e   : > { %v4906_v62 = vpop.eup %4905  ;;  %v2852_v44 = vadd.f32 0.5, %v2848_v51  ;;  %v2849_v58 = vmul.f32 0.5, %v4904_v24 }
0x157f   : > { %v2850_v14 = vadd.f32 0.5, %v2846_v29  ;;  %v2847_v15 = vmul.f32 0.5, %v4906_v62 }
0x1580   : > { %2860 = vst.msk [vmem:[#allocation4 + $0x90] sm:$0xff] %vm2345_vm3, %v2852_v44  ;;  %v2853_v43 = vadd.f32 0.5, %v2849_v58 }
0x1581   : > { %2858 = vst.msk [vmem:[#allocation4 + $0x80] sm:$0xff] %vm2345_vm3, %v2850_v14  ;;  %v2851_v57 = vadd.f32 0.5, %v2847_v15 }
0x1582   : > { %2861 = vst.msk [vmem:[#allocation4 + $0x98] sm:$0xff] %vm2345_vm3, %v2853_v43  ;;  %v2911_v31 = vpack.c.bf16 %v2853_v43, %v2852_v44 }
0x1583   : > { %2859 = vst.msk [vmem:[#allocation4 + $0x88] sm:$0xff] %vm2345_vm3, %v2851_v57  ;;  %v2910_v42 = vpack.c.bf16 %v2851_v57, %v2850_v14 }
0x1585   : > { %4425 = vmatprep.subr.bf16.mxu1 %v2910_v42 }
0x1586   : > { %4426 = vmatpush3.bf16.msra.mxu1 %v2910_v42 }
0x1587   : > { %4427 = vmatprep.subr.bf16.mxu1 %v2911_v31 }
0x1588   : > { %v3291_v38 = vld [vmem:[#allocation4 + $0x80] sm:$0xff] }
0x1589   : > { %v3294_v60 = vld [vmem:[#allocation4 + $0x98] sm:$0xff] }
0x158a   : > { %4428 = vmatpush3.bf16.msra.mxu1 %v2911_v31  ;;  %v3292_v8 = vld [vmem:[#allocation4 + $0x88] sm:$0xff] }
0x158b   : > { %v4483_v5 = vpack.c.bf16 %v3292_v8, %v3291_v38 }
0x158d   : > { %4430 = vmatmul.mubr.msk.bf16.vlgmr.msra.gmra.mrb[8].mxu1 %vm172_vm2, %v5596_v59 }
0x158e   : > { %4445 = vmatprep.mubr.msk.bf16.mxu1 %vm172_vm2, %v5578_v53  ;;  %v3661_v53 = vld [vmem:[%s6715_s13 + $0x20] sm:$0xff] (%p2206_p1) }
0x1660   : > { %v4431_v7 = vpop.f32.mrb[8].mxu1 }
0x1661   : > { %v2963_v13 = vadd.f32 %v4431_v7, %v2908_v16  ;;  %v2946_v22 = vpop.f32.mrb[9].mxu1  ;;  %v3275_v16 = vld [vmem:[#allocation4] sm:$0xff] }
0x1662   : > { %v2961_v61 = vadd.f32 %v2946_v22, %v2906_v28  ;;  %v4432_v9 = vpop.f32.mrb[10].mxu1  ;;  %v4485_v28 = vpack.c.bf16 %v3276_v40, %v3275_v16  ;;  %v6861_v22 = vld [vmem:[#allocation16_spill] sm:$0xff] }
0x1663   : > { %v2967_v51 = vmul.f32 0.5, %v2963_v13  ;;  %v2964_v24 = vadd.f32 %v4432_v9, %v2909_v52  ;;  %v2949_v29 = vpop.f32.mrb[11].mxu1  ;;  %v3293_v52 = vld [vmem:[#allocation4 + $0x90] sm:$0xff] }
0x1664   : > { %v2965_v62 = vmul.f32 0.5, %v2961_v61  ;;  %v2962_v44 = vadd.f32 %v2949_v29, %v2907_v6  ;;  %v4487_v7 = vpack.c.bf16 %v3294_v60, %v3293_v52  ;;  %v3278_v6 = vld [vmem:[#allocation4 + $0x18] sm:$0xff]  ;;  %v3277_v61 = vld [vmem:[#allocation4 + $0x10] sm:$0xff]  ;;  %v3280_v29 = vld [vmem:[#allocation4 + $0x28] sm:$0xff] }
0x1665   : > { %4907 = vtanh.f32 %v2967_v51  ;;  %v2968_v58 = vmul.f32 0.5, %v2964_v24  ;;  %v4489_v9 = vpack.c.bf16 %v3278_v6, %v3277_v61 }
0x1666   : > { %4909 = vtanh.f32 %v2965_v62  ;;  %v2966_v14 = vmul.f32 0.5, %v2962_v44  ;;  %v3279_v44 = vld [vmem:[#allocation4 + $0x20] sm:$0xff] }
0x1667   : > { %4911 = vtanh.f32 %v2968_v58  ;;  %v4493_v58 = vpack.c.bf16 %v3280_v29, %v3279_v44 }
0x1668   : > { %4913 = vtanh.f32 %v2966_v14 }
0x166f   : > { %v4908_v15 = vpop.eup %4907 }
0x1670   : > { %v4910_v43 = vpop.eup %4909  ;;  %v2975_v57 = vmul.f32 0.5, %v4908_v15 }
0x1671   : > { %v4912_v31 = vpop.eup %4911  ;;  %v2973_v42 = vmul.f32 0.5, %v4910_v43  ;;  %v3282_v43 = vld [vmem:[#allocation4 + $0x38] sm:$0xff] }
0x1672   : > { %v4914_v2 = vpop.eup %4913  ;;  %v2979_v25 = vadd.f32 0.5, %v2975_v57  ;;  %v2976_v34 = vmul.f32 0.5, %v4912_v31  ;;  %v3281_v57 = vld [vmem:[#allocation4 + $0x30] sm:$0xff] }
0x1673   : > { %v2977_v12 = vadd.f32 0.5, %v2973_v42  ;;  %v2974_v0 = vmul.f32 0.5, %v4914_v2  ;;  %v4497_v31 = vpack.c.bf16 %v3282_v43, %v3281_v57  ;;  %v6862_v42 = vld [vmem:[#allocation17_spill] sm:$0xff] }
0x1674   : > { %2987 = vst.msk [vmem:[#allocation4 + $0xb0] sm:$0xff] %vm2345_vm3, %v2979_v25  ;;  %v2980_v47 = vadd.f32 0.5, %v2976_v34  ;;  %v3016_v2 = vrot.slane %v6170_v19, %v6862_v42  ;;  %v3028_v34 = vrot.slane %v6181_v1, %v6862_v42 }
0x1675   : > { %2985 = vst.msk [vmem:[#allocation4 + $0xa0] sm:$0xff] %vm2345_vm3, %v2977_v12  ;;  %v2978_v45 = vadd.f32 0.5, %v2974_v0 }
0x1676   : > { %2988 = vst.msk [vmem:[#allocation4 + $0xb8] sm:$0xff] %vm2345_vm3, %v2980_v47  ;;  %v3038_v30 = vpack.c.bf16 %v2980_v47, %v2979_v25  ;;  %v3019_v25 = vmul.f32 %v3016_v2, %v6847_v27  ;;  %v3020_v0 = vmul.f32 %v3016_v2, %v6849_v37  ;;  %v3018_v47 = vmul.f32 %v3016_v2, %v6850_v21 }
0x1677   : > { %2986 = vst.msk [vmem:[#allocation4 + $0xa8] sm:$0xff] %vm2345_vm3, %v2978_v45  ;;  %v3037_v10 = vpack.c.bf16 %v2978_v45, %v2977_v12  ;;  %v3017_v12 = vmul.f32 %v3016_v2, %v6848_v23  ;;  %v3029_v8 = vmul.f32 %v3028_v34, %v6853_v54  ;;  %v3032_v38 = vmul.f32 %v3028_v34, %v6855_v17 }
0x1678   : > { %v3023_v45 = vadd.f32 %v3019_v25, %v6851_v36  ;;  %v3024_v19 = vadd.f32 %v3020_v0, %v6854_v4  ;;  %v3022_v1 = vadd.f32 %v3018_v47, %v5373_v63 }
0x1679   : > { %4433 = vmatprep.subr.bf16.mxu0 %v3037_v10 }
0x167a   : > { %4434 = vmatpush3.bf16.msra.mxu0 %v3037_v10  ;;  %v3021_v10 = vadd.f32 %v3017_v12, %v5347_v32  ;;  %v3036_v16 = vadd.f32 %v3032_v38, %v3024_v19 }
0x167b   : > { %4435 = vmatprep.subr.bf16.mxu0 %v3038_v30  ;;  %v3297_v14 = vld [vmem:[#allocation4 + $0xb0] sm:$0xff] }
0x167c   : > { %v3295_v51 = vld [vmem:[#allocation4 + $0xa0] sm:$0xff]  ;;  %v3033_v60 = vadd.f32 %v3029_v8, %v3021_v10  ;;  %v3284_v10 = vld [vmem:[#allocation4 + $0x48] sm:$0xff] }
0x167d   : > { %v3298_v62 = vld [vmem:[#allocation4 + $0xb8] sm:$0xff] }
0x167e   : > { %4436 = vmatpush3.bf16.msra.mxu0 %v3038_v30  ;;  %v3296_v13 = vld [vmem:[#allocation4 + $0xa8] sm:$0xff]  ;;  %v4495_v15 = vpack.c.bf16 %v3298_v62, %v3297_v14  ;;  %v3031_v30 = vmul.f32 %v3028_v34, %v6852_v49 }
0x167f   : > { %4484 = vmatprep.subr.bf16.mxu0 %v4483_v5  ;;  %v4491_v24 = vpack.c.bf16 %v3296_v13, %v3295_v51  ;;  %v3030_v5 = vmul.f32 %v3028_v34, %v5432_v50 }
0x1680   : > { %v3035_v40 = vadd.f32 %v3031_v30, %v3023_v45 }
0x1681   : > { %4438 = vmatmul.mubr.msk.bf16.vlgmr.msra.gmra.mrb[12].mxu0 %vm172_vm2, %v5596_v59  ;;  %v3034_v52 = vadd.f32 %v3030_v5, %v3022_v1  ;;  %v3283_v5 = vld [vmem:[#allocation4 + $0x40] sm:$0xff] }
0x1682   : > { %4486 = vmatpush3.bf16.msra.mxu0 %v4485_v28  ;;  %3371 = vmatprep.mubr.f32.mxu0 %v6861_v22 }
0x1683   : > { %4488 = vmatprep.subr.bf16.mxu0 %v4487_v7 }
0x1686   : > { %4490 = vmatpush3.bf16.msra.mxu0 %v4489_v9 }
0x1687   : > { %4492 = vmatprep.subr.bf16.mxu0 %v4491_v24 }
0x168a   : > { %4494 = vmatpush3.bf16.msra.mxu0 %v4493_v58 }
0x168b   : > { %4496 = vmatprep.subr.bf16.mxu0 %v4495_v15 }
0x168e   : > { %4498 = vmatpush3.bf16.msra.mxu0 %v4497_v31 }
0x1754   : > { %v4439_v28 = vpop.f32.mrb[12].mxu0 }
0x1755   : > { %v3090_v7 = vadd.f32 %v4439_v28, %v3035_v40  ;;  %v3073_v6 = vpop.f32.mrb[13].mxu0  ;;  %v4501_v40 = vpack.c.bf16 %v3284_v10, %v3283_v5  ;;  %v3286_v28 = vld [vmem:[#allocation4 + $0x58] sm:$0xff] }
0x1756   : > { %v3088_v13 = vadd.f32 %v3073_v6, %v3033_v60  ;;  %v4440_v22 = vpop.f32.mrb[14].mxu0 }
0x1757   : > { %v3094_v61 = vmul.f32 0.5, %v3090_v7  ;;  %v3091_v9 = vadd.f32 %v4440_v22, %v3036_v16  ;;  %v3076_v51 = vpop.f32.mrb[15].mxu0  ;;  %v3285_v7 = vld [vmem:[#allocation4 + $0x50] sm:$0xff] }
0x1758   : > { %v3092_v24 = vmul.f32 0.5, %v3088_v13  ;;  %v3089_v29 = vadd.f32 %v3076_v51, %v3034_v52  ;;  %v6863_v52 = vld [vmem:[#allocation9_spill] sm:$0xff]  ;;  %v4505_v6 = vpack.c.bf16 %v3286_v28, %v3285_v7 }
0x1759   : > { %4915 = vtanh.f32 %v3094_v61  ;;  %v3095_v62 = vmul.f32 0.5, %v3091_v9  ;;  %v6351_v13 = vld [vmem:[%s3831_s28 + $0x20] sm:$0xff] }
0x175a   : > { %4917 = vtanh.f32 %v3092_v24  ;;  %v3093_v44 = vmul.f32 0.5, %v3089_v29  ;;  %v2229_v22 = vrot.slane %v6351_v13, %v5277_v39  ;;  %v2357_v29 = vrot.slane %v6351_v13, %v6856_v33 }
0x175b   : > { %4919 = vtanh.f32 %v3095_v62  ;;  %v2484_v10 = vrot.slane %v6351_v13, %v6857_v20 }
0x175c   : > { %4921 = vtanh.f32 %v3093_v44  ;;  %v2230_v61 = vadd.f32 %v5095_v35, %v2229_v22  ;;  %v2231_v9 = vadd.f32 %v5091_v41, %v2229_v22  ;;  %v6866_v41 = vld [vmem:[#allocation20_spill] sm:$0xff] }
0x175e   : > { %v2234_v51 = vmul.f32 %v2230_v61, %v5299_v48  ;;  %v2235_v24 = vmul.f32 %v2231_v9, %v5307_v55 }
0x1760   : > { %v4003_v62 = vclamps-f32 %v2234_v51, 1.0  ;;  %v4004_v44 = vclamps-f32 %v2235_v24, 1.0 }
0x1763   : > { %v4916_v58 = vpop.eup %4915 }
0x1764   : > { %v4918_v14 = vpop.eup %4917  ;;  %v3102_v15 = vmul.f32 0.5, %v4916_v58  ;;  %v2232_v58 = vadd.f32 %v5087_v11, %v2229_v22 }
0x1765   : > { %v4920_v43 = vpop.eup %4919  ;;  %v3100_v57 = vmul.f32 0.5, %v4918_v14  ;;  %v2233_v14 = vadd.f32 %v5083_v3, %v2229_v22 }
0x1766   : > { %v4922_v31 = vpop.eup %4921  ;;  %v3106_v2 = vadd.f32 0.5, %v3102_v15  ;;  %v3103_v25 = vmul.f32 0.5, %v4920_v43  ;;  %v6864_v15 = vld [vmem:[#allocation22_spill] sm:$0xff]  ;;  %v2236_v35 = vmul.f32 %v2232_v58, %v5297_v46 }
0x1767   : > { %v3104_v34 = vadd.f32 0.5, %v3100_v57  ;;  %v3101_v12 = vmul.f32 0.5, %v4922_v31  ;;  %v2246_v43 = vmul.f32 %v4003_v62, %v6864_v15  ;;  %v6865_v57 = vld [vmem:[#allocation19_spill] sm:$0xff] }
0x1768   : > { %3114 = vst.msk [vmem:[#allocation4 + $0xd0] sm:$0xff] %vm2345_vm3, %v3106_v2  ;;  %v3107_v0 = vadd.f32 0.5, %v3103_v25  ;;  %v2247_v31 = vmul.f32 %v4004_v44, %v6865_v57  ;;  %v4005_v33 = vclamps-f32 %v2236_v35, 1.0 }
0x1769   : > { %3112 = vst.msk [vmem:[#allocation4 + $0xc0] sm:$0xff] %vm2345_vm3, %v3104_v34  ;;  %v3105_v47 = vadd.f32 0.5, %v3101_v12  ;;  %v2358_v25 = vadd.f32 %v2357_v29, %v2246_v43  ;;  %2346 = vst.msk [vmem:[#allocation3] sm:$0xff] %vm2345_vm3, %v2246_v43 }
0x176a   : > { %3115 = vst.msk [vmem:[#allocation4 + $0xd8] sm:$0xff] %vm2345_vm3, %v3107_v0  ;;  %v3165_v45 = vpack.c.bf16 %v3107_v0, %v3106_v2  ;;  %v2237_v2 = vmul.f32 %v2233_v14, %v6866_v41  ;;  %2347 = vst.msk [vmem:[#allocation3 + $0x8] sm:$0xff] %vm2345_vm3, %v2247_v31  ;;  %v6867_v0 = vld [vmem:[#allocation24_spill] sm:$0xff]  ;;  %v2611_v14 = vrot.slane %v6351_v13, %v6858_v56 }
0x176b   : > { %3113 = vst.msk [vmem:[#allocation4 + $0xc8] sm:$0xff] %vm2345_vm3, %v3105_v47  ;;  %v3164_v30 = vpack.c.bf16 %v3105_v47, %v3104_v34  ;;  %v2359_v34 = vadd.f32 %v2357_v29, %v2247_v31  ;;  %v2362_v11 = vmul.f32 %v2358_v25, %v5299_v48  ;;  %v2248_v47 = vmul.f32 %v4005_v33, %v6867_v0 }
0x176c   : > { %v4006_v12 = vclamps-f32 %v2237_v2, 1.0 }
0x176d   : > { %4441 = vmatprep.subr.bf16.mxu1 %v3164_v30  ;;  %v2363_v3 = vmul.f32 %v2359_v34, %v5307_v55  ;;  %2348 = vst.msk [vmem:[#allocation3 + $0x10] sm:$0xff] %vm2345_vm3, %v2248_v47 }
0x176e   : > { %4442 = vmatpush3.bf16.msra.mxu1 %v3164_v30 }
0x176f   : > { %4443 = vmatprep.subr.bf16.mxu1 %v3165_v45  ;;  %v3301_v60 = vld [vmem:[#allocation4 + $0xd0] sm:$0xff] }
0x1770   : > { %v3299_v8 = vld [vmem:[#allocation4 + $0xc0] sm:$0xff] }
0x1771   : > { %v3302_v38 = vld [vmem:[#allocation4 + $0xd8] sm:$0xff] }
0x1772   : > { %4444 = vmatpush3.bf16.msra.mxu1 %v3165_v45  ;;  %v3300_v19 = vld [vmem:[#allocation4 + $0xc8] sm:$0xff]  ;;  %v4503_v16 = vpack.c.bf16 %v3302_v38, %v3301_v60  ;;  %v2360_v38 = vadd.f32 %v2357_v29, %v2248_v47 }
0x1773   : > { %v4499_v1 = vpack.c.bf16 %v3300_v19, %v3299_v8  ;;  %v6868_v45 = vld [vmem:[#allocation21_spill] sm:$0xff]  ;;  %v4009_v8 = vclamps-f32 %v2362_v11, 1.0  ;;  %v4010_v19 = vclamps-f32 %v2363_v3, 1.0 }
0x1774   : > { %v2249_v30 = vmul.f32 %v4006_v12, %v6868_v45  ;;  %v2364_v60 = vmul.f32 %v2360_v38, %v5297_v46  ;;  %v2738_v38 = vrot.slane %v6351_v13, %v6859_v18 }
0x1775   : > { %4446 = vmatmul.mubr.msk.bf16.vlgmr.msra.gmra.mrb[12].mxu1 %vm172_vm2, %v5596_v59  ;;  %4500 = vmatprep.subr.bf16.mxu0 %v4499_v1  ;;  %v2374_v5 = vmul.f32 %v4009_v8, %v6864_v15 }
0x1776   : > { %4502 = vmatpush3.bf16.msra.mxu0 %v4501_v40  ;;  %3441 = vmatprep.mubr.f32.mxu1 %v6863_v52  ;;  %v2361_v1 = vadd.f32 %v2357_v29, %v2249_v30  ;;  %2349 = vst.msk [vmem:[#allocation3 + $0x18] sm:$0xff] %vm2345_vm3, %v2249_v30  ;;  %v2375_v40 = vmul.f32 %v4010_v19, %v6865_v57  ;;  %v4011_v20 = vclamps-f32 %v2364_v60, 1.0 }
0x1777   : > { %4504 = vmatprep.subr.bf16.mxu0 %v4503_v16  ;;  %v2485_v28 = vadd.f32 %v2484_v10, %v2374_v5  ;;  %2473 = vst.msk [vmem:[#allocation3 + $0x20] sm:$0xff] %vm2345_vm3, %v2374_v5 }
0x1778   : > { %v2365_v16 = vmul.f32 %v2361_v1, %v6866_v41  ;;  %v2486_v52 = vadd.f32 %v2484_v10, %v2375_v40  ;;  %2474 = vst.msk [vmem:[#allocation3 + $0x28] sm:$0xff] %vm2345_vm3, %v2375_v40  ;;  %v2376_v61 = vmul.f32 %v4011_v20, %v6867_v0 }
0x177a   : > { %4506 = vmatpush3.bf16.msra.mxu0 %v4505_v6  ;;  %v4012_v7 = vclamps-f32 %v2365_v16, 1.0  ;;  %v2489_v6 = vmul.f32 %v2485_v28, %v5299_v48  ;;  %v2490_v22 = vmul.f32 %v2486_v52, %v5307_v55  ;;  %v2487_v29 = vadd.f32 %v2484_v10, %v2376_v61  ;;  %2475 = vst.msk [vmem:[#allocation3 + $0x30] sm:$0xff] %vm2345_vm3, %v2376_v61 }
0x177c   : > { %v2377_v9 = vmul.f32 %v4012_v7, %v6868_v45  ;;  %v4015_v51 = vclamps-f32 %v2489_v6, 1.0  ;;  %v4016_v24 = vclamps-f32 %v2490_v22, 1.0  ;;  %v2491_v43 = vmul.f32 %v2487_v29, %v5297_v46 }
0x177e   : > { %v2488_v62 = vadd.f32 %v2484_v10, %v2377_v9  ;;  %2476 = vst.msk [vmem:[#allocation3 + $0x38] sm:$0xff] %vm2345_vm3, %v2377_v9  ;;  %v2501_v44 = vmul.f32 %v4015_v51, %v6864_v15  ;;  %v2502_v58 = vmul.f32 %v4016_v24, %v6865_v57  ;;  %v4017_v25 = vclamps-f32 %v2491_v43, 1.0 }
0x1780   : > { %v2492_v31 = vmul.f32 %v2488_v62, %v6866_v41  ;;  %v2612_v35 = vadd.f32 %v2611_v14, %v2501_v44  ;;  %v2613_v2 = vadd.f32 %v2611_v14, %v2502_v58  ;;  %2600 = vst.msk [vmem:[#allocation3 + $0x40] sm:$0xff] %vm2345_vm3, %v2501_v44  ;;  %2601 = vst.msk [vmem:[#allocation3 + $0x48] sm:$0xff] %vm2345_vm3, %v2502_v58 }
0x1781   : > { %v2503_v11 = vmul.f32 %v4017_v25, %v6867_v0  ;;  %v2865_v44 = vrot.slane %v6351_v13, %v6860_v26 }
0x1782   : > { %v4018_v34 = vclamps-f32 %v2492_v31, 1.0  ;;  %v2616_v33 = vmul.f32 %v2612_v35, %v5299_v48  ;;  %v2617_v12 = vmul.f32 %v2613_v2, %v5307_v55 }
0x1783   : > { %v2614_v30 = vadd.f32 %v2611_v14, %v2503_v11  ;;  %2602 = vst.msk [vmem:[#allocation3 + $0x50] sm:$0xff] %vm2345_vm3, %v2503_v11 }
0x1784   : > { %v2504_v56 = vmul.f32 %v4018_v34, %v6868_v45  ;;  %v4021_v3 = vclamps-f32 %v2616_v33, 1.0  ;;  %v4022_v47 = vclamps-f32 %v2617_v12, 1.0 }
0x1785   : > { %v2618_v1 = vmul.f32 %v2614_v30, %v5297_v46 }
0x1786   : > { %v2615_v10 = vadd.f32 %v2611_v14, %v2504_v56  ;;  %2603 = vst.msk [vmem:[#allocation3 + $0x58] sm:$0xff] %vm2345_vm3, %v2504_v56  ;;  %v2628_v8 = vmul.f32 %v4021_v3, %v6864_v15  ;;  %v2629_v19 = vmul.f32 %v4022_v47, %v6865_v57  ;;  %v2992_v56 = vrot.slane %v6351_v13, %v6862_v42 }
0x1787   : > { %v4023_v16 = vclamps-f32 %v2618_v1, 1.0  ;;  %v3244_v1 = vld [vmem:[#allocation3 + $0x8] sm:$0xff] }
0x1788   : > { %v2619_v5 = vmul.f32 %v2615_v10, %v6866_v41  ;;  %v2739_v40 = vadd.f32 %v2738_v38, %v2628_v8  ;;  %v2740_v60 = vadd.f32 %v2738_v38, %v2629_v19  ;;  %2727 = vst.msk [vmem:[#allocation3 + $0x60] sm:$0xff] %vm2345_vm3, %v2628_v8  ;;  %2728 = vst.msk [vmem:[#allocation3 + $0x68] sm:$0xff] %vm2345_vm3, %v2629_v19 }
0x1789   : > { %v2630_v7 = vmul.f32 %v4023_v16, %v6867_v0 }
0x178a   : > { %v4024_v28 = vclamps-f32 %v2619_v5, 1.0  ;;  %v2743_v52 = vmul.f32 %v2739_v40, %v5299_v48  ;;  %v2744_v20 = vmul.f32 %v2740_v60, %v5307_v55 }
0x178b   : > { %v2741_v61 = vadd.f32 %v2738_v38, %v2630_v7  ;;  %2729 = vst.msk [vmem:[#allocation3 + $0x70] sm:$0xff] %vm2345_vm3, %v2630_v7 }
0x178c   : > { %v2631_v18 = vmul.f32 %v4024_v28, %v6868_v45  ;;  %v4027_v6 = vclamps-f32 %v2743_v52, 1.0  ;;  %v4028_v22 = vclamps-f32 %v2744_v20, 1.0 }
0x178d   : > { %v2745_v29 = vmul.f32 %v2741_v61, %v5297_v46  ;;  %v3246_v61 = vld [vmem:[#allocation3 + $0x18] sm:$0xff] }
0x178e   : > { %v2742_v9 = vadd.f32 %v2738_v38, %v2631_v18  ;;  %2730 = vst.msk [vmem:[#allocation3 + $0x78] sm:$0xff] %vm2345_vm3, %v2631_v18  ;;  %v2755_v51 = vmul.f32 %v4027_v6, %v6864_v15  ;;  %v2756_v24 = vmul.f32 %v4028_v22, %v6865_v57  ;;  %v3243_v38 = vld [vmem:[#allocation3] sm:$0xff]  ;;  %v3245_v22 = vld [vmem:[#allocation3 + $0x10] sm:$0xff] }
0x178f   : > { %v4029_v58 = vclamps-f32 %v2745_v29, 1.0  ;;  %v4517_v40 = vpack.c.bf16 %v3244_v1, %v3243_v38  ;;  %v3249_v1 = vld [vmem:[#allocation3 + $0x30] sm:$0xff] }
0x1790   : > { %v2746_v62 = vmul.f32 %v2742_v9, %v6866_v41  ;;  %2854 = vst.msk [vmem:[#allocation3 + $0x80] sm:$0xff] %vm2345_vm3, %v2755_v51  ;;  %2855 = vst.msk [vmem:[#allocation3 + $0x88] sm:$0xff] %vm2345_vm3, %v2756_v24  ;;  %v2866_v43 = vadd.f32 %v2865_v44, %v2755_v51  ;;  %v2867_v2 = vadd.f32 %v2865_v44, %v2756_v24 }
0x1791   : > { %v2757_v31 = vmul.f32 %v4029_v58, %v6867_v0  ;;  %v4521_v24 = vpack.c.bf16 %v3246_v61, %v3245_v22  ;;  %v3251_v22 = vld [vmem:[#allocation3 + $0x40] sm:$0xff]  ;;  %v3252_v61 = vld [vmem:[#allocation3 + $0x48] sm:$0xff] }
0x1792   : > { %v4030_v14 = vclamps-f32 %v2746_v62, 1.0  ;;  %v2870_v25 = vmul.f32 %v2866_v43, %v5299_v48  ;;  %v2871_v26 = vmul.f32 %v2867_v2, %v5307_v55 }
0x1793   : > { %2856 = vst.msk [vmem:[#allocation3 + $0x90] sm:$0xff] %vm2345_vm3, %v2757_v31  ;;  %v2868_v34 = vadd.f32 %v2865_v44, %v2757_v31 }
0x1794   : > { %v2758_v35 = vmul.f32 %v4030_v14, %v6868_v45  ;;  %v4033_v33 = vclamps-f32 %v2870_v25, 1.0  ;;  %v4034_v30 = vclamps-f32 %v2871_v26, 1.0  ;;  %v6869_v14 = vld [vmem:[#allocation18_spill] sm:$0xff]  ;;  %v3247_v25 = vld [vmem:[#allocation3 + $0x20] sm:$0xff] }
0x1795   : > { %v2872_v11 = vmul.f32 %v2868_v34, %v5297_v46  ;;  %v3119_v43 = vrot.slane %v6351_v13, %v6869_v14  ;;  %v3248_v34 = vld [vmem:[#allocation3 + $0x28] sm:$0xff] }
0x1796   : > { %2857 = vst.msk [vmem:[#allocation3 + $0x98] sm:$0xff] %vm2345_vm3, %v2758_v35  ;;  %v2869_v12 = vadd.f32 %v2865_v44, %v2758_v35  ;;  %v2882_v10 = vmul.f32 %v4033_v33, %v6864_v15  ;;  %v2883_v60 = vmul.f32 %v4034_v30, %v6865_v57 }
0x1797   : > { %v3259_v3 = vld [vmem:[#allocation3 + $0x80] sm:$0xff]  ;;  %v3260_v47 = vld [vmem:[#allocation3 + $0x88] sm:$0xff]  ;;  %v4035_v5 = vclamps-f32 %v2872_v11, 1.0 }
0x1798   : > { %v2873_v8 = vmul.f32 %v2869_v12, %v6866_v41  ;;  %v4515_v19 = vpack.c.bf16 %v3260_v47, %v3259_v3  ;;  %2981 = vst.msk [vmem:[#allocation3 + $0xa0] sm:$0xff] %vm2345_vm3, %v2882_v10  ;;  %v2993_v28 = vadd.f32 %v2992_v56, %v2882_v10  ;;  %2982 = vst.msk [vmem:[#allocation3 + $0xa8] sm:$0xff] %vm2345_vm3, %v2883_v60 }
0x1799   : > { %v2884_v42 = vmul.f32 %v4035_v5, %v6867_v0  ;;  %v2994_v7 = vadd.f32 %v2992_v56, %v2883_v60  ;;  %v4525_v3 = vpack.c.bf16 %v3248_v34, %v3247_v25  ;;  %v3250_v5 = vld [vmem:[#allocation3 + $0x38] sm:$0xff]  ;;  %v3255_v25 = vld [vmem:[#allocation3 + $0x60] sm:$0xff]  ;;  %v3256_v34 = vld [vmem:[#allocation3 + $0x68] sm:$0xff] }
0x179a   : > { %v4036_v16 = vclamps-f32 %v2873_v8, 1.0  ;;  %4516 = vmatprep.subr.bf16.mxu1 %v4515_v19  ;;  %v3261_v52 = vld [vmem:[#allocation3 + $0x90] sm:$0xff]  ;;  %v2997_v18 = vmul.f32 %v2993_v28, %v5299_v48 }
0x179b   : > { %4518 = vmatpush3.bf16.msra.mxu1 %v4517_v40  ;;  %2983 = vst.msk [vmem:[#allocation3 + $0xb0] sm:$0xff] %vm2345_vm3, %v2884_v42  ;;  %v2995_v9 = vadd.f32 %v2992_v56, %v2884_v42  ;;  %v2998_v29 = vmul.f32 %v2994_v7, %v5307_v55 }
0x179c   : > { %v2885_v20 = vmul.f32 %v4036_v16, %v6868_v45  ;;  %v4039_v62 = vclamps-f32 %v2997_v18, 1.0 }
0x179d   : > { %v3262_v6 = vld [vmem:[#allocation3 + $0x98] sm:$0xff]  ;;  %v2999_v58 = vmul.f32 %v2995_v9, %v5297_v46  ;;  %v4040_v31 = vclamps-f32 %v2998_v29, 1.0  ;;  %v4533_v29 = vpack.c.bf16 %v3252_v61, %v3251_v22 }
0x179e   : > { %v4519_v51 = vpack.c.bf16 %v3262_v6, %v3261_v52  ;;  %2984 = vst.msk [vmem:[#allocation3 + $0xb8] sm:$0xff] %vm2345_vm3, %v2885_v20  ;;  %v2996_v44 = vadd.f32 %v2992_v56, %v2885_v20  ;;  %v3009_v35 = vmul.f32 %v4039_v62, %v6864_v15  ;;  %v4529_v52 = vpack.c.bf16 %v3250_v5, %v3249_v1  ;;  %v4932_v5 = vld [vmem:[%s6176_s8 + $0x20] sm:$0xff] }
0x179f   : > { %v3263_v2 = vld [vmem:[#allocation3 + $0xa0] sm:$0xff]  ;;  %v4041_v33 = vclamps-f32 %v2999_v58, 1.0  ;;  %v3010_v12 = vmul.f32 %v4040_v31, %v6865_v57  ;;  %v3264_v56 = vld [vmem:[#allocation3 + $0xa8] sm:$0xff]  ;;  %v3253_v58 = vld [vmem:[#allocation3 + $0x50] sm:$0xff] }
0x17a0   : > { %4520 = vmatprep.subr.bf16.mxu1 %v4519_v51  ;;  %v3000_v26 = vmul.f32 %v2996_v44, %v6866_v41  ;;  %3108 = vst.msk [vmem:[#allocation3 + $0xc0] sm:$0xff] %vm2345_vm3, %v3009_v35  ;;  %v3120_v11 = vadd.f32 %v3119_v43, %v3009_v35  ;;  %v4523_v30 = vpack.c.bf16 %v3264_v56, %v3263_v2  ;;  %v3257_v56 = vld [vmem:[#allocation3 + $0x70] sm:$0xff] }
0x17a1   : > { %4522 = vmatpush3.bf16.msra.mxu1 %v4521_v24  ;;  %v3011_v13 = vmul.f32 %v4041_v33, %v6867_v0  ;;  %3109 = vst.msk [vmem:[#allocation3 + $0xc8] sm:$0xff] %vm2345_vm3, %v3010_v12  ;;  %v3121_v8 = vadd.f32 %v3119_v43, %v3010_v12 }
0x17a2   : > { %v4042_v47 = vclamps-f32 %v3000_v26, 1.0  ;;  %v3265_v10 = vld [vmem:[#allocation3 + $0xb0] sm:$0xff]  ;;  %v3124_v19 = vmul.f32 %v3120_v11, %v5299_v48  ;;  %4524 = vmatprep.subr.bf16.mxu1 %v4523_v30 }
0x17a3   : > { %3110 = vst.msk [vmem:[#allocation3 + $0xd0] sm:$0xff] %vm2345_vm3, %v3011_v13  ;;  %v3122_v60 = vadd.f32 %v3119_v43, %v3011_v13  ;;  %v3125_v28 = vmul.f32 %v3121_v8, %v5307_v55  ;;  %v6870_v8 = vld [vmem:[#allocation26_spill] sm:$0xff] }
0x17a4   : > { %v3012_v40 = vmul.f32 %v4042_v47, %v6868_v45  ;;  %v4045_v42 = vclamps-f32 %v3124_v19, 1.0  ;;  %v3258_v47 = vld [vmem:[#allocation3 + $0x78] sm:$0xff]  ;;  %v4931_v19 = vld [vmem:[%s6167_s24 + $0x20] sm:$0xff] }
0x17a5   : > { %v3266_v38 = vld [vmem:[#allocation3 + $0xb8] sm:$0xff]  ;;  %4526 = vmatpush3.bf16.msra.mxu1 %v4525_v3  ;;  %v3126_v7 = vmul.f32 %v3122_v60, %v5297_v46  ;;  %v4046_v18 = vclamps-f32 %v3125_v28, 1.0 }
0x17a6   : > { %v4527_v16 = vpack.c.bf16 %v3266_v38, %v3265_v10  ;;  %3111 = vst.msk [vmem:[#allocation3 + $0xd8] sm:$0xff] %vm2345_vm3, %v3012_v40  ;;  %v3123_v20 = vadd.f32 %v3119_v43, %v3012_v40  ;;  %v6461_v35 = vmul.f32 %v4045_v42, %v6864_v15   ;;  %v3254_v43 = vld [vmem:[#allocation3 + $0x58] sm:$0xff]  ;;  %v4545_v10 = vpack.c.bf16 %v3258_v47, %v3257_v56 }
0x17a7   : > { %v3267_v6 = vld [vmem:[#allocation3 + $0xc0] sm:$0xff]  ;;  %v4047_v51 = vclamps-f32 %v3126_v7, 1.0  ;;  %v4537_v2 = vpack.c.bf16 %v3254_v43, %v3253_v58  ;;  %v3143_v38 = vrot.slane %v4931_v19, %v6869_v14  ;;  %v3155_v40 = vrot.slane %v4932_v5, %v6869_v14  ;;  %v3290_v19 = vld [vmem:[#allocation4 + $0x78] sm:$0xff] }
0x17a8   : > { %4528 = vmatprep.subr.bf16.mxu1 %v4527_v16  ;;  %v3127_v9 = vmul.f32 %v3123_v20, %v6866_v41  ;;  %v6465_v41 = vmul.f32 %v4046_v18, %v6865_v57   ;;  %3235 = vst.msk [vmem:[#allocation3 + $0xe0] sm:$0xff] %vm2345_vm3, %v6461_v35  ;;  %v3268_v24 = vld [vmem:[#allocation3 + $0xc8] sm:$0xff]  ;;  %v6871_v5 = vld [vmem:[#allocation15_spill] sm:$0xff] }
0x17a9   : > { %4530 = vmatpush3.bf16.msra.mxu1 %v4529_v52  ;;  %v6470_v11 = vmul.f32 %v4047_v51, %v6867_v0   ;;  %v4531_v15 = vpack.c.bf16 %v3268_v24, %v3267_v6  ;;  %v3146_v1 = vmul.f32 %v3143_v38, %v6847_v27  ;;  %v3144_v60 = vmul.f32 %v3143_v38, %v6848_v23 }
0x17aa   : > { %v4048_v62 = vclamps-f32 %v3127_v9, 1.0  ;;  %v3269_v44 = vld [vmem:[#allocation3 + $0xd0] sm:$0xff]  ;;  %3236 = vst.msk [vmem:[#allocation3 + $0xe8] sm:$0xff] %vm2345_vm3, %v6465_v41  ;;  %v3147_v16 = vmul.f32 %v3143_v38, %v6849_v37  ;;  %v3145_v28 = vmul.f32 %v3143_v38, %v6850_v21  ;;  %v3158_v52 = vmul.f32 %v3155_v40, %v6852_v49 }
0x17ab   : > { %3237 = vst.msk [vmem:[#allocation3 + $0xf0] sm:$0xff] %vm2345_vm3, %v6470_v11  ;;  %4532 = vmatprep.subr.bf16.mxu1 %v4531_v15  ;;  %v3150_v42 = vadd.f32 %v3146_v1, %v6851_v36  ;;  %v3148_v20 = vadd.f32 %v3144_v60, %v5347_v32  ;;  %v3156_v7 = vmul.f32 %v3155_v40, %v6853_v54  ;;  %v3289_v38 = vld [vmem:[#allocation4 + $0x70] sm:$0xff] }
0x17ac   : > { %v6475_v3 = vmul.f32 %v4048_v62, %v6868_v45   ;;  %v4541_v45 = vpack.c.bf16 %v3256_v34, %v3255_v25  ;;  %v3151_v18 = vadd.f32 %v3147_v16, %v6854_v4  ;;  %v3159_v27 = vmul.f32 %v3155_v40, %v6855_v17 }
0x17ad   : > { %v3270_v57 = vld [vmem:[#allocation3 + $0xd8] sm:$0xff]  ;;  %4534 = vmatpush3.bf16.msra.mxu1 %v4533_v29  ;;  %v3149_v14 = vadd.f32 %v3145_v28, %v5373_v63  ;;  %v3157_v23 = vmul.f32 %v3155_v40, %v5432_v50  ;;  %v3162_v6 = vadd.f32 %v3158_v52, %v3150_v42  ;;  %v3160_v37 = vadd.f32 %v3156_v7, %v3148_v20  ;;  %v6872_v20 = vld [vmem:[#allocation30_spill] sm:$0xff]  ;;  %v3657_v63 = vld [vmem:[%s6715_s13] sm:$0xff] (%p2206_p1) }
0x17ae   : > { %v4535_v31 = vpack.c.bf16 %v3270_v57, %v3269_v44  ;;  %3238 = vst.msk [vmem:[#allocation3 + $0xf8] sm:$0xff] %vm2345_vm3, %v6475_v3  ;;  %v3163_v22 = vadd.f32 %v3159_v27, %v3151_v18  ;;  %v4513_v1 = vpack.c.bf16 %v3290_v19, %v3289_v38  ;;  %v3451_v7 = vrot.slane %v6872_v20, %v5277_v39  ;;  %v3662_v19 = vld [vmem:[%s6715_s13 + $0x28] sm:$0xff] (%p2206_p1)  ;;  %v3659_v38 = vld [vmem:[%s6715_s13 + $0x10] sm:$0xff] (%p2206_p1)  ;;  %v3483_v20 = vld [vmem:[%s6702_s0 + $0x38] sm:$0xff] (%p2206_p1) }
0x17af   : > { %v3271_v0 = vld [vmem:[#allocation3 + $0xe0] sm:$0xff]  ;;  %v3161_v61 = vadd.f32 %v3157_v23, %v3149_v14 }
0x17b0   : > { %4536 = vmatprep.subr.bf16.mxu1 %v4535_v31 }
0x17b1   : > { %4538 = vmatpush3.bf16.msra.mxu1 %v4537_v2  ;;  %v3272_v26 = vld [vmem:[#allocation3 + $0xe8] sm:$0xff] }
0x17b2   : > { %v4539_v33 = vpack.c.bf16 %v3272_v26, %v3271_v0  ;;  %v3273_v12 = vld [vmem:[#allocation3 + $0xf0] sm:$0xff] }
0x17b4   : > { %4540 = vmatprep.subr.bf16.mxu1 %v4539_v33 }
0x17b5   : > { %v3274_v13 = vld [vmem:[#allocation3 + $0xf8] sm:$0xff]  ;;  %4542 = vmatpush3.bf16.msra.mxu1 %v4541_v45  ;;  %v3288_v45 = vld [vmem:[#allocation4 + $0x68] sm:$0xff] }
0x17b6   : > { %v4543_v30 = vpack.c.bf16 %v3274_v13, %v3273_v12  ;;  %v3287_v13 = vld [vmem:[#allocation4 + $0x60] sm:$0xff] }
0x17b8   : > { %4544 = vmatprep.subr.bf16.mxu1 %v4543_v30  ;;  %v4509_v30 = vpack.c.bf16 %v3288_v45, %v3287_v13 }
0x17b9   : > { %4546 = vmatpush3.bf16.msra.mxu1 %v4545_v10 }
0x17bc   : > { %3442 = vmatmul.mubr.f32.vlgmr.msra.gmra.mrb[16].mxu1 %v6870_v8 }
0x17bd   :  { %4471 = vmatprep.mubr.msk.f32.mxu1 (%p2206_p1), %vm3665_vm4, %v3661_v53 }
0x1848   : > { %v4447_v21 = vpop.f32.mrb[12].mxu1 }
0x1849   : > { %v3217_v36 = vadd.f32 %v4447_v21, %v3162_v6  ;;  %v3200_v9 = vpop.f32.mrb[13].mxu1 }
0x184a   : > { %v3215_v49 = vadd.f32 %v3200_v9, %v3160_v37  ;;  %v4448_v51 = vpop.f32.mrb[14].mxu1 }
0x184b   : > { %v3221_v24 = vmul.f32 0.5, %v3217_v36  ;;  %v3218_v29 = vadd.f32 %v4448_v51, %v3163_v22  ;;  %v3203_v54 = vpop.f32.mrb[15].mxu1 }
0x184c   : > { %v3219_v62 = vmul.f32 0.5, %v3215_v49  ;;  %v3216_v4 = vadd.f32 %v3203_v54, %v3161_v61 }
0x184d   : > { %4923 = vtanh.f32 %v3221_v24  ;;  %v3222_v17 = vmul.f32 0.5, %v3218_v29 }
0x184e   : > { %4925 = vtanh.f32 %v3219_v62  ;;  %v3220_v15 = vmul.f32 0.5, %v3216_v4 }
0x184f   : > { %4927 = vtanh.f32 %v3222_v17 }
0x1850   : > { %4929 = vtanh.f32 %v3220_v15 }
0x1857   : > { %v4924_v44 = vpop.eup %4923 }
0x1858   : > { %v4926_v58 = vpop.eup %4925  ;;  %v3229_v43 = vmul.f32 0.5, %v4924_v44 }
0x1859   : > { %v4928_v57 = vpop.eup %4927  ;;  %v3227_v31 = vmul.f32 0.5, %v4926_v58 }
0x185a   : > { %v4930_v2 = vpop.eup %4929  ;;  %v3233_v0 = vadd.f32 0.5, %v3229_v43   ;;  %v3230_v25 = vmul.f32 0.5, %v4928_v57 }
0x185b   : > { %v3231_v26 = vadd.f32 0.5, %v3227_v31   ;;  %v3228_v34 = vmul.f32 0.5, %v4930_v2 }
0x185c   : > { %3241 = vst.msk [vmem:[#allocation4 + $0xf0] sm:$0xff] %vm2345_vm3, %v3233_v0  ;;  %v3234_v25 = vadd.f32 0.5, %v3230_v25   ;;  %v6873_v31 = vmov %v3233_v0 }
0x185d   : > { %3239 = vst.msk [vmem:[#allocation4 + $0xe0] sm:$0xff] %vm2345_vm3, %v3231_v26  ;;  %v3232_v34 = vadd.f32 0.5, %v3228_v34  }
0x185e   : > { %3242 = vst.msk [vmem:[#allocation4 + $0xf8] sm:$0xff] %vm2345_vm3, %v3234_v25 }
0x185f   : > { %3240 = vst.msk [vmem:[#allocation4 + $0xe8] sm:$0xff] %vm2345_vm3, %v3232_v34 }
0x1863   : > { %v3305_v10 = vld [vmem:[#allocation4 + $0xf0] sm:$0xff] }
0x1864   : > { %v3303_v33 = vld [vmem:[#allocation4 + $0xe0] sm:$0xff] }
0x1865   : > { %v3306_v56 = vld [vmem:[#allocation4 + $0xf8] sm:$0xff] }
0x1866   : > { %v3304_v12 = vld [vmem:[#allocation4 + $0xe8] sm:$0xff]  ;;  %v4511_v8 = vpack.c.bf16 %v3306_v56, %v3305_v10 }
0x1867   : > { %v4507_v47 = vpack.c.bf16 %v3304_v12, %v3303_v33 }
0x1869   : > { %4508 = vmatprep.subr.bf16.mxu0 %v4507_v47 }
0x186a   : > { %4510 = vmatpush3.bf16.msra.mxu0 %v4509_v30 }
0x186b   : > { %4512 = vmatprep.subr.bf16.mxu0 %v4511_v8  ;;  %v3658_v8 = vld [vmem:[%s6715_s13 + $0x8] sm:$0xff] (%p2206_p1) }
0x186e   : > { %4514 = vmatpush3.bf16.msra.mxu0 %v4513_v1  ;;  %v3663_v1 = vld [vmem:[%s6715_s13 + $0x30] sm:$0xff] (%p2206_p1) }
0x1871   : > { %3372 = vmatmul.mubr.f32.vlgmr.msra.gmra.mrb[16].mxu0 %v6871_v5  ;;  %v3660_v5 = vld [vmem:[%s6715_s13 + $0x18] sm:$0xff] (%p2206_p1) }
0x1872   :  { %4465 = vmatprep.mubr.msk.f32.mxu0 (%p2206_p1), %vm3665_vm4, %v3657_v63 }
0x188f   : > { %v4227_v40 = vpop.f32.mrb[16].mxu1 }
0x1890   : > { %v4228_v60 = vpop.f32.mrb[17].mxu1 }
0x1891   : > { %v4229_v16 = vadd.f32 %v4228_v60, %v4227_v40  ;;  %v3664_v40 = vld [vmem:[%s6715_s13 + $0x38] sm:$0xff] (%p2206_p1)  ;;  %v3480_v60 = vld [vmem:[%s6702_s0 + $0x20] sm:$0xff] (%p2206_p1) }
0x1944   : > { %v4192_v28 = vpop.f32.mrb[16].mxu0 }
0x1945   : > { %v4193_v42 = vpop.f32.mrb[17].mxu0 }
0x1946   : > { %v4194_v52 = vadd.f32 %v4193_v42, %v4192_v28  ;;  %2208 = sbr.rel (!%p2206_p1) target bundleno = 4287 (0x10bf), region = 116  ;;  %v3482_v28 = vld [vmem:[%s6702_s0 + $0x30] sm:$0xff] (%p2206_p1)  ;;  %v3488_v42 = vmul.f32 (%p2206_p1), 0.06262315, %v3480_v60 }
0x1948   : > { %v3444_v18 = vadd.f32 %v4229_v16, %v4194_v52  ;;  %v3481_v16 = vld [vmem:[%s6702_s0 + $0x28] sm:$0xff] (%p2206_p1) }
0x1949   :  { %v3489_v52 = vmul.f32 (%p2206_p1), 0.06262315, %v3481_v16 }
0x194a   : > { %v3453_v27 = vadd.f32 %v3451_v7, %v3444_v18  ;;  %v3490_v7 = vmul.f32 (%p2206_p1), 0.06262315, %v3482_v28  ;;  %v3484_v18 = vld [vmem:[%s6702_s0 + $0x40] sm:$0xff] (%p2206_p1) }
0x194c   : > { %3455 = vst.msk [vmem:[%s3454_s9] sm:$0xff] %vm2345_vm3, %v3453_v27  ;;  %v3485_v27 = vld [vmem:[%s6702_s0 + $0x48] sm:$0xff] (%p2206_p1) }
0x1953   :  { %v3456_v14 = vld [vmem:[#allocation2] sm:$0xff]  ;;  %v3457_v23 = vld [vmem:[#allocation2 + $0x8] sm:$0xff]  ;;  %v3458_v22 = vld [vmem:[#allocation2 + $0x10] sm:$0xff] }
0x1954   :  { %v3464_v6 = vmul.f32 7.610604, %v3456_v14  ;;  %v3465_v37 = vmul.f32 7.610604, %v3457_v23  ;;  %v3459_v21 = vld [vmem:[#allocation2 + $0x18] sm:$0xff]  ;;  %v3460_v32 = vld [vmem:[#allocation2 + $0x20] sm:$0xff] }
0x1955   :  { %v3466_v9 = vmul.f32 7.610604, %v3458_v22  ;;  %v3467_v49 = vmul.f32 7.610604, %v3459_v21  ;;  %v3461_v3 = vld [vmem:[#allocation2 + $0x28] sm:$0xff]  ;;  %v3462_v4 = vld [vmem:[#allocation2 + $0x30] sm:$0xff] }
0x1956   :  { %v6530_v61 = vadd.f32 0.04023, %v3464_v6  ;;  %v3473_v36 = vadd.f32 0.04023, %v3465_v37  ;;  %v3468_v26 = vmul.f32 7.610604, %v3460_v32 }
0x1957   :  { %v3474_v35 = vadd.f32 0.04023, %v3466_v9  ;;  %v3475_v46 = vadd.f32 0.04023, %v3467_v49  ;;  %v3469_v17 = vmul.f32 7.610604, %v3461_v3 }
0x1958   :  { %v3551_v51 = vrot.slane %v6530_v61, 7  ;;  %v3552_v24 = vrot.slane %v3473_v36, 7  ;;  %v4547_v29 = vpack.c.bf16 %v3473_v36, %v6530_v61  ;;  %v3476_v15 = vadd.f32 0.04023, %v3468_v26  ;;  %v3463_v44 = vld [vmem:[#allocation2 + $0x38] sm:$0xff] }
0x1959   :  { %v3554_v48 = vrot.slane %v3474_v35, 7  ;;  %v3556_v59 = vrot.slane %v3475_v46, 7  ;;  %v4551_v11 = vpack.c.bf16 %v3475_v46, %v3474_v35  ;;  %v3477_v58 = vadd.f32 0.04023, %v3469_v17 }
0x195a   :  { %v3553_v39 = vsel %vm93_vm1, %v3551_v51, %v3552_v24  ;;  %4548 = vmatprep.subr.bf16.mxu0 %v4547_v29  ;;  %4563 = vmatprep.subr.bf16.mxu1 %v4547_v29  ;;  %v3558_v43 = vrot.slane %v3476_v15, 7  ;;  %v3470_v57 = vmul.f32 7.610604, %v3462_v4  ;;  %v3471_v25 = vmul.f32 7.610604, %v3463_v44 }
0x195b   :  { %v6537_v55 = vadd.f32 %v3553_v39, %v3473_v36  ;;  %4550 = vmatpush3.bf16.msra.mxu0 %v4547_v29  ;;  %4567 = vmatpush3.bf16.msra.mxu1 %v4547_v29  ;;  %v3555_v50 = vsel %vm93_vm1, %v3552_v24, %v3554_v48  ;;  %v3557_v54 = vsel %vm93_vm1, %v3554_v48, %v3556_v59  ;;  %v3560_v2 = vrot.slane %v3477_v58, 7 }
0x195c   :  { %v6547_v41 = vadd.f32 %v3555_v50, %v3474_v35  ;;  %v6551_v62 = vadd.f32 %v3557_v54, %v3475_v46  ;;  %4552 = vmatprep.subr.bf16.mxu0 %v4551_v11  ;;  %4564 = vmatprep.subr.bf16.mxu1 %v4551_v11  ;;  %v3559_v31 = vsel %vm93_vm1, %v3556_v59, %v3558_v43  ;;  %v6557_v33 = vadd.f32 0.04023, %v3470_v57 }
0x195d   :  { %v4555_v0 = vpack.c.bf16 %v3477_v58, %v3476_v15  ;;  %v6554_v34 = vadd.f32 %v3559_v31, %v3476_v15  ;;  %v3561_v45 = vsel %vm93_vm1, %v3558_v43, %v3560_v2  ;;  %v6559_v12 = vadd.f32 0.04023, %v3471_v25 }
0x195e   :  { %v6561_v56 = vadd.f32 %v3561_v45, %v3477_v58  ;;  %v3562_v47 = vrot.slane %v6557_v33, 7  ;;  %v3491_v14 = vmul.f32 0.06262315, %v3483_v20  ;;  %v3496_v23 = vadd.f32 1.720512e-13, %v3488_v42 }
0x195f   :  { %4554 = vmatpush3.bf16.msra.mxu0 %v4551_v11  ;;  %4568 = vmatpush3.bf16.msra.mxu1 %v4551_v11  ;;  %v4559_v13 = vpack.c.bf16 %v6559_v12, %v6557_v33  ;;  %v3497_v6 = vadd.f32 1.720512e-13, %v3489_v52  ;;  %v3492_v37 = vmul.f32 0.06262315, %v3484_v18  ;;  %v3498_v22 = vadd.f32 1.720512e-13, %v3490_v7 }
0x1960   :  { %4556 = vmatprep.subr.bf16.mxu0 %v4555_v0  ;;  %4565 = vmatprep.subr.bf16.mxu1 %v4555_v0  ;;  %v3563_v30 = vsel %vm93_vm1, %v3560_v2, %v3562_v47  ;;  %v3493_v21 = vmul.f32 0.06262315, %v3485_v27  ;;  %v3499_v36 = vadd.f32 1.720512e-13, %v3491_v14  ;;  %v3512_v9 = vrot.slane %v3496_v23, 7 }
0x1961   :  { %v6570_v10 = vadd.f32 %v3563_v30, %v6557_v33  ;;  %v3513_v49 = vrot.slane %v3497_v6, 7  ;;  %v3500_v24 = vadd.f32 1.720512e-13, %v3492_v37  ;;  %v3515_v29 = vrot.slane %v3498_v22, 7 }
0x1962   :  { %v3501_v35 = vadd.f32 1.720512e-13, %v3493_v21  ;;  %v3574_v39 = vadd.f32 %v3551_v51, %v6530_v61  ;;  %v3517_v46 = vrot.slane %v3499_v36, 7  ;;  %v3535_v53 = vsub.f32 %v3496_v23, %v3512_v9 }
0x1963   :  { %4558 = vmatpush3.bf16.msra.mxu0 %v4555_v0  ;;  %4569 = vmatpush3.bf16.msra.mxu1 %v4555_v0  ;;  %v3514_v48 = vsel %vm93_vm1, %v3512_v9, %v3513_v49  ;;  %v3519_v32 = vrot.slane %v3500_v24, 7  ;;  %v3516_v63 = vsel %vm93_vm1, %v3513_v49, %v3515_v29  ;;  %v3583_v26 = vmul.f32 0.5, %v6537_v55 }
0x1964   :  { %4560 = vmatprep.subr.bf16.mxu0 %v4559_v13  ;;  %4566 = vmatprep.subr.bf16.mxu1 %v4559_v13  ;;  %v3521_v50 = vrot.slane %v3501_v35, 7  ;;  %v3536_v59 = vsub.f32 %v3497_v6, %v3514_v48  ;;  %v3582_v11 = vmul.f32 0.5, %v3574_v39  ;;  %v3518_v3 = vsel %vm93_vm1, %v3515_v29, %v3517_v46 }
0x1965   :  { %v3537_v54 = vsub.f32 %v3498_v22, %v3516_v63  ;;  %v3584_v4 = vmul.f32 0.5, %v6547_v41  ;;  %v3520_v17 = vsel %vm93_vm1, %v3517_v46, %v3519_v32  ;;  %v3538_v51 = vsub.f32 %v3499_v36, %v3518_v3  ;;  %v3486_v41 = vld [vmem:[%s6702_s0 + $0x50] sm:$0xff] }
0x1966   :  { %v3522_v61 = vsel %vm93_vm1, %v3519_v32, %v3521_v50  ;;  %v3585_v15 = vmul.f32 0.5, %v6551_v62  ;;  %v3590_v44 = vmul.f32 %v3582_v11, %v3535_v53  ;;  %v3539_v58 = vsub.f32 %v3500_v24, %v3520_v17 }
0x1967   :  { %4562 = vmatpush3.bf16.msra.mxu0 %v4559_v13  ;;  %4570 = vmatpush3.bf16.msra.mxu1 %v4559_v13  ;;  %v3586_v43 = vmul.f32 0.5, %v6554_v34  ;;  %v3591_v57 = vmul.f32 %v3583_v26, %v3536_v59  ;;  %v3592_v31 = vmul.f32 %v3584_v4, %v3537_v54  ;;  %v3540_v2 = vsub.f32 %v3501_v35, %v3522_v61  ;;  %v3487_v34 = vld [vmem:[%s6702_s0 + $0x58] sm:$0xff] }
0x1968   :  { %v3587_v0 = vmul.f32 0.5, %v6561_v56  ;;  %v3593_v55 = vmul.f32 %v3585_v15, %v3538_v51  ;;  %v3494_v45 = vmul.f32 0.06262315, %v3486_v41  ;;  %v3607_v13 = vrot.slane %v3590_v44, 1 }
0x1969   :  { %v3594_v25 = vmul.f32 %v3586_v43, %v3539_v58  ;;  %v3608_v30 = vrot.slane %v3591_v57, 1  ;;  %v3588_v28 = vmul.f32 0.5, %v6570_v10  ;;  %v3653_v58 = vld [vmem:[%s6708_s6] sm:$0x1] }
0x196a   :  { %4466 = vmatmul.mubr.msk.f32.vlgmr.msra.gmra.mrb[0].mxu0 %vm3665_vm4, %v3658_v8  ;;  %4472 = vmatmul.mubr.msk.f32.vlgmr.msra.gmra.mrb[0].mxu1 %vm3665_vm4, %v3662_v19  ;;  %v3610_v8 = vrot.slane %v3592_v31, 1  ;;  %v3595_v62 = vmul.f32 %v3587_v0, %v3540_v2  ;;  %v3564_v19 = vrot.slane %v6559_v12, 7  ;;  %v3612_v56 = vrot.slane %v3593_v55, 1 }
0x196b   :  { %4468 = vmatprep.mubr.msk.f32.mxu0 %vm3665_vm4, %v3659_v38  ;;  %4474 = vmatprep.mubr.msk.f32.mxu1 %vm3665_vm4, %v3663_v1  ;;  %v3495_v38 = vmul.f32 0.06262315, %v3487_v34  ;;  %v3502_v1 = vadd.f32 1.720512e-13, %v3494_v45  ;;  %v3609_v42 = vsel %vm3606_vm5, %v3607_v13, %v3608_v30 }
0x196c   :  { %v3616_v16 = vrot.slane %v3595_v62, 1  ;;  %v3611_v52 = vsel %vm3606_vm5, %v3608_v30, %v3610_v8  ;;  %v3565_v18 = vsel %vm93_vm1, %v3562_v47, %v3564_v19  ;;  %v3631_v27 = vsel %vm2345_vm3, %v3609_v42, 0.0 }
0x196d   :  { %v3523_v60 = vrot.slane %v3502_v1, 7  ;;  %v3581_v23 = vadd.f32 %v3565_v18, %v6559_v12  ;;  %v3613_v6 = vsel %vm3606_vm5, %v3610_v8, %v3612_v56  ;;  %v3632_v10 = vsel %vm2345_vm3, %v3611_v52, 0.0 }
0x196e   :  { %4469 = vmatmul.mubr.msk.f32.gmra.mrb[2].mxu0 %vm3665_vm4, %v3660_v5  ;;  %4475 = vmatmul.mubr.msk.f32.gmra.mrb[2].mxu1 %vm3665_vm4, %v3664_v40  ;;  %v3614_v5 = vrot.slane %v3594_v25, 1  ;;  %v3503_v40 = vadd.f32 1.720512e-13, %v3495_v38  ;;  %v3633_v22 = vadd.f32 %v3632_v10, %v3631_v27  ;;  %v3634_v21 = vsel %vm2345_vm3, %v3613_v6, 0.0 }
0x196f   :  { %v3524_v20 = vsel %vm93_vm1, %v3521_v50, %v3523_v60  ;;  %v3589_v9 = vmul.f32 0.5, %v3581_v23 }
0x1970   :  { %v3525_v7 = vrot.slane %v3503_v40, 7  ;;  %v3541_v14 = vsub.f32 %v3502_v1, %v3524_v20  ;;  %v3615_v33 = vsel %vm3606_vm5, %v3612_v56, %v3614_v5  ;;  %v3635_v47 = vadd.f32 %v3634_v21, %v3633_v22 }
0x1971   :  { %v3636_v24 = vsel %vm2345_vm3, %v3615_v33, 0.0  ;;  %v3617_v12 = vsel %vm3606_vm5, %v3614_v5, %v3616_v16 }
0x1972   :  { %v3526_v37 = vsel %vm93_vm1, %v3523_v60, %v3525_v7  ;;  %v3596_v49 = vmul.f32 %v3588_v28, %v3541_v14  ;;  %v3637_v39 = vadd.f32 %v3636_v24, %v3635_v47  ;;  %v3638_v46 = vsel %vm2345_vm3, %v3617_v12, 0.0 }
0x1973   :  { %v3542_v36 = vsub.f32 %v3503_v40, %v3526_v37 }
0x1974   :  { %v3618_v35 = vrot.slane %v3596_v49, 1  ;;  %v3639_v63 = vadd.f32 %v3638_v46, %v3637_v39 }
0x1975   :  { %v3597_v29 = vmul.f32 %v3589_v9, %v3542_v36 }
0x1976   :  { %v3619_v48 = vsel %vm3606_vm5, %v3616_v16, %v3618_v35 }
0x1977   :  { %v3620_v32 = vrot.slane %v3597_v29, 1  ;;  %v3640_v50 = vsel %vm2345_vm3, %v3619_v48, 0.0 }
0x1978   :  { %v3641_v59 = vadd.f32 %v3640_v50, %v3639_v63 }
0x1979   :  { %v3621_v53 = vsel %vm3606_vm5, %v3618_v35, %v3620_v32  ;;  %v3645_v26 = vsel %vm3644_vm6, %v3620_v32, 0.0 }
0x197a   :  { %v3642_v11 = vsel %vm2345_vm3, %v3621_v53, 0.0 }
0x197b   :  { %v3643_v3 = vadd.f32 %v3642_v11, %v3641_v59 }
0x197d   :  { %v3646_v54 = vadd.f32 %v3645_v26, %v3643_v3 }
0x197f   :  { %v3647_v4 = vrot.slane %v3646_v54, 4 }
0x1981   :  { %v3648_v17 = vadd.f32 %v3647_v4, %v3646_v54 }
0x1983   :  { %v3649_v61 = vrot.slane %v3648_v17, 2 }
0x1985   :  { %v3650_v51 = vadd.f32 %v3649_v61, %v3648_v17 }
0x1987   :  { %v3651_v15 = vrot.slane %v3650_v51, 1 }
0x1989   :  { %v3652_v44 = vadd.f32 %v3651_v15, %v3650_v51 }
0x198b   :  { %v3654_v43 = vmul.f32 %v3653_v58, %v3652_v44 }
0x198d   :  { %3656 = vst.msk [vmem:[#allocation6] sm:$0x1] %vm3655_vm7, %v3654_v43 }
0x198e   :  { %4944 = shalt.err (!%p4941_p6)
}
0x198f   :  { %s4945_s21 = scalar_lea.hbm %s6716_s14, 16 }
0x1990   :  { %p4946_p7 = scmp.ne.s32.totalorder %s6716_s14, %s4945_s21  ;;  %p4949_p8 = scmp.lt.u32.totalorder %s4945_s21, %s6716_s14 }
0x1992   :  { %p4951_p9 = pnand %p4949_p8, %p4946_p7 }
0x1994   :  { %4954 = shalt.err (!%p4951_p9)
}
0x1995   :  { %3812 = dma.vmem_to_hbm [thread:$0]  %s3810_s3, 16, %s6716_s14, [#allocation7]  }
0x1a3d   :  { %v4467_v57 = vpop.f32.mrb[0].mxu0  ;;  %v4473_v31 = vpop.f32.mrb[0].mxu1 }
0x1a3e   :  { %3796 = vst.msk [vmem:[%s6717_s15 + $0x8] sm:$0xff] %vm2345_vm3, %v4467_v57  ;;  %3800 = vst.msk [vmem:[%s6717_s15 + $0x28] sm:$0xff] %vm2345_vm3, %v4473_v31  ;;  %v3756_v2 = vpop.f32.mrb[1].mxu0  ;;  %v3776_v0 = vpop.f32.mrb[1].mxu1 }
0x1a3f   :  { %3795 = vst.msk [vmem:[%s6717_s15] sm:$0xff] %vm2345_vm3, %v3756_v2  ;;  %3799 = vst.msk [vmem:[%s6717_s15 + $0x20] sm:$0xff] %vm2345_vm3, %v3776_v0 }
0x1a41   :  { %v4470_v55 = vpop.f32.mrb[2].mxu0  ;;  %v4476_v41 = vpop.f32.mrb[2].mxu1 }
0x1a42   :  { %3798 = vst.msk [vmem:[%s6717_s15 + $0x18] sm:$0xff] %vm2345_vm3, %v4470_v55  ;;  %3802 = vst.msk [vmem:[%s6717_s15 + $0x38] sm:$0xff] %vm2345_vm3, %v4476_v41  ;;  %v3766_v25 = vpop.f32.mrb[3].mxu0  ;;  %v3786_v45 = vpop.f32.mrb[3].mxu1 }
0x1a43   :  { %3797 = vst.msk [vmem:[%s6717_s15 + $0x10] sm:$0xff] %vm2345_vm3, %v3766_v25  ;;  %3801 = vst.msk [vmem:[%s6717_s15 + $0x30] sm:$0xff] %vm2345_vm3, %v3786_v45 }
0x1a44   :  { %5027 = dma.done.wait [#allocation7], 16  }
0x1a45   :  { %5028 = vsyncadd [#allocation7], 4294967280 }
0x1a46   :  { %3820 = vsyncpa [#allocation7], 1 }

</bundles_post_ra>
